<compile_context>
chip_gen: v5e
topology: v5e:2x2
jax: 0.10.0
libtpu: 0.0.40
codegen_flags: <defaults>
</compile_context>

<pallas_src>
import functools

import jax
import jax.numpy as jnp
import numpy as np
from jax import lax
from jax.experimental import pallas as pl
from jax.experimental.pallas import tpu as pltpu


def _resblock_kernel(x_ref, w1_ref, w2_ref, s1_ref, b1_ref, s2_ref, b2_ref,
                     out_ref, xpad_ref, mpad_ref, patch_ref, *, H, W, C):
    # x_ref    : (1, H, W, C)   input tile (NHWC), one batch element per step
    # w1_ref   : (9*C, C)       conv1 weights, im2col layout (tap*Cin, Cout)
    # w2_ref   : (9*C, C)       conv2 weights
    # s*/b*    : (1, C)         folded BatchNorm scale / bias (eval mode)
    # out_ref  : (1, H, W, C)
    # xpad_ref : (H+2, W+2, C)  f32 scratch: zero-padded input
    # mpad_ref : (H+2, W+2, C)  f32 scratch: zero-padded conv1 output
    # patch_ref: (H, W, 9*C)    f32 scratch: im2col patches (reused by both convs)

    # Zero only the 1-pixel halo; the interior is fully rewritten below.
    z_row = jnp.zeros((1, W + 2, C), jnp.float32)
    z_col = jnp.zeros((H + 2, 1, C), jnp.float32)
    for pad in (xpad_ref, mpad_ref):
        pad[0:1, :, :] = z_row
        pad[H + 1:H + 2, :, :] = z_row
        pad[:, 0:1, :] = z_col
        pad[:, W + 1:W + 2, :] = z_col

    x = x_ref[0].astype(jnp.float32)                           # (H, W, C)
    xpad_ref[1:1 + H, 1:1 + W, :] = x

    def conv3x3_im2col(src_pad_ref, w_ref):
        # Gather the 9 shifted views into one (H, W, 9C) patch slab, then do
        # the whole 3x3 conv as a single (H*W, 9C) @ (9C, C) MXU matmul.
        for t in range(9):
            kh, kw = t // 3, t % 3
            patch_ref[:, :, t * C:(t + 1) * C] = (
                src_pad_ref[kh:kh + H, kw:kw + W, :])
        patches = patch_ref[...].reshape(H * W, 9 * C)
        return jnp.dot(patches, w_ref[...],
                       preferred_element_type=jnp.float32)      # (H*W, C)

    # conv1 -> bn1 -> relu
    mid = conv3x3_im2col(xpad_ref, w1_ref)
    mid = jnp.maximum(mid * s1_ref[...] + b1_ref[...], 0.0)
    mpad_ref[1:1 + H, 1:1 + W, :] = mid.reshape(H, W, C)

    # conv2 -> bn2 -> +identity -> relu
    y = conv3x3_im2col(mpad_ref, w2_ref)
    y = y * s2_ref[...] + b2_ref[...]
    out = jnp.maximum(y.reshape(H, W, C) + x, 0.0)
    out_ref[0] = out.astype(out_ref.dtype)


def resblock_pallas(x_nchw, w1_im2col, w2_im2col, s1, b1, s2, b2):
    """ResBlock forward.  x_nchw: (N, C, H, W) float32 (PyTorch layout)."""
    x = jnp.transpose(x_nchw, (0, 2, 3, 1))                     # -> NHWC
    N, H, W, C = x.shape

    kern = functools.partial(_resblock_kernel, H=H, W=W, C=C)
    out = pl.pallas_call(
        kern,
        out_shape=jax.ShapeDtypeStruct((N, H, W, C), x.dtype),
        grid_spec=pltpu.PrefetchScalarGridSpec(
            num_scalar_prefetch=0,
            grid=(N,),                                          # one image / step
            in_specs=[
                pl.BlockSpec((1, H, W, C), lambda n: (n, 0, 0, 0)),
                pl.BlockSpec((9 * C, C), lambda n: (0, 0)),
                pl.BlockSpec((9 * C, C), lambda n: (0, 0)),
                pl.BlockSpec((1, C), lambda n: (0, 0)),
                pl.BlockSpec((1, C), lambda n: (0, 0)),
                pl.BlockSpec((1, C), lambda n: (0, 0)),
                pl.BlockSpec((1, C), lambda n: (0, 0)),
            ],
            out_specs=pl.BlockSpec((1, H, W, C), lambda n: (n, 0, 0, 0)),
            scratch_shapes=[
                pltpu.VMEM((H + 2, W + 2, C), jnp.float32),     # padded input
                pltpu.VMEM((H + 2, W + 2, C), jnp.float32),     # padded conv1 out
                pltpu.VMEM((H, W, 9 * C), jnp.float32),         # im2col patches
            ],
        ),
        compiler_params=pltpu.CompilerParams(
            dimension_semantics=("parallel",)),                 # v7x: 2 TCs busy
    )(x, w1_im2col, w2_im2col, s1, b1, s2, b2)
    return jnp.transpose(out, (0, 3, 1, 2))                     # -> NCHW


def _reference(x_nchw, w1_hwio, w2_hwio, s1, b1, s2, b2):
    """Pure-JAX reference of the same (eval-mode BN) ResBlock forward."""
    xh = jnp.transpose(x_nchw, (0, 2, 3, 1))
    dn = ('NHWC', 'HWIO', 'NHWC')
    y = lax.conv_general_dilated(xh, w1_hwio, (1, 1), 'SAME',
                                 dimension_numbers=dn)
    y = jnp.maximum(y * s1 + b1, 0.0)
    y = lax.conv_general_dilated(y, w2_hwio, (1, 1), 'SAME',
                                 dimension_numbers=dn)
    y = jnp.maximum(y * s2 + b2 + xh, 0.0)
    return jnp.transpose(y, (0, 3, 1, 2))


if __name__ == "__main__":
    N, C, H, W = 2, 4, 16, 16          # inplanes = planes = 4, stride = 1
    eps = 1e-5

    key = jax.random.PRNGKey(0)
    ks = jax.random.split(key, 12)
    x = jax.random.normal(ks[0], (N, C, H, W), jnp.float32)

    # Conv weights in PyTorch OIHW layout, deterministically initialized.
    w1_oihw = 0.2 * jax.random.normal(ks[1], (C, C, 3, 3), jnp.float32)
    w2_oihw = 0.2 * jax.random.normal(ks[2], (C, C, 3, 3), jnp.float32)
    w1_hwio = jnp.transpose(w1_oihw, (2, 3, 1, 0))              # (kh, kw, Cin, Cout)
    w2_hwio = jnp.transpose(w2_oihw, (2, 3, 1, 0))
    w1_im2col = w1_hwio.reshape(9 * C, C)                       # (tap*Cin, Cout)
    w2_im2col = w2_hwio.reshape(9 * C, C)

    # BatchNorm parameters (eval-mode: folded into scale/bias).
    gamma1 = 1.0 + 0.1 * jax.random.normal(ks[3], (C,), jnp.float32)
    beta1 = 0.1 * jax.random.normal(ks[4], (C,), jnp.float32)
    mean1 = 0.1 * jax.random.normal(ks[5], (C,), jnp.float32)
    var1 = 0.5 + jnp.abs(jax.random.normal(ks[6], (C,), jnp.float32))
    gamma2 = 1.0 + 0.1 * jax.random.normal(ks[7], (C,), jnp.float32)
    beta2 = 0.1 * jax.random.normal(ks[8], (C,), jnp.float32)
    mean2 = 0.1 * jax.random.normal(ks[9], (C,), jnp.float32)
    var2 = 0.5 + jnp.abs(jax.random.normal(ks[10], (C,), jnp.float32))

    s1 = (gamma1 / jnp.sqrt(var1 + eps)).reshape(1, C)
    b1 = (beta1 - mean1 * gamma1 / jnp.sqrt(var1 + eps)).reshape(1, C)
    s2 = (gamma2 / jnp.sqrt(var2 + eps)).reshape(1, C)
    b2 = (beta2 - mean2 * gamma2 / jnp.sqrt(var2 + eps)).reshape(1, C)

    out = resblock_pallas(x, w1_im2col, w2_im2col, s1, b1, s2, b2)
    out = jax.block_until_ready(out)

    ref = _reference(x, w1_hwio, w2_hwio, s1, b1, s2, b2)
    np.testing.assert_allclose(np.asarray(out), np.asarray(ref),
                               rtol=1e-4, atol=1e-4)
    print("KERNEL_OK")
</pallas_src>

<mosaic_0001>
module attributes {stable_mosaic.version = 11 : i64} {
  func.func @_resblock_kernel(%arg0: i32, %arg1: memref<1x16x16x4xf32, #tpu.memory_space<vmem>>, %arg2: memref<36x4xf32, #tpu.memory_space<vmem>>, %arg3: memref<36x4xf32, #tpu.memory_space<vmem>>, %arg4: memref<1x4xf32, #tpu.memory_space<vmem>>, %arg5: memref<1x4xf32, #tpu.memory_space<vmem>>, %arg6: memref<1x4xf32, #tpu.memory_space<vmem>>, %arg7: memref<1x4xf32, #tpu.memory_space<vmem>>, %arg8: memref<1x16x16x4xf32, #tpu.memory_space<vmem>>, %arg9: memref<18x18x4xf32, #tpu.memory_space<vmem>>, %arg10: memref<18x18x4xf32, #tpu.memory_space<vmem>>, %arg11: memref<16x16x36xf32, #tpu.memory_space<vmem>>) attributes {dimension_semantics = [#tpu.dimension_semantics<parallel>], iteration_bounds = array<i64: 2>, scalar_prefetch = 0 : i64, scratch_operands = 3 : i64, tpu.core_type = #tpu.core_type<tc>, window_params = [{transform_indices = @transform_0, window_bounds = array<i64: 1, 16, 16, 4>}, {pipeline_mode = #tpu.pipeline_mode<synchronous>, transform_indices = @transform_1, window_bounds = array<i64: 36, 4>}, {pipeline_mode = #tpu.pipeline_mode<synchronous>, transform_indices = @transform_2, window_bounds = array<i64: 36, 4>}, {pipeline_mode = #tpu.pipeline_mode<synchronous>, transform_indices = @transform_3, window_bounds = array<i64: 1, 4>}, {pipeline_mode = #tpu.pipeline_mode<synchronous>, transform_indices = @transform_4, window_bounds = array<i64: 1, 4>}, {pipeline_mode = #tpu.pipeline_mode<synchronous>, transform_indices = @transform_5, window_bounds = array<i64: 1, 4>}, {pipeline_mode = #tpu.pipeline_mode<synchronous>, transform_indices = @transform_6, window_bounds = array<i64: 1, 4>}, {transform_indices = @transform_7, window_bounds = array<i64: 1, 16, 16, 4>}]} {
    %cst = arith.constant 0.000000e+00 : f32
    %0 = vector.broadcast %cst : f32 to vector<1x18x4xf32>
    %cst_0 = arith.constant 0.000000e+00 : f32
    %1 = vector.broadcast %cst_0 : f32 to vector<18x1x4xf32>
    %c0 = arith.constant 0 : index
    %c0_1 = arith.constant 0 : index
    %c0_2 = arith.constant 0 : index
    %2 = vector.load %arg9[%c0, %c0_1, %c0_2] : memref<18x18x4xf32, #tpu.memory_space<vmem>>, vector<1x18x4xf32>
    tpu.vector_store %arg9[%c0, %c0_1, %c0_2], %0 {strides = array<i32>} : memref<18x18x4xf32, #tpu.memory_space<vmem>>, vector<1x18x4xf32>,
    %c17 = arith.constant 17 : index
    %c0_3 = arith.constant 0 : index
    %c0_4 = arith.constant 0 : index
    %3 = vector.load %arg9[%c17, %c0_3, %c0_4] : memref<18x18x4xf32, #tpu.memory_space<vmem>>, vector<1x18x4xf32>
    tpu.vector_store %arg9[%c17, %c0_3, %c0_4], %0 {strides = array<i32>} : memref<18x18x4xf32, #tpu.memory_space<vmem>>, vector<1x18x4xf32>,
    %c0_5 = arith.constant 0 : index
    %c0_6 = arith.constant 0 : index
    %c0_7 = arith.constant 0 : index
    %4 = vector.load %arg9[%c0_5, %c0_6, %c0_7] : memref<18x18x4xf32, #tpu.memory_space<vmem>>, vector<18x1x4xf32>
    tpu.vector_store %arg9[%c0_5, %c0_6, %c0_7], %1 {strides = array<i32>} : memref<18x18x4xf32, #tpu.memory_space<vmem>>, vector<18x1x4xf32>,
    %c0_8 = arith.constant 0 : index
    %c17_9 = arith.constant 17 : index
    %c0_10 = arith.constant 0 : index
    %5 = vector.load %arg9[%c0_8, %c17_9, %c0_10] : memref<18x18x4xf32, #tpu.memory_space<vmem>>, vector<18x1x4xf32>
    tpu.vector_store %arg9[%c0_8, %c17_9, %c0_10], %1 {strides = array<i32>} : memref<18x18x4xf32, #tpu.memory_space<vmem>>, vector<18x1x4xf32>,
    %c0_11 = arith.constant 0 : index
    %c0_12 = arith.constant 0 : index
    %c0_13 = arith.constant 0 : index
    %6 = vector.load %arg10[%c0_11, %c0_12, %c0_13] : memref<18x18x4xf32, #tpu.memory_space<vmem>>, vector<1x18x4xf32>
    tpu.vector_store %arg10[%c0_11, %c0_12, %c0_13], %0 {strides = array<i32>} : memref<18x18x4xf32, #tpu.memory_space<vmem>>, vector<1x18x4xf32>,
    %c17_14 = arith.constant 17 : index
    %c0_15 = arith.constant 0 : index
    %c0_16 = arith.constant 0 : index
    %7 = vector.load %arg10[%c17_14, %c0_15, %c0_16] : memref<18x18x4xf32, #tpu.memory_space<vmem>>, vector<1x18x4xf32>
    tpu.vector_store %arg10[%c17_14, %c0_15, %c0_16], %0 {strides = array<i32>} : memref<18x18x4xf32, #tpu.memory_space<vmem>>, vector<1x18x4xf32>,
    %c0_17 = arith.constant 0 : index
    %c0_18 = arith.constant 0 : index
    %c0_19 = arith.constant 0 : index
    %8 = vector.load %arg10[%c0_17, %c0_18, %c0_19] : memref<18x18x4xf32, #tpu.memory_space<vmem>>, vector<18x1x4xf32>
    tpu.vector_store %arg10[%c0_17, %c0_18, %c0_19], %1 {strides = array<i32>} : memref<18x18x4xf32, #tpu.memory_space<vmem>>, vector<18x1x4xf32>,
    %c0_20 = arith.constant 0 : index
    %c17_21 = arith.constant 17 : index
    %c0_22 = arith.constant 0 : index
    %9 = vector.load %arg10[%c0_20, %c17_21, %c0_22] : memref<18x18x4xf32, #tpu.memory_space<vmem>>, vector<18x1x4xf32>
    tpu.vector_store %arg10[%c0_20, %c17_21, %c0_22], %1 {strides = array<i32>} : memref<18x18x4xf32, #tpu.memory_space<vmem>>, vector<18x1x4xf32>,
    %c0_23 = arith.constant 0 : index
    %c0_24 = arith.constant 0 : index
    %c0_25 = arith.constant 0 : index
    %c0_26 = arith.constant 0 : index
    %10 = vector.load %arg1[%c0_23, %c0_24, %c0_25, %c0_26] : memref<1x16x16x4xf32, #tpu.memory_space<vmem>>, vector<1x16x16x4xf32>
    %11 = vector.shape_cast %10 : vector<1x16x16x4xf32> to vector<16x16x4xf32>
    %c1 = arith.constant 1 : index
    %c1_27 = arith.constant 1 : index
    %c0_28 = arith.constant 0 : index
    %12 = vector.load %arg9[%c1, %c1_27, %c0_28] : memref<18x18x4xf32, #tpu.memory_space<vmem>>, vector<16x16x4xf32>
    tpu.vector_store %arg9[%c1, %c1_27, %c0_28], %11 {strides = array<i32>} : memref<18x18x4xf32, #tpu.memory_space<vmem>>, vector<16x16x4xf32>,
    %c0_29 = arith.constant 0 : index
    %c0_30 = arith.constant 0 : index
    %c0_31 = arith.constant 0 : index
    %13 = vector.load %arg9[%c0_29, %c0_30, %c0_31] : memref<18x18x4xf32, #tpu.memory_space<vmem>>, vector<16x16x4xf32>
    %c0_32 = arith.constant 0 : index
    %c0_33 = arith.constant 0 : index
    %c0_34 = arith.constant 0 : index
    %14 = vector.load %arg11[%c0_32, %c0_33, %c0_34] : memref<16x16x36xf32, #tpu.memory_space<vmem>>, vector<16x16x4xf32>
    tpu.vector_store %arg11[%c0_32, %c0_33, %c0_34], %13 {strides = array<i32>} : memref<16x16x36xf32, #tpu.memory_space<vmem>>, vector<16x16x4xf32>,
    %c0_35 = arith.constant 0 : index
    %c1_36 = arith.constant 1 : index
    %c0_37 = arith.constant 0 : index
    %15 = vector.load %arg9[%c0_35, %c1_36, %c0_37] : memref<18x18x4xf32, #tpu.memory_space<vmem>>, vector<16x16x4xf32>
    %c0_38 = arith.constant 0 : index
    %c0_39 = arith.constant 0 : index
    %c4 = arith.constant 4 : index
    %16 = vector.load %arg11[%c0_38, %c0_39, %c4] : memref<16x16x36xf32, #tpu.memory_space<vmem>>, vector<16x16x4xf32>
    tpu.vector_store %arg11[%c0_38, %c0_39, %c4], %15 {strides = array<i32>} : memref<16x16x36xf32, #tpu.memory_space<vmem>>, vector<16x16x4xf32>,
    %c0_40 = arith.constant 0 : index
    %c2 = arith.constant 2 : index
    %c0_41 = arith.constant 0 : index
    %17 = vector.load %arg9[%c0_40, %c2, %c0_41] : memref<18x18x4xf32, #tpu.memory_space<vmem>>, vector<16x16x4xf32>
    %c0_42 = arith.constant 0 : index
    %c0_43 = arith.constant 0 : index
    %c8 = arith.constant 8 : index
    %18 = vector.load %arg11[%c0_42, %c0_43, %c8] : memref<16x16x36xf32, #tpu.memory_space<vmem>>, vector<16x16x4xf32>
    tpu.vector_store %arg11[%c0_42, %c0_43, %c8], %17 {strides = array<i32>} : memref<16x16x36xf32, #tpu.memory_space<vmem>>, vector<16x16x4xf32>,
    %c1_44 = arith.constant 1 : index
    %c0_45 = arith.constant 0 : index
    %c0_46 = arith.constant 0 : index
    %19 = vector.load %arg9[%c1_44, %c0_45, %c0_46] : memref<18x18x4xf32, #tpu.memory_space<vmem>>, vector<16x16x4xf32>
    %c0_47 = arith.constant 0 : index
    %c0_48 = arith.constant 0 : index
    %c12 = arith.constant 12 : index
    %20 = vector.load %arg11[%c0_47, %c0_48, %c12] : memref<16x16x36xf32, #tpu.memory_space<vmem>>, vector<16x16x4xf32>
    tpu.vector_store %arg11[%c0_47, %c0_48, %c12], %19 {strides = array<i32>} : memref<16x16x36xf32, #tpu.memory_space<vmem>>, vector<16x16x4xf32>,
    %c1_49 = arith.constant 1 : index
    %c1_50 = arith.constant 1 : index
    %c0_51 = arith.constant 0 : index
    %21 = vector.load %arg9[%c1_49, %c1_50, %c0_51] : memref<18x18x4xf32, #tpu.memory_space<vmem>>, vector<16x16x4xf32>
    %c0_52 = arith.constant 0 : index
    %c0_53 = arith.constant 0 : index
    %c16 = arith.constant 16 : index
    %22 = vector.load %arg11[%c0_52, %c0_53, %c16] : memref<16x16x36xf32, #tpu.memory_space<vmem>>, vector<16x16x4xf32>
    tpu.vector_store %arg11[%c0_52, %c0_53, %c16], %21 {strides = array<i32>} : memref<16x16x36xf32, #tpu.memory_space<vmem>>, vector<16x16x4xf32>,
    %c1_54 = arith.constant 1 : index
    %c2_55 = arith.constant 2 : index
    %c0_56 = arith.constant 0 : index
    %23 = vector.load %arg9[%c1_54, %c2_55, %c0_56] : memref<18x18x4xf32, #tpu.memory_space<vmem>>, vector<16x16x4xf32>
    %c0_57 = arith.constant 0 : index
    %c0_58 = arith.constant 0 : index
    %c20 = arith.constant 20 : index
    %24 = vector.load %arg11[%c0_57, %c0_58, %c20] : memref<16x16x36xf32, #tpu.memory_space<vmem>>, vector<16x16x4xf32>
    tpu.vector_store %arg11[%c0_57, %c0_58, %c20], %23 {strides = array<i32>} : memref<16x16x36xf32, #tpu.memory_space<vmem>>, vector<16x16x4xf32>,
    %c2_59 = arith.constant 2 : index
    %c0_60 = arith.constant 0 : index
    %c0_61 = arith.constant 0 : index
    %25 = vector.load %arg9[%c2_59, %c0_60, %c0_61] : memref<18x18x4xf32, #tpu.memory_space<vmem>>, vector<16x16x4xf32>
    %c0_62 = arith.constant 0 : index
    %c0_63 = arith.constant 0 : index
    %c24 = arith.constant 24 : index
    %26 = vector.load %arg11[%c0_62, %c0_63, %c24] : memref<16x16x36xf32, #tpu.memory_space<vmem>>, vector<16x16x4xf32>
    tpu.vector_store %arg11[%c0_62, %c0_63, %c24], %25 {strides = array<i32>} : memref<16x16x36xf32, #tpu.memory_space<vmem>>, vector<16x16x4xf32>,
    %c2_64 = arith.constant 2 : index
    %c1_65 = arith.constant 1 : index
    %c0_66 = arith.constant 0 : index
    %27 = vector.load %arg9[%c2_64, %c1_65, %c0_66] : memref<18x18x4xf32, #tpu.memory_space<vmem>>, vector<16x16x4xf32>
    %c0_67 = arith.constant 0 : index
    %c0_68 = arith.constant 0 : index
    %c28 = arith.constant 28 : index
    %28 = vector.load %arg11[%c0_67, %c0_68, %c28] : memref<16x16x36xf32, #tpu.memory_space<vmem>>, vector<16x16x4xf32>
    tpu.vector_store %arg11[%c0_67, %c0_68, %c28], %27 {strides = array<i32>} : memref<16x16x36xf32, #tpu.memory_space<vmem>>, vector<16x16x4xf32>,
    %c2_69 = arith.constant 2 : index
    %c2_70 = arith.constant 2 : index
    %c0_71 = arith.constant 0 : index
    %29 = vector.load %arg9[%c2_69, %c2_70, %c0_71] : memref<18x18x4xf32, #tpu.memory_space<vmem>>, vector<16x16x4xf32>
    %c0_72 = arith.constant 0 : index
    %c0_73 = arith.constant 0 : index
    %c32 = arith.constant 32 : index
    %30 = vector.load %arg11[%c0_72, %c0_73, %c32] : memref<16x16x36xf32, #tpu.memory_space<vmem>>, vector<16x16x4xf32>
    tpu.vector_store %arg11[%c0_72, %c0_73, %c32], %29 {strides = array<i32>} : memref<16x16x36xf32, #tpu.memory_space<vmem>>, vector<16x16x4xf32>,
    %c0_74 = arith.constant 0 : index
    %c0_75 = arith.constant 0 : index
    %c0_76 = arith.constant 0 : index
    %31 = vector.load %arg11[%c0_74, %c0_75, %c0_76] : memref<16x16x36xf32, #tpu.memory_space<vmem>>, vector<16x16x36xf32>
    %32 = vector.shape_cast %31 : vector<16x16x36xf32> to vector<256x36xf32>
    %c0_77 = arith.constant 0 : index
    %c0_78 = arith.constant 0 : index
    %33 = vector.load %arg2[%c0_77, %c0_78] : memref<36x4xf32, #tpu.memory_space<vmem>>, vector<36x4xf32>
    %cst_79 = arith.constant dense<0.000000e+00> : vector<256x4xf32>
    %34 = tpu.matmul %32, %33, %cst_79 {dimension_numbers = #tpu.dot_dimension_numbers<[1], [0], [0], [1], [0, 0, 1, 1], [], []>} : vector<256x36xf32>, vector<36x4xf32>, vector<256x4xf32> -> vector<256x4xf32>
    %c0_80 = arith.constant 0 : index
    %c0_81 = arith.constant 0 : index
    %35 = vector.load %arg4[%c0_80, %c0_81] : memref<1x4xf32, #tpu.memory_space<vmem>>, vector<1x4xf32>
    %36 = vector.broadcast %35 : vector<1x4xf32> to vector<256x4xf32>
    %37 = arith.mulf %34, %36 : vector<256x4xf32>
    %c0_82 = arith.constant 0 : index
    %c0_83 = arith.constant 0 : index
    %38 = vector.load %arg5[%c0_82, %c0_83] : memref<1x4xf32, #tpu.memory_space<vmem>>, vector<1x4xf32>
    %39 = vector.broadcast %38 : vector<1x4xf32> to vector<256x4xf32>
    %40 = arith.addf %37, %39 : vector<256x4xf32>
    %cst_84 = arith.constant 0.000000e+00 : f32
    %41 = vector.broadcast %cst_84 : f32 to vector<256x4xf32>
    %42 = arith.maximumf %40, %41 : vector<256x4xf32>
    %43 = vector.shape_cast %42 : vector<256x4xf32> to vector<16x16x4xf32>
    %c1_85 = arith.constant 1 : index
    %c1_86 = arith.constant 1 : index
    %c0_87 = arith.constant 0 : index
    %44 = vector.load %arg10[%c1_85, %c1_86, %c0_87] : memref<18x18x4xf32, #tpu.memory_space<vmem>>, vector<16x16x4xf32>
    tpu.vector_store %arg10[%c1_85, %c1_86, %c0_87], %43 {strides = array<i32>} : memref<18x18x4xf32, #tpu.memory_space<vmem>>, vector<16x16x4xf32>,
    %c0_88 = arith.constant 0 : index
    %c0_89 = arith.constant 0 : index
    %c0_90 = arith.constant 0 : index
    %45 = vector.load %arg10[%c0_88, %c0_89, %c0_90] : memref<18x18x4xf32, #tpu.memory_space<vmem>>, vector<16x16x4xf32>
    %c0_91 = arith.constant 0 : index
    %c0_92 = arith.constant 0 : index
    %c0_93 = arith.constant 0 : index
    %46 = vector.load %arg11[%c0_91, %c0_92, %c0_93] : memref<16x16x36xf32, #tpu.memory_space<vmem>>, vector<16x16x4xf32>
    tpu.vector_store %arg11[%c0_91, %c0_92, %c0_93], %45 {strides = array<i32>} : memref<16x16x36xf32, #tpu.memory_space<vmem>>, vector<16x16x4xf32>,
    %c0_94 = arith.constant 0 : index
    %c1_95 = arith.constant 1 : index
    %c0_96 = arith.constant 0 : index
    %47 = vector.load %arg10[%c0_94, %c1_95, %c0_96] : memref<18x18x4xf32, #tpu.memory_space<vmem>>, vector<16x16x4xf32>
    %c0_97 = arith.constant 0 : index
    %c0_98 = arith.constant 0 : index
    %c4_99 = arith.constant 4 : index
    %48 = vector.load %arg11[%c0_97, %c0_98, %c4_99] : memref<16x16x36xf32, #tpu.memory_space<vmem>>, vector<16x16x4xf32>
    tpu.vector_store %arg11[%c0_97, %c0_98, %c4_99], %47 {strides = array<i32>} : memref<16x16x36xf32, #tpu.memory_space<vmem>>, vector<16x16x4xf32>,
    %c0_100 = arith.constant 0 : index
    %c2_101 = arith.constant 2 : index
    %c0_102 = arith.constant 0 : index
    %49 = vector.load %arg10[%c0_100, %c2_101, %c0_102] : memref<18x18x4xf32, #tpu.memory_space<vmem>>, vector<16x16x4xf32>
    %c0_103 = arith.constant 0 : index
    %c0_104 = arith.constant 0 : index
    %c8_105 = arith.constant 8 : index
    %50 = vector.load %arg11[%c0_103, %c0_104, %c8_105] : memref<16x16x36xf32, #tpu.memory_space<vmem>>, vector<16x16x4xf32>
    tpu.vector_store %arg11[%c0_103, %c0_104, %c8_105], %49 {strides = array<i32>} : memref<16x16x36xf32, #tpu.memory_space<vmem>>, vector<16x16x4xf32>,
    %c1_106 = arith.constant 1 : index
    %c0_107 = arith.constant 0 : index
    %c0_108 = arith.constant 0 : index
    %51 = vector.load %arg10[%c1_106, %c0_107, %c0_108] : memref<18x18x4xf32, #tpu.memory_space<vmem>>, vector<16x16x4xf32>
    %c0_109 = arith.constant 0 : index
    %c0_110 = arith.constant 0 : index
    %c12_111 = arith.constant 12 : index
    %52 = vector.load %arg11[%c0_109, %c0_110, %c12_111] : memref<16x16x36xf32, #tpu.memory_space<vmem>>, vector<16x16x4xf32>
    tpu.vector_store %arg11[%c0_109, %c0_110, %c12_111], %51 {strides = array<i32>} : memref<16x16x36xf32, #tpu.memory_space<vmem>>, vector<16x16x4xf32>,
    %c1_112 = arith.constant 1 : index
    %c1_113 = arith.constant 1 : index
    %c0_114 = arith.constant 0 : index
    %53 = vector.load %arg10[%c1_112, %c1_113, %c0_114] : memref<18x18x4xf32, #tpu.memory_space<vmem>>, vector<16x16x4xf32>
    %c0_115 = arith.constant 0 : index
    %c0_116 = arith.constant 0 : index
    %c16_117 = arith.constant 16 : index
    %54 = vector.load %arg11[%c0_115, %c0_116, %c16_117] : memref<16x16x36xf32, #tpu.memory_space<vmem>>, vector<16x16x4xf32>
    tpu.vector_store %arg11[%c0_115, %c0_116, %c16_117], %53 {strides = array<i32>} : memref<16x16x36xf32, #tpu.memory_space<vmem>>, vector<16x16x4xf32>,
    %c1_118 = arith.constant 1 : index
    %c2_119 = arith.constant 2 : index
    %c0_120 = arith.constant 0 : index
    %55 = vector.load %arg10[%c1_118, %c2_119, %c0_120] : memref<18x18x4xf32, #tpu.memory_space<vmem>>, vector<16x16x4xf32>
    %c0_121 = arith.constant 0 : index
    %c0_122 = arith.constant 0 : index
    %c20_123 = arith.constant 20 : index
    %56 = vector.load %arg11[%c0_121, %c0_122, %c20_123] : memref<16x16x36xf32, #tpu.memory_space<vmem>>, vector<16x16x4xf32>
    tpu.vector_store %arg11[%c0_121, %c0_122, %c20_123], %55 {strides = array<i32>} : memref<16x16x36xf32, #tpu.memory_space<vmem>>, vector<16x16x4xf32>,
    %c2_124 = arith.constant 2 : index
    %c0_125 = arith.constant 0 : index
    %c0_126 = arith.constant 0 : index
    %57 = vector.load %arg10[%c2_124, %c0_125, %c0_126] : memref<18x18x4xf32, #tpu.memory_space<vmem>>, vector<16x16x4xf32>
    %c0_127 = arith.constant 0 : index
    %c0_128 = arith.constant 0 : index
    %c24_129 = arith.constant 24 : index
    %58 = vector.load %arg11[%c0_127, %c0_128, %c24_129] : memref<16x16x36xf32, #tpu.memory_space<vmem>>, vector<16x16x4xf32>
    tpu.vector_store %arg11[%c0_127, %c0_128, %c24_129], %57 {strides = array<i32>} : memref<16x16x36xf32, #tpu.memory_space<vmem>>, vector<16x16x4xf32>,
    %c2_130 = arith.constant 2 : index
    %c1_131 = arith.constant 1 : index
    %c0_132 = arith.constant 0 : index
    %59 = vector.load %arg10[%c2_130, %c1_131, %c0_132] : memref<18x18x4xf32, #tpu.memory_space<vmem>>, vector<16x16x4xf32>
    %c0_133 = arith.constant 0 : index
    %c0_134 = arith.constant 0 : index
    %c28_135 = arith.constant 28 : index
    %60 = vector.load %arg11[%c0_133, %c0_134, %c28_135] : memref<16x16x36xf32, #tpu.memory_space<vmem>>, vector<16x16x4xf32>
    tpu.vector_store %arg11[%c0_133, %c0_134, %c28_135], %59 {strides = array<i32>} : memref<16x16x36xf32, #tpu.memory_space<vmem>>, vector<16x16x4xf32>,
    %c2_136 = arith.constant 2 : index
    %c2_137 = arith.constant 2 : index
    %c0_138 = arith.constant 0 : index
    %61 = vector.load %arg10[%c2_136, %c2_137, %c0_138] : memref<18x18x4xf32, #tpu.memory_space<vmem>>, vector<16x16x4xf32>
    %c0_139 = arith.constant 0 : index
    %c0_140 = arith.constant 0 : index
    %c32_141 = arith.constant 32 : index
    %62 = vector.load %arg11[%c0_139, %c0_140, %c32_141] : memref<16x16x36xf32, #tpu.memory_space<vmem>>, vector<16x16x4xf32>
    tpu.vector_store %arg11[%c0_139, %c0_140, %c32_141], %61 {strides = array<i32>} : memref<16x16x36xf32, #tpu.memory_space<vmem>>, vector<16x16x4xf32>,
    %c0_142 = arith.constant 0 : index
    %c0_143 = arith.constant 0 : index
    %c0_144 = arith.constant 0 : index
    %63 = vector.load %arg11[%c0_142, %c0_143, %c0_144] : memref<16x16x36xf32, #tpu.memory_space<vmem>>, vector<16x16x36xf32>
    %64 = vector.shape_cast %63 : vector<16x16x36xf32> to vector<256x36xf32>
    %c0_145 = arith.constant 0 : index
    %c0_146 = arith.constant 0 : index
    %65 = vector.load %arg3[%c0_145, %c0_146] : memref<36x4xf32, #tpu.memory_space<vmem>>, vector<36x4xf32>
    %cst_147 = arith.constant dense<0.000000e+00> : vector<256x4xf32>
    %66 = tpu.matmul %64, %65, %cst_147 {dimension_numbers = #tpu.dot_dimension_numbers<[1], [0], [0], [1], [0, 0, 1, 1], [], []>} : vector<256x36xf32>, vector<36x4xf32>, vector<256x4xf32> -> vector<256x4xf32>
    %c0_148 = arith.constant 0 : index
    %c0_149 = arith.constant 0 : index
    %67 = vector.load %arg6[%c0_148, %c0_149] : memref<1x4xf32, #tpu.memory_space<vmem>>, vector<1x4xf32>
    %68 = vector.broadcast %67 : vector<1x4xf32> to vector<256x4xf32>
    %69 = arith.mulf %66, %68 : vector<256x4xf32>
    %c0_150 = arith.constant 0 : index
    %c0_151 = arith.constant 0 : index
    %70 = vector.load %arg7[%c0_150, %c0_151] : memref<1x4xf32, #tpu.memory_space<vmem>>, vector<1x4xf32>
    %71 = vector.broadcast %70 : vector<1x4xf32> to vector<256x4xf32>
    %72 = arith.addf %69, %71 : vector<256x4xf32>
    %73 = vector.shape_cast %72 : vector<256x4xf32> to vector<16x16x4xf32>
    %74 = arith.addf %73, %11 : vector<16x16x4xf32>
    %cst_152 = arith.constant 0.000000e+00 : f32
    %75 = vector.broadcast %cst_152 : f32 to vector<16x16x4xf32>
    %76 = arith.maximumf %74, %75 : vector<16x16x4xf32>
    %c0_153 = arith.constant 0 : index
    %c0_154 = arith.constant 0 : index
    %c0_155 = arith.constant 0 : index
    %c0_156 = arith.constant 0 : index
    %77 = vector.load %arg8[%c0_153, %c0_154, %c0_155, %c0_156] : memref<1x16x16x4xf32, #tpu.memory_space<vmem>>, vector<1x16x16x4xf32>
    %78 = vector.shape_cast %77 : vector<1x16x16x4xf32> to vector<16x16x4xf32>
    %79 = vector.shape_cast %76 : vector<16x16x4xf32> to vector<1x16x16x4xf32>
    tpu.vector_store %arg8[%c0_153, %c0_154, %c0_155, %c0_156], %79 {strides = array<i32>} : memref<1x16x16x4xf32, #tpu.memory_space<vmem>>, vector<1x16x16x4xf32>,
    return
  }
  func.func @transform_0(%arg0: i32) -> (i32, i32, i32, i32) {
    %c0_i32 = arith.constant 0 : i32
    %c0_i32_0 = arith.constant 0 : i32
    %c0_i32_1 = arith.constant 0 : i32
    %c0_i32_2 = arith.constant 0 : i32
    return %arg0, %c0_i32, %c0_i32_0, %c0_i32_1 : i32, i32, i32, i32
  }
  func.func @transform_1(%arg0: i32) -> (i32, i32) {
    %c0_i32 = arith.constant 0 : i32
    %c0_i32_0 = arith.constant 0 : i32
    %c0_i32_1 = arith.constant 0 : i32
    return %c0_i32, %c0_i32_0 : i32, i32
  }
  func.func @transform_2(%arg0: i32) -> (i32, i32) {
    %c0_i32 = arith.constant 0 : i32
    %c0_i32_0 = arith.constant 0 : i32
    %c0_i32_1 = arith.constant 0 : i32
    return %c0_i32, %c0_i32_0 : i32, i32
  }
  func.func @transform_3(%arg0: i32) -> (i32, i32) {
    %c0_i32 = arith.constant 0 : i32
    %c0_i32_0 = arith.constant 0 : i32
    %c0_i32_1 = arith.constant 0 : i32
    return %c0_i32, %c0_i32_0 : i32, i32
  }
  func.func @transform_4(%arg0: i32) -> (i32, i32) {
    %c0_i32 = arith.constant 0 : i32
    %c0_i32_0 = arith.constant 0 : i32
    %c0_i32_1 = arith.constant 0 : i32
    return %c0_i32, %c0_i32_0 : i32, i32
  }
  func.func @transform_5(%arg0: i32) -> (i32, i32) {
    %c0_i32 = arith.constant 0 : i32
    %c0_i32_0 = arith.constant 0 : i32
    %c0_i32_1 = arith.constant 0 : i32
    return %c0_i32, %c0_i32_0 : i32, i32
  }
  func.func @transform_6(%arg0: i32) -> (i32, i32) {
    %c0_i32 = arith.constant 0 : i32
    %c0_i32_0 = arith.constant 0 : i32
    %c0_i32_1 = arith.constant 0 : i32
    return %c0_i32, %c0_i32_0 : i32, i32
  }
  func.func @transform_7(%arg0: i32) -> (i32, i32, i32, i32) {
    %c0_i32 = arith.constant 0 : i32
    %c0_i32_0 = arith.constant 0 : i32
    %c0_i32_1 = arith.constant 0 : i32
    %c0_i32_2 = arith.constant 0 : i32
    return %arg0, %c0_i32, %c0_i32_0, %c0_i32_1 : i32, i32, i32, i32
  }
}

</mosaic_0001>

<bundles_post_ra>
// kernel: tpu_custom_call.1
= control target key start
LH: loop header
LB: loop body
LE: loop exit
PB: predicated region body
PF: predicated region fallthrough
CT: control target
= control target key end

     0   :  { %s4670_s24 = smov 0   ;;  %s7240_s0 = inlined_call_operand.vmem [shape: f32[2,16,16,4], index: 0, kind: input, shape index: {}]   ;;  %s7241_s1 = inlined_call_operand.vmem [shape: f32[36,4], index: 1, kind: input, shape index: {}]   ;;  %s7242_s2 = inlined_call_operand.vmem [shape: f32[36,4], index: 2, kind: input, shape index: {}]   ;;  %s7243_s3 = inlined_call_operand.vmem [shape: f32[1,4], index: 3, kind: input, shape index: {}]   ;;  %s7244_s4 = inlined_call_operand.vmem [shape: f32[1,4], index: 4, kind: input, shape index: {}]   ;;  %s7245_s5 = inlined_call_operand.vmem [shape: f32[1,4], index: 5, kind: input, shape index: {}]   ;;  %s7246_s6 = inlined_call_operand.vmem [shape: f32[1,4], index: 6, kind: input, shape index: {}]   ;;  %s7247_s7 = inlined_call_operand.vmem [shape: f32[2,16,16,4], index: 7, kind: output, shape index: {}]  }
   0x1 LB: > { %s4503_s25 = sadd.s32 4294967295, %s4619_s24   ;;  %p4507_p0 = scmp.ge.s32.totalorder %s4619_s24, 1  ;;  %s4619_s24 = sphi %s4670_s24, %s17_s24  }
   0x2   : > { %p237_p1 = scmp.lt.s32.totalorder %s4619_s24, 3 }
   0x4   : > { %p238_p2 = pnand %p4507_p0, %p237_p1 }
   0x6   : > { %241 = sbr.rel (%p238_p2) target bundleno = 1962 (0x7aa), region = 48 }
   0xb   : > { %vm279_vm0 = vcmask 31744   ;;  %v4621_v0 = vmov 0.0   ;;  %vm288_vm1 = vcmask 24576   ;;  %s4622_s26 = smov 4   ;;  %p269_p3 = scmp.lt.s32.totalorder %s4503_s25, 1  ;;  %vm282_vm2 = vcmask 25600  }
   0xc   : > { %280 = vst.msk [vmem:[#allocation2] sm:$0xff] %vm279_vm0, %v4621_v0  ;;  %vm657_vm3 = vcmask 64544   ;;  %s4623_s8 = smov 8   ;;  %s4624_s9 = smov 12   ;;  %vm850_vm4 = vcmask 97344   ;;  %vm1043_vm5 = vcmask 130144  }
   0xd   : > { %281 = vst.msk [vmem:[#allocation2 + $0x8] sm:$0xff] %vm279_vm0, %v4621_v0  ;;  %s7526_s25 = smov (!%p269_p3, %s4503_s25), 1  ;;  %s4625_s10 = smov 16   ;;  %vm1236_vm6 = vcmask 162944   ;;  %vm1429_vm7 = vcmask 195744   ;;  %vm1623_vm8 = vcmask 228544  }
   0xe   : > { %289 = vst.msk [vmem:[#allocation2] sm:$0x1] %vm288_vm1, %v4621_v0  ;;  %s4580_s27 = sshll.u32 %s7526_s25, 8  ;;  %s4626_s11 = smov 20   ;;  %vm1816_vm9 = vcmask 261344   ;;  %vm2176_vm10 = vcmask 1043456  }
   0xf   : > { %285 = vst.msk [vmem:[#allocation2 + $0x198] sm:$0xff] %vm279_vm0, %v4621_v0  ;;  %s4841_s30 = scalar_lea.vmem %s7240_s0, %s4580_s27  ;;  %s4627_s12 = smov 24   ;;  %vm2009_vm11 = vcmask 294144   ;;  %vm2079_vm12 = vcmask 293888  }
  0x10   : > { %286 = vst.msk [vmem:[#allocation2 + $0x1a0] sm:$0xff] %vm279_vm0, %v4621_v0  ;;  %v4848_v2 = vld [vmem:[%s4841_s30] sm:$0xff]  ;;  %v4865_v5 = vld [vmem:[%s4841_s30 + $0x8] sm:$0xff]  ;;  %v4870_v6 = vld [vmem:[%s4841_s30 + $0x38] sm:$0xff]  ;;  %s4628_s13 = smov 28   ;;  %s4629_s14 = smov 32  }
  0x11   : > { %290 = vst.msk [vmem:[#allocation2 + $0x18] sm:$0x1] %vm288_vm1, %v4621_v0  ;;  %v4860_v4 = vld [vmem:[%s4841_s30 + $0x20] sm:$0xff]  ;;  %v4875_v7 = vld [vmem:[%s4841_s30 + $0x10] sm:$0xff]  ;;  %v4880_v8 = vld [vmem:[%s4841_s30 + $0x28] sm:$0xff]  ;;  %s7016_s16 = scalar_lea.vmem %s7247_s7, %s4580_s27 }
  0x12   : > { %291 = vst.msk [vmem:[#allocation2 + $0x30] sm:$0x1] %vm288_vm1, %v4621_v0  ;;  %v4885_v9 = vld [vmem:[%s4841_s30 + $0x50] sm:$0xff]  ;;  %v4892_v11 = vld [vmem:[%s4841_s30 + $0x18] sm:$0xff]  ;;  %v4899_v12 = vld [vmem:[%s4841_s30 + $0x40] sm:$0xff] }
  0x13   : > { %292 = vst.msk [vmem:[#allocation2 + $0x48] sm:$0x1] %vm288_vm1, %v4621_v0  ;;  %v4904_v13 = vld [vmem:[%s4841_s30 + $0x68] sm:$0xff]  ;;  %v4909_v14 = vld [vmem:[%s4841_s30 + $0x30] sm:$0xff]  ;;  %v4916_v16 = vld [vmem:[%s4841_s30 + $0x58] sm:$0xff] }
  0x14   : > { %v497_v1 = vld [vmem:[#allocation2 + $0x1] sm:$0xff]  ;;  %293 = vst.msk [vmem:[#allocation2 + $0x60] sm:$0x1] %vm288_vm1, %v4621_v0  ;;  %v4937_v21 = vld [vmem:[%s4841_s30 + $0x70] sm:$0xff]  ;;  %v4944_v22 = vld [vmem:[%s4841_s30 + $0x98] sm:$0xff] }
  0x15   : > { %561 = vrot.lane.b32.xlu0 %v497_v1, %s4622_s26  ;;  %294 = vst.msk [vmem:[#allocation2 + $0x78] sm:$0x1] %vm288_vm1, %v4621_v0  ;;  %v4923_v17 = vld [vmem:[%s4841_s30 + $0x80] sm:$0xff]  ;;  %v4930_v19 = vld [vmem:[%s4841_s30 + $0x48] sm:$0xff]  ;;  %v4975_v28 = vld [vmem:[%s4841_s30 + $0xb0] sm:$0xff] }
  0x16   : > { %295 = vst.msk [vmem:[#allocation2 + $0x90] sm:$0x1] %vm288_vm1, %v4621_v0  ;;  %v4951_v23 = vld [vmem:[%s4841_s30 + $0x60] sm:$0xff]  ;;  %v4958_v25 = vld [vmem:[%s4841_s30 + $0x88] sm:$0xff]  ;;  %v4978_v29 = vld [vmem:[%s4841_s30 + $0x78] sm:$0xff] }
  0x17   : > { %296 = vst.msk [vmem:[#allocation2 + $0xa8] sm:$0x1] %vm288_vm1, %v4621_v0  ;;  %v4985_v30 = vld [vmem:[%s4841_s30 + $0xa0] sm:$0xff]  ;;  %v5002_v34 = vld [vmem:[%s4841_s30 + $0xc8] sm:$0xff]  ;;  %v5005_v35 = vld [vmem:[%s4841_s30 + $0x90] sm:$0xff] }
  0x18   : > { %297 = vst.msk [vmem:[#allocation2 + $0xc0] sm:$0x1] %vm288_vm1, %v4621_v0  ;;  %v5012_v36 = vld [vmem:[%s4841_s30 + $0xb8] sm:$0xff]  ;;  %v5029_v40 = vld [vmem:[%s4841_s30 + $0xe0] sm:$0xff]  ;;  %v5032_v41 = vld [vmem:[%s4841_s30 + $0xa8] sm:$0xff] }
  0x19   : > { %298 = vst.msk [vmem:[#allocation2 + $0xd8] sm:$0x1] %vm288_vm1, %v4621_v0  ;;  %v5039_v42 = vld [vmem:[%s4841_s30 + $0xd0] sm:$0xff]  ;;  %v5056_v46 = vld [vmem:[%s4841_s30 + $0xc0] sm:$0xff]  ;;  %v5059_v47 = vld [vmem:[%s4841_s30 + $0xe8] sm:$0xff] }
  0x1a   : > { %299 = vst.msk [vmem:[#allocation2 + $0xf0] sm:$0x1] %vm288_vm1, %v4621_v0  ;;  %v5078_v51 = vld [vmem:[%s4841_s30 + $0xd8] sm:$0xff]  ;;  %v433_v62 = vld [vmem:[#allocation2] sm:$0xff] }
  0x1b   : > { %300 = vst.msk [vmem:[#allocation2 + $0x108] sm:$0x1] %vm288_vm1, %v4621_v0 }
  0x1c   : > { %301 = vst.msk [vmem:[#allocation2 + $0x120] sm:$0x1] %vm288_vm1, %v4621_v0 }
  0x1d   : > { %302 = vst.msk [vmem:[#allocation2 + $0x138] sm:$0x1] %vm288_vm1, %v4621_v0 }
  0x1e   : > { %303 = vst.msk [vmem:[#allocation2 + $0x150] sm:$0x1] %vm288_vm1, %v4621_v0 }
  0x1f   : > { %304 = vst.msk [vmem:[#allocation2 + $0x168] sm:$0x1] %vm288_vm1, %v4621_v0 }
  0x20   : > { %305 = vst.msk [vmem:[#allocation2 + $0x180] sm:$0x1] %vm288_vm1, %v4621_v0 }
  0x21   : > { %308 = vst.msk [vmem:[#allocation2 + $0x29] sm:$0x1] %vm288_vm1, %v4621_v0 }
  0x22   : > { %309 = vst.msk [vmem:[#allocation2 + $0x41] sm:$0x1] %vm288_vm1, %v4621_v0 }
  0x23   : > { %310 = vst.msk [vmem:[#allocation2 + $0x59] sm:$0x1] %vm288_vm1, %v4621_v0 }
  0x24   : > { %311 = vst.msk [vmem:[#allocation2 + $0x71] sm:$0x1] %vm288_vm1, %v4621_v0 }
  0x25   : > { %312 = vst.msk [vmem:[#allocation2 + $0x89] sm:$0x1] %vm288_vm1, %v4621_v0 }
  0x26   : > { %313 = vst.msk [vmem:[#allocation2 + $0xa1] sm:$0x1] %vm288_vm1, %v4621_v0 }
  0x27   : > { %314 = vst.msk [vmem:[#allocation2 + $0xb9] sm:$0x1] %vm288_vm1, %v4621_v0 }
  0x28   : > { %315 = vst.msk [vmem:[#allocation2 + $0xd1] sm:$0x1] %vm288_vm1, %v4621_v0 }
  0x29   : > { %316 = vst.msk [vmem:[#allocation2 + $0xe9] sm:$0x1] %vm288_vm1, %v4621_v0 }
  0x2a   : > { %317 = vst.msk [vmem:[#allocation2 + $0x101] sm:$0x1] %vm288_vm1, %v4621_v0 }
  0x2b   : > { %318 = vst.msk [vmem:[#allocation2 + $0x119] sm:$0x1] %vm288_vm1, %v4621_v0 }
  0x2c   : > { %319 = vst.msk [vmem:[#allocation2 + $0x131] sm:$0x1] %vm288_vm1, %v4621_v0 }
  0x2d   : > { %320 = vst.msk [vmem:[#allocation2 + $0x149] sm:$0x1] %vm288_vm1, %v4621_v0 }
  0x2e   : > { %321 = vst.msk [vmem:[#allocation2 + $0x161] sm:$0x1] %vm288_vm1, %v4621_v0 }
  0x2f   : > { %322 = vst.msk [vmem:[#allocation2 + $0x179] sm:$0x1] %vm288_vm1, %v4621_v0 }
  0x30   : > { %323 = vst.msk [vmem:[#allocation2 + $0x191] sm:$0x1] %vm288_vm1, %v4621_v0 }
  0x31   : > { %325 = vst.msk [vmem:[#allocation3] sm:$0xff] %vm279_vm0, %v4621_v0 }
  0x32   : > { %326 = vst.msk [vmem:[#allocation3 + $0x8] sm:$0xff] %vm279_vm0, %v4621_v0 }
  0x33   : > { %329 = vst.msk [vmem:[#allocation3 + $0x198] sm:$0xff] %vm279_vm0, %v4621_v0 }
  0x34   : > { %330 = vst.msk [vmem:[#allocation3 + $0x1a0] sm:$0xff] %vm279_vm0, %v4621_v0 }
  0x35   : > { %333 = vst.msk [vmem:[#allocation3 + $0x18] sm:$0x1] %vm288_vm1, %v4621_v0 }
  0x36   : > { %334 = vst.msk [vmem:[#allocation3 + $0x30] sm:$0x1] %vm288_vm1, %v4621_v0 }
  0x37   : > { %335 = vst.msk [vmem:[#allocation3 + $0x48] sm:$0x1] %vm288_vm1, %v4621_v0 }
  0x38   : > { %336 = vst.msk [vmem:[#allocation3 + $0x60] sm:$0x1] %vm288_vm1, %v4621_v0 }
  0x39   : > { %337 = vst.msk [vmem:[#allocation3 + $0x78] sm:$0x1] %vm288_vm1, %v4621_v0 }
  0x3a   : > { %338 = vst.msk [vmem:[#allocation3 + $0x90] sm:$0x1] %vm288_vm1, %v4621_v0 }
  0x3b   : > { %339 = vst.msk [vmem:[#allocation3 + $0xa8] sm:$0x1] %vm288_vm1, %v4621_v0 }
  0x3c   : > { %340 = vst.msk [vmem:[#allocation3 + $0xc0] sm:$0x1] %vm288_vm1, %v4621_v0 }
  0x3d   : > { %341 = vst.msk [vmem:[#allocation3 + $0xd8] sm:$0x1] %vm288_vm1, %v4621_v0 }
  0x3e   : > { %342 = vst.msk [vmem:[#allocation3 + $0xf0] sm:$0x1] %vm288_vm1, %v4621_v0 }
  0x3f   : > { %343 = vst.msk [vmem:[#allocation3 + $0x108] sm:$0x1] %vm288_vm1, %v4621_v0 }
  0x40   : > { %344 = vst.msk [vmem:[#allocation3 + $0x120] sm:$0x1] %vm288_vm1, %v4621_v0 }
  0x41   : > { %345 = vst.msk [vmem:[#allocation3 + $0x138] sm:$0x1] %vm288_vm1, %v4621_v0 }
  0x42   : > { %346 = vst.msk [vmem:[#allocation3 + $0x150] sm:$0x1] %vm288_vm1, %v4621_v0 }
  0x43   : > { %347 = vst.msk [vmem:[#allocation3 + $0x168] sm:$0x1] %vm288_vm1, %v4621_v0 }
  0x44   : > { %348 = vst.msk [vmem:[#allocation3 + $0x180] sm:$0x1] %vm288_vm1, %v4621_v0 }
  0x45   : > { %351 = vst.msk [vmem:[#allocation3 + $0x29] sm:$0x1] %vm288_vm1, %v4621_v0 }
  0x46   : > { %352 = vst.msk [vmem:[#allocation3 + $0x41] sm:$0x1] %vm288_vm1, %v4621_v0 }
  0x47   : > { %353 = vst.msk [vmem:[#allocation3 + $0x59] sm:$0x1] %vm288_vm1, %v4621_v0 }
  0x48   : > { %354 = vst.msk [vmem:[#allocation3 + $0x71] sm:$0x1] %vm288_vm1, %v4621_v0 }
  0x49   : > { %355 = vst.msk [vmem:[#allocation3 + $0x89] sm:$0x1] %vm288_vm1, %v4621_v0 }
  0x4a   : > { %356 = vst.msk [vmem:[#allocation3 + $0xa1] sm:$0x1] %vm288_vm1, %v4621_v0 }
  0x4b   : > { %357 = vst.msk [vmem:[#allocation3 + $0xb9] sm:$0x1] %vm288_vm1, %v4621_v0 }
  0x4c   : > { %358 = vst.msk [vmem:[#allocation3 + $0xd1] sm:$0x1] %vm288_vm1, %v4621_v0 }
  0x4d   : > { %359 = vst.msk [vmem:[#allocation3 + $0xe9] sm:$0x1] %vm288_vm1, %v4621_v0 }
  0x4e   : > { %360 = vst.msk [vmem:[#allocation3 + $0x101] sm:$0x1] %vm288_vm1, %v4621_v0 }
  0x4f   : > { %361 = vst.msk [vmem:[#allocation3 + $0x119] sm:$0x1] %vm288_vm1, %v4621_v0 }
  0x50   : > { %362 = vst.msk [vmem:[#allocation3 + $0x131] sm:$0x1] %vm288_vm1, %v4621_v0 }
  0x51   : > { %363 = vst.msk [vmem:[#allocation3 + $0x149] sm:$0x1] %vm288_vm1, %v4621_v0 }
  0x52   : > { %364 = vst.msk [vmem:[#allocation3 + $0x161] sm:$0x1] %vm288_vm1, %v4621_v0 }
  0x53   : > { %365 = vst.msk [vmem:[#allocation3 + $0x179] sm:$0x1] %vm288_vm1, %v4621_v0 }
  0x54   : > { %366 = vst.msk [vmem:[#allocation3 + $0x191] sm:$0x1] %vm288_vm1, %v4621_v0 }
  0x55   : > { %283 = vst.msk [vmem:[#allocation2 + $0x10] sm:$0x3] %vm282_vm2, %v4621_v0 }
  0x56   : > { %287 = vst.msk [vmem:[#allocation2 + $0x1a8] sm:$0x3] %vm282_vm2, %v4621_v0 }
  0x57   : > { %306 = vst.msk [vmem:[#allocation2 + $0x198] sm:$0x1] %vm288_vm1, %v4621_v0 }
  0x58   : > { %307 = vst.msk [vmem:[#allocation2 + $0x11] sm:$0x1] %vm288_vm1, %v4621_v0 }
  0x59   : > { %327 = vst.msk [vmem:[#allocation3 + $0x10] sm:$0x3] %vm282_vm2, %v4621_v0 }
  0x5a   : > { %331 = vst.msk [vmem:[#allocation3 + $0x1a8] sm:$0x3] %vm282_vm2, %v4621_v0 }
  0x5b   : > { %7343 = vst [vmem:[#allocation5_spill] sm:$0xff] %v4848_v2 }
  0x5c   : > { %332 = vst.msk [vmem:[#allocation3] sm:$0x1] %vm288_vm1, %v4621_v0  ;;  %v498_v3 = vld [vmem:[#allocation2 + $0x9] sm:$0xff] }
  0x5d   : > { %349 = vst.msk [vmem:[#allocation3 + $0x198] sm:$0x1] %vm288_vm1, %v4621_v0  ;;  %563 = vrot.lane.b32.xlu0 %v498_v3, %s4622_s26 }
  0x5e   : > { %401 = vst.msk [vmem:[#allocation2 + $0x19] sm:$0xff] %vm279_vm0, %v4848_v2 }
  0x5f   : > { %324 = vst.msk [vmem:[#allocation2 + $0x1a9] sm:$0x1] %vm288_vm1, %v4621_v0 }
  0x60   : > { %7344 = vst [vmem:[#allocation6_spill] sm:$0xff] %v4860_v4 }
  0x61   : > { %350 = vst.msk [vmem:[#allocation3 + $0x11] sm:$0x1] %vm288_vm1, %v4621_v0 }
  0x62   : > { %7345 = vst [vmem:[#allocation7_spill] sm:$0xff] %v4865_v5 }
  0x63   : > { %367 = vst.msk [vmem:[#allocation3 + $0x1a9] sm:$0x1] %vm288_vm1, %v4621_v0  ;;  %v691_v0 = vld [vmem:[#allocation2 + $0xa] sm:$0xff] }
  0x64   : > { %7346 = vst [vmem:[#allocation8_spill] sm:$0xff] %v4870_v6 }
  0x65   : > { %405 = vst.msk [vmem:[#allocation2 + $0x49] sm:$0xff] %vm279_vm0, %v4860_v4  ;;  %v4887_v10 = vld [vmem:[#allocation2 + $0x19] sm:$0xff] }
  0x66   : > { %7347 = vst [vmem:[#allocation9_spill] sm:$0xff] %v4875_v7  ;;  %565 = vrot.lane.b32.xlu1 %v4887_v10, %s4622_s26 }
  0x67   : > { %402 = vst.msk [vmem:[#allocation2 + $0x21] sm:$0xff] %vm279_vm0, %v4865_v5 }
  0x68   : > { %7348 = vst [vmem:[#allocation10_spill] sm:$0xff] %v4880_v8 }
  0x69   : > { %408 = vst.msk [vmem:[#allocation2 + $0x69] sm:$0xff] %vm279_vm0, %v4870_v6 }
  0x6a   : > { %7349 = vst [vmem:[#allocation11_spill] sm:$0xff] %v4885_v9 }
  0x6b   : > { %403 = vst.msk [vmem:[#allocation2 + $0x31] sm:$0xff] %vm279_vm0, %v4875_v7 }
  0x6c   : > { %7350 = vst [vmem:[#allocation12_spill] sm:$0xff] %v4892_v11  ;;  %v4911_v15 = vld [vmem:[#allocation2 + $0x49] sm:$0xff] }
  0x6d   : > { %406 = vst.msk [vmem:[#allocation2 + $0x51] sm:$0xff] %vm279_vm0, %v4880_v8  ;;  %573 = vrot.lane.b32.xlu0 %v4911_v15, %s4622_s26 }
  0x6e   : > { %7351 = vst [vmem:[#allocation13_spill] sm:$0xff] %v4899_v12  ;;  %v4925_v18 = vld [vmem:[#allocation2 + $0x21] sm:$0xff] }
  0x6f   : > { %411 = vst.msk [vmem:[#allocation2 + $0x91] sm:$0xff] %vm279_vm0, %v4885_v9  ;;  %567 = vrot.lane.b32.xlu1 %v4925_v18, %s4622_s26 }
  0x70   : > { %7352 = vst [vmem:[#allocation14_spill] sm:$0xff] %v4904_v13  ;;  %v4953_v24 = vld [vmem:[#allocation2 + $0x69] sm:$0xff] }
  0x71   : > { %404 = vst.msk [vmem:[#allocation2 + $0x39] sm:$0xff] %vm279_vm0, %v4892_v11  ;;  %v5216_v8 = vld [vmem:[#allocation2 + $0x6a] sm:$0xff] }
  0x72   : > { %7353 = vst [vmem:[#allocation15_spill] sm:$0xff] %v4909_v14  ;;  %v4932_v20 = vld [vmem:[#allocation2 + $0x31] sm:$0xff] }
  0x73   : > { %409 = vst.msk [vmem:[#allocation2 + $0x79] sm:$0xff] %vm279_vm0, %v4899_v12  ;;  %569 = vrot.lane.b32.xlu2 %v4932_v20, %s4622_s26  ;;  %v5120_v63 = vld [vmem:[#allocation2 + $0x30] sm:$0xff] }
  0x74   : > { %7354 = vst [vmem:[#allocation16_spill] sm:$0xff] %v4916_v16  ;;  %v4970_v27 = vld [vmem:[#allocation2 + $0x51] sm:$0xff] }
  0x75   : > { %414 = vst.msk [vmem:[#allocation2 + $0xb1] sm:$0xff] %vm279_vm0, %v4904_v13  ;;  %579 = vrot.lane.b32.xlu0 %v4953_v24, %s4622_s26  ;;  %v5148_v13 = vld [vmem:[#allocation2 + $0x1a] sm:$0xff]  ;;  %v5192_v12 = vld [vmem:[#allocation2 + $0x4a] sm:$0xff] }
  0x76   : > { %7355 = vst [vmem:[#allocation17_spill] sm:$0xff] %v4923_v17  ;;  %v4987_v31 = vld [vmem:[#allocation2 + $0x91] sm:$0xff] }
  0x77   : > { %407 = vst.msk [vmem:[#allocation2 + $0x61] sm:$0xff] %vm279_vm0, %v4909_v14  ;;  %575 = vrot.lane.b32.xlu1 %v4970_v27, %s4622_s26 }
  0x78   : > { %7356 = vst [vmem:[#allocation18_spill] sm:$0xff] %v4930_v19  ;;  %v4966_v26 = vld [vmem:[#allocation2 + $0x39] sm:$0xff] }
  0x79   : > { %412 = vst.msk [vmem:[#allocation2 + $0x99] sm:$0xff] %vm279_vm0, %v4916_v16  ;;  %v5171_v16 = vld [vmem:[#allocation2 + $0x3a] sm:$0xff] }
  0x7a   : > { %7357 = vst [vmem:[#allocation19_spill] sm:$0xff] %v4937_v21  ;;  %v4997_v33 = vld [vmem:[#allocation2 + $0x79] sm:$0xff] }
  0x7b   : > { %417 = vst.msk [vmem:[#allocation2 + $0xd9] sm:$0xff] %vm279_vm0, %v4923_v17  ;;  %571 = vrot.lane.b32.xlu2 %v4966_v26, %s4622_s26 }
  0x7c   : > { %7358 = vst [vmem:[#allocation20_spill] sm:$0xff] %v4944_v22  ;;  %v5014_v37 = vld [vmem:[#allocation2 + $0xb1] sm:$0xff] }
  0x7d   : > { %410 = vst.msk [vmem:[#allocation2 + $0x81] sm:$0xff] %vm279_vm0, %v4930_v19  ;;  %585 = vrot.lane.b32.xlu0 %v4987_v31, %s4622_s26 }
  0x7e   : > { %7359 = vst [vmem:[#allocation21_spill] sm:$0xff] %v4951_v23  ;;  %v4995_v32 = vld [vmem:[#allocation2 + $0x61] sm:$0xff] }
  0x7f   : > { %415 = vst.msk [vmem:[#allocation2 + $0xc1] sm:$0xff] %vm279_vm0, %v4937_v21  ;;  %581 = vrot.lane.b32.xlu1 %v4997_v33, %s4622_s26  ;;  %v5140_v21 = vld [vmem:[#allocation2 + $0x18] sm:$0xff] }
  0x80   : > { %7360 = vst [vmem:[#allocation22_spill] sm:$0xff] %v4958_v25  ;;  %v5024_v39 = vld [vmem:[#allocation2 + $0x99] sm:$0xff] }
  0x81   : > { %420 = vst.msk [vmem:[#allocation2 + $0xf9] sm:$0xff] %vm279_vm0, %v4944_v22  ;;  %v5242_v7 = vld [vmem:[#allocation2 + $0x92] sm:$0xff] }
  0x82   : > { %413 = vst.msk [vmem:[#allocation2 + $0xa9] sm:$0xff] %vm279_vm0, %v4951_v23  ;;  %v5041_v43 = vld [vmem:[#allocation2 + $0xd9] sm:$0xff] }
  0x83   : > { %418 = vst.msk [vmem:[#allocation2 + $0xe1] sm:$0xff] %vm279_vm0, %v4958_v25  ;;  %577 = vrot.lane.b32.xlu2 %v4995_v32, %s4622_s26  ;;  %v5157_v23 = vld [vmem:[#allocation2 + $0x52] sm:$0xff] }
  0x84   : > { %7361 = vst [vmem:[#allocation23_spill] sm:$0xff] %v4975_v28  ;;  %v5022_v38 = vld [vmem:[#allocation2 + $0x81] sm:$0xff] }
  0x85   : > { %7362 = vst [vmem:[#allocation24_spill] sm:$0xff] %v4978_v29  ;;  %591 = vrot.lane.b32.xlu0 %v5014_v37, %s4622_s26  ;;  %v5179_v9 = vld [vmem:[#allocation2 + $0x80] sm:$0xff] }
  0x86   : > { %423 = vst.msk [vmem:[#allocation2 + $0x121] sm:$0xff] %vm279_vm0, %v4975_v28  ;;  %v5051_v45 = vld [vmem:[#allocation2 + $0xc1] sm:$0xff] }
  0x87   : > { %7363 = vst [vmem:[#allocation25_spill] sm:$0xff] %v4985_v30  ;;  %587 = vrot.lane.b32.xlu1 %v5024_v39, %s4622_s26  ;;  %v562_v61 = vpop.permute.xlu0 %561 }
  0x88   : > { %416 = vst.msk [vmem:[#allocation2 + $0xc9] sm:$0xff] %vm279_vm0, %v4978_v29  ;;  %v5065_v48 = vld [vmem:[#allocation2 + $0xf9] sm:$0xff]  ;;  %v434_v29 = vld [vmem:[#allocation2 + $0x8] sm:$0xff] }
  0x89   : > { %421 = vst.msk [vmem:[#allocation2 + $0x109] sm:$0xff] %vm279_vm0, %v4985_v30  ;;  %v5049_v44 = vld [vmem:[#allocation2 + $0xa9] sm:$0xff] }
  0x8a   : > { %7364 = vst [vmem:[#allocation26_spill] sm:$0xff] %v5002_v34  ;;  %v5073_v50 = vld [vmem:[#allocation2 + $0xe1] sm:$0xff]  ;;  %v5246_v25 = vld [vmem:[#allocation2 + $0xaa] sm:$0xff] }
  0x8b   : > { %7365 = vst [vmem:[#allocation27_spill] sm:$0xff] %v5005_v35  ;;  %583 = vrot.lane.b32.xlu2 %v5022_v38, %s4622_s26  ;;  %v5208_v28 = vld [vmem:[#allocation2 + $0xa8] sm:$0xff] }
  0x8c   : > { %426 = vst.msk [vmem:[#allocation2 + $0x141] sm:$0xff] %vm279_vm0, %v5002_v34  ;;  %v5185_v34 = vld [vmem:[#allocation2 + $0x50] sm:$0xff]  ;;  %v5220_v30 = vld [vmem:[#allocation2 + $0x82] sm:$0xff] }
  0x8d   : > { %7366 = vst [vmem:[#allocation28_spill] sm:$0xff] %v5012_v36  ;;  %597 = vrot.lane.b32.xlu0 %v5041_v43, %s4622_s26  ;;  %v5084_v52 = vld [vmem:[#allocation2 + $0x121] sm:$0xff] }
  0x8e   : > { %419 = vst.msk [vmem:[#allocation2 + $0xf1] sm:$0xff] %vm279_vm0, %v5005_v35  ;;  %v5237_v35 = vld [vmem:[#allocation2 + $0x98] sm:$0xff] }
  0x8f   : > { %424 = vst.msk [vmem:[#allocation2 + $0x129] sm:$0xff] %vm279_vm0, %v5012_v36  ;;  %593 = vrot.lane.b32.xlu1 %v5051_v45, %s4622_s26  ;;  %v5071_v49 = vld [vmem:[#allocation2 + $0xc9] sm:$0xff]  ;;  %v5204_v36 = vld [vmem:[#allocation2 + $0x9a] sm:$0xff] }
  0x90   : > { %7367 = vst [vmem:[#allocation29_spill] sm:$0xff] %v5029_v40  ;;  %v5090_v54 = vld [vmem:[#allocation2 + $0x109] sm:$0xff] }
  0x91   : > { %7368 = vst [vmem:[#allocation30_spill] sm:$0xff] %v5032_v41  ;;  %v5234_v22 = vld [vmem:[#allocation2 + $0xc8] sm:$0xff] }
  0x92   : > { %429 = vst.msk [vmem:[#allocation2 + $0x169] sm:$0xff] %vm279_vm0, %v5029_v40  ;;  %v5161_v40 = vld [vmem:[#allocation2 + $0x20] sm:$0xff] }
  0x93   : > { %7369 = vst [vmem:[#allocation31_spill] sm:$0xff] %v5039_v42  ;;  %589 = vrot.lane.b32.xlu2 %v5049_v44, %s4622_s26  ;;  %v5096_v55 = vld [vmem:[#allocation2 + $0x141] sm:$0xff] }
  0x94   : > { %422 = vst.msk [vmem:[#allocation2 + $0x111] sm:$0xff] %vm279_vm0, %v5032_v41  ;;  %v5211_v41 = vld [vmem:[#allocation2 + $0x78] sm:$0xff] }
  0x95   : > { %427 = vst.msk [vmem:[#allocation2 + $0x151] sm:$0xff] %vm279_vm0, %v5039_v42  ;;  %603 = vrot.lane.b32.xlu0 %v5065_v48, %s4622_s26  ;;  %v5088_v53 = vld [vmem:[#allocation2 + $0xf1] sm:$0xff]  ;;  %v5181_v42 = vld [vmem:[#allocation2 + $0x7a] sm:$0xff] }
  0x96   : > { %7370 = vst [vmem:[#allocation32_spill] sm:$0xff] %v5056_v46  ;;  %v5102_v57 = vld [vmem:[#allocation2 + $0x129] sm:$0xff] }
  0x97   : > { %7371 = vst [vmem:[#allocation33_spill] sm:$0xff] %v5059_v47  ;;  %599 = vrot.lane.b32.xlu1 %v5073_v50, %s4622_s26  ;;  %v5261_v2 = vld [vmem:[#allocation2 + $0xf0] sm:$0xff] }
  0x98   : > { %425 = vst.msk [vmem:[#allocation2 + $0x139] sm:$0xff] %vm279_vm0, %v5056_v46  ;;  %v5196_v46 = vld [vmem:[#allocation2 + $0x62] sm:$0xff] }
  0x99   : > { %430 = vst.msk [vmem:[#allocation2 + $0x171] sm:$0xff] %vm279_vm0, %v5059_v47  ;;  %v5108_v58 = vld [vmem:[#allocation2 + $0x169] sm:$0xff]  ;;  %v5155_v47 = vld [vmem:[#allocation2 + $0x60] sm:$0xff] }
  0x9a   : > { %7372 = vst [vmem:[#allocation34_spill] sm:$0xff] %v5078_v51 }
  0x9b   : > { %595 = vrot.lane.b32.xlu2 %v5071_v49, %s4622_s26  ;;  %428 = vst.msk [vmem:[#allocation2 + $0x159] sm:$0xff] %vm279_vm0, %v5078_v51  ;;  %v5100_v56 = vld [vmem:[#allocation2 + $0x111] sm:$0xff]  ;;  %v5177_v51 = vld [vmem:[#allocation2 + $0x68] sm:$0xff] }
  0x9c   : > { %7373 = vst [vmem:[#allocation35_spill] sm:$0xff] %v5108_v58  ;;  %v5114_v60 = vld [vmem:[#allocation2 + $0x151] sm:$0xff] }
  0x9d   : > { %609 = vrot.lane.b32.xlu0 %v5084_v52, %s4622_s26  ;;  %465 = vst.msk [vmem:[#allocation4] sm:$0xff] %vm279_vm0, %v433_v62  ;;  %v5135_v62 = vld [vmem:[#allocation2 + $0x38] sm:$0xff] }
  0x9e   : > { %658 = vst.msk [vmem:[#allocation4] sm:$0xff] %vm657_vm3, %v562_v61  ;;  %v5137_v61 = vld [vmem:[#allocation2 + $0x32] sm:$0xff] }
  0x9f   : > { %605 = vrot.lane.b32.xlu1 %v5090_v54, %s4622_s26  ;;  %v5112_v59 = vld [vmem:[#allocation2 + $0x139] sm:$0xff]  ;;  %469 = vst.msk [vmem:[#allocation4 + $0x20] sm:$0xff] %vm279_vm0, %v5120_v63 }
  0xa0   : > { %v5129_v3 = vld [vmem:[#allocation2 + $0x171] sm:$0xff]  ;;  %7375 = vst [vmem:[#allocation37_spill] sm:$0xff] %v5137_v61 }
  0xa1   : > { %7374 = vst [vmem:[#allocation36_spill] sm:$0xff] %v5129_v3 }
  0xa2   : > { %v5127_v1 = vld [vmem:[#allocation2 + $0x159] sm:$0xff]  ;;  %466 = vst.msk [vmem:[#allocation4 + $0x8] sm:$0xff] %vm279_vm0, %v434_v29  ;;  %v5153_v29 = vld [vmem:[#allocation2 + $0x48] sm:$0xff] }
  0xa3   : > { %601 = vrot.lane.b32.xlu2 %v5088_v53, %s4622_s26  ;;  %470 = vst.msk [vmem:[#allocation4 + $0x28] sm:$0xff] %vm279_vm0, %v5135_v62 }
  0xa4   : > { %467 = vst.msk [vmem:[#allocation4 + $0x10] sm:$0xff] %vm279_vm0, %v5140_v21 }
  0xa5   : > { %615 = vrot.lane.b32.xlu0 %v5096_v55, %s4622_s26  ;;  %7376 = vst [vmem:[#allocation38_spill] sm:$0xff] %v5148_v13 }
  0xa6   : > { %7377 = vst [vmem:[#allocation39_spill] sm:$0xff] %v5157_v23 }
  0xa7   : > { %611 = vrot.lane.b32.xlu1 %v5102_v57, %s4622_s26  ;;  %471 = vst.msk [vmem:[#allocation4 + $0x30] sm:$0xff] %vm279_vm0, %v5153_v29 }
  0xa8   : > { %473 = vst.msk [vmem:[#allocation4 + $0x40] sm:$0xff] %vm279_vm0, %v5155_v47 }
  0xa9   : > { %468 = vst.msk [vmem:[#allocation4 + $0x18] sm:$0xff] %vm279_vm0, %v5161_v40 }
  0xaa   : > { %7379 = vst [vmem:[#allocation41_spill] sm:$0xff] %v5171_v16 }
  0xab   : > { %607 = vrot.lane.b32.xlu2 %v5100_v56, %s4622_s26  ;;  %7380 = vst [vmem:[#allocation42_spill] sm:$0xff] %v5181_v42 }
  0xac   : > { %474 = vst.msk [vmem:[#allocation4 + $0x48] sm:$0xff] %vm279_vm0, %v5177_v51 }
  0xad   : > { %621 = vrot.lane.b32.xlu0 %v5108_v58, %s4622_s26  ;;  %476 = vst.msk [vmem:[#allocation4 + $0x58] sm:$0xff] %vm279_vm0, %v5179_v9 }
  0xae   : > { %7381 = vst [vmem:[#allocation43_spill] sm:$0xff] %v5192_v12 }
  0xaf   : > { %617 = vrot.lane.b32.xlu1 %v5114_v60, %s4622_s26  ;;  %472 = vst.msk [vmem:[#allocation4 + $0x38] sm:$0xff] %vm279_vm0, %v5185_v34 }
  0xb0   : > { %7382 = vst [vmem:[#allocation44_spill] sm:$0xff] %v5196_v46 }
  0xb1   : > { %7383 = vst [vmem:[#allocation45_spill] sm:$0xff] %v5204_v36 }
  0xb2   : > { %7384 = vst [vmem:[#allocation46_spill] sm:$0xff] %v5216_v8 }
  0xb3   : > { %613 = vrot.lane.b32.xlu2 %v5112_v59, %s4622_s26  ;;  %479 = vst.msk [vmem:[#allocation4 + $0x70] sm:$0xff] %vm279_vm0, %v5208_v28 }
  0xb4   : > { %7385 = vst [vmem:[#allocation47_spill] sm:$0xff] %v5220_v30 }
  0xb5   : > { %756 = vrot.lane.b32.xlu0 %v691_v0, %s4623_s8  ;;  %v690_v0 = vld [vmem:[#allocation2 + $0x2] sm:$0xff]  ;;  %475 = vst.msk [vmem:[#allocation4 + $0x50] sm:$0xff] %vm279_vm0, %v5211_v41 }
  0xb6   : > { %7387 = vst [vmem:[#allocation49_spill] sm:$0xff] %v5242_v7 }
  0xb7   : > { %623 = vrot.lane.b32.xlu1 %v5129_v3, %s4622_s26  ;;  %482 = vst.msk [vmem:[#allocation4 + $0x88] sm:$0xff] %vm279_vm0, %v5234_v22  ;;  %v5369_v3 = vld [vmem:[#allocation2 + $0x150] sm:$0xff] }
  0xb8   : > { %7388 = vst [vmem:[#allocation50_spill] sm:$0xff] %v5246_v25 }
  0xb9   : > { %478 = vst.msk [vmem:[#allocation4 + $0x68] sm:$0xff] %vm279_vm0, %v5237_v35 }
  0xba   : > { %485 = vst.msk [vmem:[#allocation4 + $0xa0] sm:$0xff] %vm279_vm0, %v5261_v2 }
  0xbb   : > { %619 = vrot.lane.b32.xlu2 %v5127_v1, %s4622_s26  ;;  %493 = vst.msk [vmem:[#allocation4 + $0xe0] sm:$0xff] %vm279_vm0, %v5369_v3 }
  0xbd   : > { %762 = vrot.lane.b32.xlu0 %v5137_v61, %s4623_s8  ;;  %v5342_v61 = vld [vmem:[#allocation2 + $0x158] sm:$0xff] }
  0xbe   : > { %494 = vst.msk [vmem:[#allocation4 + $0xe8] sm:$0xff] %vm279_vm0, %v5342_v61 }
  0xbf   : > { %758 = vrot.lane.b32.xlu1 %v5148_v13, %s4623_s8 }
  0xc3   : > { %754 = vrot.lane.b32.xlu2 %v690_v0, %s4623_s8  ;;  %v5169_v0 = vld [vmem:[#allocation2 + $0x22] sm:$0xff] }
  0xc4   : > { %7378 = vst [vmem:[#allocation40_spill] sm:$0xff] %v5169_v0 }
  0xc5   : > { %768 = vrot.lane.b32.xlu0 %v5157_v23, %s4623_s8  ;;  %v5315_v23 = vld [vmem:[#allocation2 + $0x138] sm:$0xff] }
  0xc6   : > { %491 = vst.msk [vmem:[#allocation4 + $0xd0] sm:$0xff] %vm279_vm0, %v5315_v23 }
  0xc7   : > { %764 = vrot.lane.b32.xlu1 %v5171_v16, %s4623_s8 }
  0xcb   : > { %760 = vrot.lane.b32.xlu2 %v5169_v0, %s4623_s8 }
  0xcd   : > { %v570_v19 = vpop.permute.xlu2 %569  ;;  %774 = vrot.lane.b32.xlu0 %v5181_v42, %s4623_s8  ;;  %v5288_v42 = vld [vmem:[#allocation2 + $0x110] sm:$0xff] }
  0xce   : > { %662 = vst.msk [vmem:[#allocation4 + $0x20] sm:$0xff] %vm657_vm3, %v570_v19  ;;  %v5202_v19 = vld [vmem:[#allocation2 + $0x90] sm:$0xff] }
  0xcf   : > { %770 = vrot.lane.b32.xlu1 %v5196_v46, %s4623_s8  ;;  %477 = vst.msk [vmem:[#allocation4 + $0x60] sm:$0xff] %vm279_vm0, %v5202_v19  ;;  %v564_v14 = vpop.permute.xlu0 %563 }
  0xd0   : > { %659 = vst.msk [vmem:[#allocation4 + $0x8] sm:$0xff] %vm657_vm3, %v564_v14  ;;  %v5230_v14 = vld [vmem:[#allocation2 + $0xc2] sm:$0xff] }
  0xd1   : > { %7386 = vst [vmem:[#allocation48_spill] sm:$0xff] %v5230_v14 }
  0xd2   : > { %488 = vst.msk [vmem:[#allocation4 + $0xb8] sm:$0xff] %vm279_vm0, %v5288_v42 }
  0xd3   : > { %766 = vrot.lane.b32.xlu2 %v5192_v12, %s4623_s8 }
  0xd5   : > { %v572_v6 = vpop.permute.xlu2 %571  ;;  %780 = vrot.lane.b32.xlu0 %v5204_v36, %s4623_s8  ;;  %v5273_v36 = vld [vmem:[#allocation2 + $0xca] sm:$0xff] }
  0xd6   : > { %663 = vst.msk [vmem:[#allocation4 + $0x28] sm:$0xff] %vm657_vm3, %v572_v6  ;;  %v5228_v6 = vld [vmem:[#allocation2 + $0xb0] sm:$0xff] }
  0xd7   : > { %776 = vrot.lane.b32.xlu1 %v5220_v30, %s4623_s8  ;;  %480 = vst.msk [vmem:[#allocation4 + $0x78] sm:$0xff] %vm279_vm0, %v5228_v6 }
  0xd8   : > { %v566_v11 = vpop.permute.xlu1 %565  ;;  %7391 = vst [vmem:[#allocation53_spill] sm:$0xff] %v5273_v36 }
  0xd9   : > { %660 = vst.msk [vmem:[#allocation4 + $0x10] sm:$0xff] %vm657_vm3, %v566_v11  ;;  %v5257_v11 = vld [vmem:[#allocation2 + $0xe2] sm:$0xff] }
  0xda   : > { %7389 = vst [vmem:[#allocation51_spill] sm:$0xff] %v5257_v11 }
  0xdb   : > { %772 = vrot.lane.b32.xlu2 %v5216_v8, %s4623_s8 }
  0xdd   : > { %v578_v4 = vpop.permute.xlu2 %577  ;;  %786 = vrot.lane.b32.xlu0 %v5230_v14, %s4623_s8 }
  0xde   : > { %666 = vst.msk [vmem:[#allocation4 + $0x40] sm:$0xff] %vm657_vm3, %v578_v4  ;;  %v5255_v4 = vld [vmem:[#allocation2 + $0xd8] sm:$0xff] }
  0xdf   : > { %v574_v5 = vpop.permute.xlu0 %573  ;;  %782 = vrot.lane.b32.xlu1 %v5246_v25, %s4623_s8  ;;  %483 = vst.msk [vmem:[#allocation4 + $0x90] sm:$0xff] %vm279_vm0, %v5255_v4  ;;  %v5269_v25 = vld [vmem:[#allocation2 + $0xb2] sm:$0xff] }
  0xe0   : > { %664 = vst.msk [vmem:[#allocation4 + $0x30] sm:$0xff] %vm657_vm3, %v574_v5  ;;  %v5264_v5 = vld [vmem:[#allocation2 + $0xc0] sm:$0xff] }
  0xe1   : > { %v568_v14 = vpop.permute.xlu1 %567  ;;  %7390 = vst [vmem:[#allocation52_spill] sm:$0xff] %v5269_v25 }
  0xe2   : > { %661 = vst.msk [vmem:[#allocation4 + $0x18] sm:$0xff] %vm657_vm3, %v568_v14  ;;  %v5284_v14 = vld [vmem:[#allocation2 + $0x10a] sm:$0xff] }
  0xe3   : > { %778 = vrot.lane.b32.xlu2 %v5242_v7, %s4623_s8  ;;  %481 = vst.msk [vmem:[#allocation4 + $0x80] sm:$0xff] %vm279_vm0, %v5264_v5 }
  0xe4   : > { %7392 = vst [vmem:[#allocation54_spill] sm:$0xff] %v5284_v14 }
  0xe5   : > { %v584_v17 = vpop.permute.xlu2 %583  ;;  %792 = vrot.lane.b32.xlu0 %v5257_v11, %s4623_s8 }
  0xe6   : > { %669 = vst.msk [vmem:[#allocation4 + $0x58] sm:$0xff] %vm657_vm3, %v584_v17  ;;  %v5282_v17 = vld [vmem:[#allocation2 + $0xf8] sm:$0xff] }
  0xe7   : > { %v580_v30 = vpop.permute.xlu0 %579  ;;  %788 = vrot.lane.b32.xlu1 %v5273_v36, %s4623_s8  ;;  %486 = vst.msk [vmem:[#allocation4 + $0xa8] sm:$0xff] %vm279_vm0, %v5282_v17  ;;  %v5296_v36 = vld [vmem:[#allocation2 + $0xda] sm:$0xff] }
  0xe8   : > { %667 = vst.msk [vmem:[#allocation4 + $0x48] sm:$0xff] %vm657_vm3, %v580_v30  ;;  %v5291_v30 = vld [vmem:[#allocation2 + $0xe0] sm:$0xff] }
  0xe9   : > { %v576_v46 = vpop.permute.xlu1 %575  ;;  %7393 = vst [vmem:[#allocation55_spill] sm:$0xff] %v5296_v36 }
  0xea   : > { %665 = vst.msk [vmem:[#allocation4 + $0x38] sm:$0xff] %vm657_vm3, %v576_v46  ;;  %v5309_v46 = vld [vmem:[#allocation2 + $0x120] sm:$0xff] }
  0xeb   : > { %784 = vrot.lane.b32.xlu2 %v5269_v25, %s4623_s8  ;;  %v5300_v25 = vld [vmem:[#allocation2 + $0xf2] sm:$0xff]  ;;  %484 = vst.msk [vmem:[#allocation4 + $0x98] sm:$0xff] %vm279_vm0, %v5291_v30 }
  0xec   : > { %7394 = vst [vmem:[#allocation56_spill] sm:$0xff] %v5300_v25 }
  0xed   : > { %v590_v11 = vpop.permute.xlu2 %589  ;;  %798 = vrot.lane.b32.xlu0 %v5284_v14, %s4623_s8  ;;  %489 = vst.msk [vmem:[#allocation4 + $0xc0] sm:$0xff] %vm279_vm0, %v5309_v46 }
  0xee   : > { %672 = vst.msk [vmem:[#allocation4 + $0x70] sm:$0xff] %vm657_vm3, %v590_v11  ;;  %v5311_v11 = vld [vmem:[#allocation2 + $0x12a] sm:$0xff] }
  0xef   : > { %v586_v7 = vpop.permute.xlu0 %585  ;;  %794 = vrot.lane.b32.xlu1 %v5300_v25, %s4623_s8  ;;  %7395 = vst [vmem:[#allocation57_spill] sm:$0xff] %v5311_v11  ;;  %v5323_v25 = vld [vmem:[#allocation2 + $0xfa] sm:$0xff] }
  0xf0   : > { %670 = vst.msk [vmem:[#allocation4 + $0x60] sm:$0xff] %vm657_vm3, %v586_v7  ;;  %v5318_v7 = vld [vmem:[#allocation2 + $0x108] sm:$0xff] }
  0xf1   : > { %v582_v16 = vpop.permute.xlu1 %581  ;;  %7396 = vst [vmem:[#allocation58_spill] sm:$0xff] %v5323_v25 }
  0xf2   : > { %668 = vst.msk [vmem:[#allocation4 + $0x50] sm:$0xff] %vm657_vm3, %v582_v16  ;;  %v5336_v16 = vld [vmem:[#allocation2 + $0x140] sm:$0xff] }
  0xf3   : > { %790 = vrot.lane.b32.xlu2 %v5296_v36, %s4623_s8  ;;  %v5327_v36 = vld [vmem:[#allocation2 + $0x112] sm:$0xff]  ;;  %487 = vst.msk [vmem:[#allocation4 + $0xb0] sm:$0xff] %vm279_vm0, %v5318_v7 }
  0xf4   : > { %7397 = vst [vmem:[#allocation59_spill] sm:$0xff] %v5327_v36 }
  0xf5   : > { %v596_v14 = vpop.permute.xlu2 %595  ;;  %804 = vrot.lane.b32.xlu0 %v5311_v11, %s4623_s8  ;;  %492 = vst.msk [vmem:[#allocation4 + $0xd8] sm:$0xff] %vm279_vm0, %v5336_v16 }
  0xf6   : > { %675 = vst.msk [vmem:[#allocation4 + $0x88] sm:$0xff] %vm657_vm3, %v596_v14  ;;  %v5338_v14 = vld [vmem:[#allocation2 + $0x152] sm:$0xff] }
  0xf7   : > { %v592_v8 = vpop.permute.xlu0 %591  ;;  %800 = vrot.lane.b32.xlu1 %v5327_v36, %s4623_s8  ;;  %7398 = vst [vmem:[#allocation60_spill] sm:$0xff] %v5338_v14  ;;  %v5350_v36 = vld [vmem:[#allocation2 + $0x122] sm:$0xff] }
  0xf8   : > { %673 = vst.msk [vmem:[#allocation4 + $0x78] sm:$0xff] %vm657_vm3, %v592_v8  ;;  %v5345_v8 = vld [vmem:[#allocation2 + $0x128] sm:$0xff] }
  0xf9   : > { %v588_v13 = vpop.permute.xlu1 %587  ;;  %7399 = vst [vmem:[#allocation61_spill] sm:$0xff] %v5350_v36 }
  0xfa   : > { %671 = vst.msk [vmem:[#allocation4 + $0x68] sm:$0xff] %vm657_vm3, %v588_v13  ;;  %v5363_v13 = vld [vmem:[#allocation2 + $0x168] sm:$0xff] }
  0xfb   : > { %796 = vrot.lane.b32.xlu2 %v5323_v25, %s4623_s8  ;;  %v5354_v25 = vld [vmem:[#allocation2 + $0x13a] sm:$0xff]  ;;  %490 = vst.msk [vmem:[#allocation4 + $0xc8] sm:$0xff] %vm279_vm0, %v5345_v8 }
  0xfc   : > { %7400 = vst [vmem:[#allocation62_spill] sm:$0xff] %v5354_v25 }
  0xfd   : > { %v602_v11 = vpop.permute.xlu2 %601  ;;  %810 = vrot.lane.b32.xlu0 %v5338_v14, %s4623_s8  ;;  %495 = vst.msk [vmem:[#allocation4 + $0xf0] sm:$0xff] %vm279_vm0, %v5363_v13 }
  0xfe   : > { %678 = vst.msk [vmem:[#allocation4 + $0xa0] sm:$0xff] %vm657_vm3, %v602_v11  ;;  %v5365_v11 = vld [vmem:[#allocation2 + $0x172] sm:$0xff] }
  0xff   : > { %v598_v12 = vpop.permute.xlu0 %597  ;;  %806 = vrot.lane.b32.xlu1 %v5354_v25, %s4623_s8  ;;  %7401 = vst [vmem:[#allocation63_spill] sm:$0xff] %v5365_v11  ;;  %v5379_v25 = vld [vmem:[#allocation2 + $0x15a] sm:$0xff] }
 0x100   : > { %676 = vst.msk [vmem:[#allocation4 + $0x90] sm:$0xff] %vm657_vm3, %v598_v12  ;;  %v5375_v12 = vld [vmem:[#allocation2 + $0x142] sm:$0xff] }
 0x101   : > { %v594_v0 = vpop.permute.xlu1 %593  ;;  %7402 = vst [vmem:[#allocation64_spill] sm:$0xff] %v5375_v12 }
 0x102   : > { %674 = vst.msk [vmem:[#allocation4 + $0x80] sm:$0xff] %vm657_vm3, %v594_v0  ;;  %v5386_v0 = vld [vmem:[#allocation2 + $0x170] sm:$0xff] }
 0x103   : > { %802 = vrot.lane.b32.xlu2 %v5350_v36, %s4623_s8  ;;  %7403 = vst [vmem:[#allocation65_spill] sm:$0xff] %v5379_v25 }
 0x104   : > { %496 = vst.msk [vmem:[#allocation4 + $0xf8] sm:$0xff] %vm279_vm0, %v5386_v0 }
 0x105   : > { %v608_v14 = vpop.permute.xlu2 %607  ;;  %816 = vrot.lane.b32.xlu0 %v5365_v11, %s4623_s8 }
 0x106   : > { %681 = vst.msk [vmem:[#allocation4 + $0xb8] sm:$0xff] %vm657_vm3, %v608_v14 }
 0x107   : > { %v604_v36 = vpop.permute.xlu0 %603  ;;  %812 = vrot.lane.b32.xlu1 %v5379_v25, %s4623_s8 }
 0x108   : > { %679 = vst.msk [vmem:[#allocation4 + $0xa8] sm:$0xff] %vm657_vm3, %v604_v36  ;;  %v5394_v36 = vld [vmem:[#allocation2 + $0x16a] sm:$0xff] }
 0x109   : > { %v600_v11 = vpop.permute.xlu1 %599 }
 0x10a   : > { %677 = vst.msk [vmem:[#allocation4 + $0x98] sm:$0xff] %vm657_vm3, %v600_v11 }
 0x10b   : > { %808 = vrot.lane.b32.xlu2 %v5375_v12, %s4623_s8 }
 0x10d   : > { %v614_v14 = vpop.permute.xlu2 %613  ;;  %951 = vrot.lane.b32.xlu0 %v5120_v63, %s4624_s9 }
 0x10e   : > { %684 = vst.msk [vmem:[#allocation4 + $0xd0] sm:$0xff] %vm657_vm3, %v614_v14 }
 0x10f   : > { %v610_v12 = vpop.permute.xlu0 %609  ;;  %947 = vrot.lane.b32.xlu1 %v5140_v21, %s4624_s9 }
 0x110   : > { %682 = vst.msk [vmem:[#allocation4 + $0xc0] sm:$0xff] %vm657_vm3, %v610_v12 }
 0x111   : > { %v606_v58 = vpop.permute.xlu1 %605 }
 0x112   : > { %680 = vst.msk [vmem:[#allocation4 + $0xb0] sm:$0xff] %vm657_vm3, %v606_v58 }
 0x113   : > { %814 = vrot.lane.b32.xlu2 %v5394_v36, %s4623_s8 }
 0x115   : > { %v620_v25 = vpop.permute.xlu2 %619  ;;  %957 = vrot.lane.b32.xlu0 %v5185_v34, %s4624_s9 }
 0x116   : > { %687 = vst.msk [vmem:[#allocation4 + $0xe8] sm:$0xff] %vm657_vm3, %v620_v25 }
 0x117   : > { %v616_v63 = vpop.permute.xlu0 %615  ;;  %953 = vrot.lane.b32.xlu1 %v5135_v62, %s4624_s9 }
 0x118   : > { %685 = vst.msk [vmem:[#allocation4 + $0xd8] sm:$0xff] %vm657_vm3, %v616_v63 }
 0x119   : > { %v612_v11 = vpop.permute.xlu1 %611 }
 0x11a   : > { %683 = vst.msk [vmem:[#allocation4 + $0xc8] sm:$0xff] %vm657_vm3, %v612_v11 }
 0x11b   : > { %949 = vrot.lane.b32.xlu2 %v5161_v40, %s4624_s9 }
 0x11d   : > { %v755_v21 = vpop.permute.xlu2 %754  ;;  %963 = vrot.lane.b32.xlu0 %v5211_v41, %s4624_s9 }
 0x11e   : > { %851 = vst.msk [vmem:[#allocation4] sm:$0xff] %vm850_vm4, %v755_v21  ;;  %v5445_v21 = vld [vmem:[%s4841_s30 + $0xf0] sm:$0xff] }
 0x11f   : > { %v622_v25 = vpop.permute.xlu0 %621  ;;  %959 = vrot.lane.b32.xlu1 %v5155_v47, %s4624_s9  ;;  %7404 = vst [vmem:[#allocation66_spill] sm:$0xff] %v5445_v21 }
 0x120   : > { %688 = vst.msk [vmem:[#allocation4 + $0xf0] sm:$0xff] %vm657_vm3, %v622_v25 }
 0x121   : > { %v618_v58 = vpop.permute.xlu1 %617  ;;  %431 = vst.msk [vmem:[#allocation2 + $0x181] sm:$0xff] %vm279_vm0, %v5445_v21 }
 0x122   : > { %686 = vst.msk [vmem:[#allocation4 + $0xe0] sm:$0xff] %vm657_vm3, %v618_v58 }
 0x123   : > { %955 = vrot.lane.b32.xlu2 %v5153_v29, %s4624_s9 }
 0x125   : > { %v761_v40 = vpop.permute.xlu2 %760  ;;  %969 = vrot.lane.b32.xlu0 %v5237_v35, %s4624_s9 }
 0x126   : > { %854 = vst.msk [vmem:[#allocation4 + $0x18] sm:$0xff] %vm850_vm4, %v761_v40 }
 0x127   : > { %v757_v62 = vpop.permute.xlu0 %756  ;;  %965 = vrot.lane.b32.xlu1 %v5179_v9, %s4624_s9 }
 0x128   : > { %852 = vst.msk [vmem:[#allocation4 + $0x8] sm:$0xff] %vm850_vm4, %v757_v62  ;;  %v5468_v62 = vld [vmem:[%s4841_s30 + $0xf8] sm:$0xff] }
 0x129   : > { %v624_v47 = vpop.permute.xlu1 %623  ;;  %7405 = vst [vmem:[#allocation67_spill] sm:$0xff] %v5468_v62 }
 0x12a   : > { %689 = vst.msk [vmem:[#allocation4 + $0xf8] sm:$0xff] %vm657_vm3, %v624_v47 }
 0x12b   : > { %961 = vrot.lane.b32.xlu2 %v5177_v51, %s4624_s9  ;;  %432 = vst.msk [vmem:[#allocation2 + $0x189] sm:$0xff] %vm279_vm0, %v5468_v62 }
 0x12d   : > { %v767_v29 = vpop.permute.xlu2 %766  ;;  %975 = vrot.lane.b32.xlu0 %v5264_v5, %s4624_s9 }
 0x12e   : > { %857 = vst.msk [vmem:[#allocation4 + $0x30] sm:$0xff] %vm850_vm4, %v767_v29 }
 0x12f   : > { %v763_v12 = vpop.permute.xlu0 %762  ;;  %971 = vrot.lane.b32.xlu1 %v5208_v28, %s4624_s9 }
 0x130   : > { %855 = vst.msk [vmem:[#allocation4 + $0x20] sm:$0xff] %vm850_vm4, %v763_v12 }
 0x131   : > { %v759_v14 = vpop.permute.xlu1 %758 }
 0x132   : > { %853 = vst.msk [vmem:[#allocation4 + $0x10] sm:$0xff] %vm850_vm4, %v759_v14 }
 0x133   : > { %967 = vrot.lane.b32.xlu2 %v5202_v19, %s4624_s9 }
 0x135   : > { %v773_v9 = vpop.permute.xlu2 %772  ;;  %981 = vrot.lane.b32.xlu0 %v5291_v30, %s4624_s9 }
 0x136   : > { %860 = vst.msk [vmem:[#allocation4 + $0x48] sm:$0xff] %vm850_vm4, %v773_v9 }
 0x137   : > { %v769_v63 = vpop.permute.xlu0 %768  ;;  %977 = vrot.lane.b32.xlu1 %v5234_v22, %s4624_s9 }
 0x138   : > { %858 = vst.msk [vmem:[#allocation4 + $0x38] sm:$0xff] %vm850_vm4, %v769_v63  ;;  %v5496_v63 = vld [vmem:[#allocation2 + $0x180] sm:$0xff] }
 0x139   : > { %v765_v11 = vpop.permute.xlu1 %764 }
 0x13a   : > { %856 = vst.msk [vmem:[#allocation4 + $0x28] sm:$0xff] %vm850_vm4, %v765_v11 }
 0x13b   : > { %973 = vrot.lane.b32.xlu2 %v5228_v6, %s4624_s9 }
 0x13d   : > { %v779_v28 = vpop.permute.xlu2 %778  ;;  %987 = vrot.lane.b32.xlu0 %v5318_v7, %s4624_s9 }
 0x13e   : > { %863 = vst.msk [vmem:[#allocation4 + $0x60] sm:$0xff] %vm850_vm4, %v779_v28 }
 0x13f   : > { %v775_v25 = vpop.permute.xlu0 %774  ;;  %983 = vrot.lane.b32.xlu1 %v5261_v2, %s4624_s9 }
 0x140   : > { %861 = vst.msk [vmem:[#allocation4 + $0x50] sm:$0xff] %vm850_vm4, %v775_v25 }
 0x141   : > { %v771_v40 = vpop.permute.xlu1 %770 }
 0x142   : > { %859 = vst.msk [vmem:[#allocation4 + $0x40] sm:$0xff] %vm850_vm4, %v771_v40 }
 0x143   : > { %979 = vrot.lane.b32.xlu2 %v5255_v4, %s4624_s9 }
 0x145   : > { %v785_v22 = vpop.permute.xlu2 %784  ;;  %993 = vrot.lane.b32.xlu0 %v5345_v8, %s4624_s9 }
 0x146   : > { %866 = vst.msk [vmem:[#allocation4 + $0x78] sm:$0xff] %vm850_vm4, %v785_v22 }
 0x147   : > { %v781_v58 = vpop.permute.xlu0 %780  ;;  %989 = vrot.lane.b32.xlu1 %v5288_v42, %s4624_s9 }
 0x148   : > { %864 = vst.msk [vmem:[#allocation4 + $0x68] sm:$0xff] %vm850_vm4, %v781_v58 }
 0x149   : > { %v777_v29 = vpop.permute.xlu1 %776 }
 0x14a   : > { %862 = vst.msk [vmem:[#allocation4 + $0x58] sm:$0xff] %vm850_vm4, %v777_v29 }
 0x14b   : > { %985 = vrot.lane.b32.xlu2 %v5282_v17, %s4624_s9 }
 0x14d   : > { %v791_v2 = vpop.permute.xlu2 %790  ;;  %999 = vrot.lane.b32.xlu0 %v5369_v3, %s4624_s9 }
 0x14e   : > { %869 = vst.msk [vmem:[#allocation4 + $0x90] sm:$0xff] %vm850_vm4, %v791_v2 }
 0x14f   : > { %v787_v47 = vpop.permute.xlu0 %786  ;;  %995 = vrot.lane.b32.xlu1 %v5315_v23, %s4624_s9 }
 0x150   : > { %867 = vst.msk [vmem:[#allocation4 + $0x80] sm:$0xff] %vm850_vm4, %v787_v47 }
 0x151   : > { %v783_v12 = vpop.permute.xlu1 %782 }
 0x152   : > { %865 = vst.msk [vmem:[#allocation4 + $0x70] sm:$0xff] %vm850_vm4, %v783_v12  ;;  %v5601_v12 = vld [vmem:[#allocation2 + $0x189] sm:$0xff] }
 0x153   : > { %991 = vrot.lane.b32.xlu2 %v5309_v46, %s4624_s9 }
 0x155   : > { %v797_v42 = vpop.permute.xlu2 %796  ;;  %1005 = vrot.lane.b32.xlu0 %v5386_v0, %s4624_s9 }
 0x156   : > { %872 = vst.msk [vmem:[#allocation4 + $0xa8] sm:$0xff] %vm850_vm4, %v797_v42  ;;  %v7407_v42 = vld [vmem:[#allocation40_spill] sm:$0xff] }
 0x157   : > { %v793_v9 = vpop.permute.xlu0 %792  ;;  %1001 = vrot.lane.b32.xlu1 %v5342_v61, %s4624_s9 }
 0x158   : > { %870 = vst.msk [vmem:[#allocation4 + $0x98] sm:$0xff] %vm850_vm4, %v793_v9 }
 0x159   : > { %v789_v23 = vpop.permute.xlu1 %788 }
 0x15a   : > { %868 = vst.msk [vmem:[#allocation4 + $0x88] sm:$0xff] %vm850_vm4, %v789_v23 }
 0x15b   : > { %997 = vrot.lane.b32.xlu2 %v5336_v16, %s4624_s9 }
 0x15d   : > { %v803_v14 = vpop.permute.xlu2 %802  ;;  %1140 = vrot.lane.b32.xlu0 %v4887_v10, %s4625_s10  ;;  %v5507_v10 = vld [vmem:[#allocation2 + $0x188] sm:$0xff] }
 0x15e   : > { %875 = vst.msk [vmem:[#allocation4 + $0xc0] sm:$0xff] %vm850_vm4, %v803_v14 }
 0x15f   : > { %v799_v28 = vpop.permute.xlu0 %798  ;;  %1007 = vrot.lane.b32.xlu1 %v5496_v63, %s4624_s9 }
 0x160   : > { %873 = vst.msk [vmem:[#allocation4 + $0xb0] sm:$0xff] %vm850_vm4, %v799_v28  ;;  %v7409_v28 = vld [vmem:[#allocation43_spill] sm:$0xff] }
 0x161   : > { %v795_v25 = vpop.permute.xlu1 %794 }
 0x162   : > { %871 = vst.msk [vmem:[#allocation4 + $0xa0] sm:$0xff] %vm850_vm4, %v795_v25  ;;  %v7410_v25 = vld [vmem:[#allocation38_spill] sm:$0xff] }
 0x163   : > { %1003 = vrot.lane.b32.xlu2 %v5363_v13, %s4624_s9 }
 0x165   : > { %v809_v11 = vpop.permute.xlu2 %808  ;;  %1146 = vrot.lane.b32.xlu0 %v4966_v26, %s4625_s10 }
 0x166   : > { %878 = vst.msk [vmem:[#allocation4 + $0xd8] sm:$0xff] %vm850_vm4, %v809_v11 }
 0x167   : > { %v805_v22 = vpop.permute.xlu0 %804  ;;  %1142 = vrot.lane.b32.xlu1 %v4925_v18, %s4625_s10 }
 0x168   : > { %876 = vst.msk [vmem:[#allocation4 + $0xc8] sm:$0xff] %vm850_vm4, %v805_v22  ;;  %v7411_v22 = vld [vmem:[#allocation37_spill] sm:$0xff] }
 0x169   : > { %v801_v58 = vpop.permute.xlu1 %800 }
 0x16a   : > { %874 = vst.msk [vmem:[#allocation4 + $0xb8] sm:$0xff] %vm850_vm4, %v801_v58 }
 0x16b   : > { %1009 = vrot.lane.b32.xlu2 %v5507_v10, %s4624_s9 }
 0x16d   : > { %v815_v40 = vpop.permute.xlu2 %814  ;;  %1152 = vrot.lane.b32.xlu0 %v4995_v32, %s4625_s10 }
 0x16e   : > { %881 = vst.msk [vmem:[#allocation4 + $0xf0] sm:$0xff] %vm850_vm4, %v815_v40 }
 0x16f   : > { %v811_v26 = vpop.permute.xlu0 %810  ;;  %1148 = vrot.lane.b32.xlu1 %v4911_v15, %s4625_s10 }
 0x170   : > { %879 = vst.msk [vmem:[#allocation4 + $0xe0] sm:$0xff] %vm850_vm4, %v811_v26  ;;  %v7412_v26 = vld [vmem:[#allocation46_spill] sm:$0xff] }
 0x171   : > { %v807_v2 = vpop.permute.xlu1 %806 }
 0x172   : > { %877 = vst.msk [vmem:[#allocation4 + $0xd0] sm:$0xff] %vm850_vm4, %v807_v2  ;;  %v7413_v2 = vld [vmem:[#allocation41_spill] sm:$0xff] }
 0x173   : > { %1144 = vrot.lane.b32.xlu2 %v4932_v20, %s4625_s10 }
 0x175   : > { %v950_v18 = vpop.permute.xlu2 %949  ;;  %1158 = vrot.lane.b32.xlu0 %v5022_v38, %s4625_s10 }
 0x176   : > { %1045 = vst.msk [vmem:[#allocation4 + $0x8] sm:$0xff] %vm1043_vm5, %v950_v18 }
 0x177   : > { %v817_v32 = vpop.permute.xlu0 %816  ;;  %1154 = vrot.lane.b32.xlu1 %v4953_v24, %s4625_s10 }
 0x178   : > { %882 = vst.msk [vmem:[#allocation4 + $0xf8] sm:$0xff] %vm850_vm4, %v817_v32  ;;  %v7414_v32 = vld [vmem:[#allocation39_spill] sm:$0xff] }
 0x179   : > { %v813_v15 = vpop.permute.xlu1 %812 }
 0x17a   : > { %880 = vst.msk [vmem:[#allocation4 + $0xe8] sm:$0xff] %vm850_vm4, %v813_v15 }
 0x17b   : > { %1150 = vrot.lane.b32.xlu2 %v4970_v27, %s4625_s10 }
 0x17d   : > { %v956_v20 = vpop.permute.xlu2 %955  ;;  %1164 = vrot.lane.b32.xlu0 %v5049_v44, %s4625_s10 }
 0x17e   : > { %1048 = vst.msk [vmem:[#allocation4 + $0x20] sm:$0xff] %vm1043_vm5, %v956_v20 }
 0x17f   : > { %v952_v29 = vpop.permute.xlu0 %951  ;;  %1160 = vrot.lane.b32.xlu1 %v4987_v31, %s4625_s10 }
 0x180   : > { %1046 = vst.msk [vmem:[#allocation4 + $0x10] sm:$0xff] %vm1043_vm5, %v952_v29  ;;  %v7415_v29 = vld [vmem:[#allocation49_spill] sm:$0xff] }
 0x181   : > { %v948_v24 = vpop.permute.xlu1 %947 }
 0x182   : > { %1044 = vst.msk [vmem:[#allocation4] sm:$0xff] %vm1043_vm5, %v948_v24  ;;  %v7416_v24 = vld [vmem:[#allocation44_spill] sm:$0xff] }
 0x183   : > { %1156 = vrot.lane.b32.xlu2 %v4997_v33, %s4625_s10 }
 0x185   : > { %v962_v27 = vpop.permute.xlu2 %961  ;;  %1170 = vrot.lane.b32.xlu0 %v5071_v49, %s4625_s10 }
 0x186   : > { %1051 = vst.msk [vmem:[#allocation4 + $0x38] sm:$0xff] %vm1043_vm5, %v962_v27 }
 0x187   : > { %v958_v38 = vpop.permute.xlu0 %957  ;;  %1166 = vrot.lane.b32.xlu1 %v5014_v37, %s4625_s10 }
 0x188   : > { %1049 = vst.msk [vmem:[#allocation4 + $0x28] sm:$0xff] %vm1043_vm5, %v958_v38  ;;  %v7417_v38 = vld [vmem:[#allocation42_spill] sm:$0xff] }
 0x189   : > { %v954_v31 = vpop.permute.xlu1 %953 }
 0x18a   : > { %1047 = vst.msk [vmem:[#allocation4 + $0x18] sm:$0xff] %vm1043_vm5, %v954_v31 }
 0x18b   : > { %1162 = vrot.lane.b32.xlu2 %v5024_v39, %s4625_s10 }
 0x18d   : > { %v968_v33 = vpop.permute.xlu2 %967  ;;  %1176 = vrot.lane.b32.xlu0 %v5088_v53, %s4625_s10 }
 0x18e   : > { %1054 = vst.msk [vmem:[#allocation4 + $0x50] sm:$0xff] %vm1043_vm5, %v968_v33 }
 0x18f   : > { %v964_v44 = vpop.permute.xlu0 %963  ;;  %1172 = vrot.lane.b32.xlu1 %v5041_v43, %s4625_s10 }
 0x190   : > { %1052 = vst.msk [vmem:[#allocation4 + $0x40] sm:$0xff] %vm1043_vm5, %v964_v44  ;;  %v7418_v44 = vld [vmem:[#allocation52_spill] sm:$0xff] }
 0x191   : > { %v960_v37 = vpop.permute.xlu1 %959 }
 0x192   : > { %1050 = vst.msk [vmem:[#allocation4 + $0x30] sm:$0xff] %vm1043_vm5, %v960_v37  ;;  %v7419_v37 = vld [vmem:[#allocation47_spill] sm:$0xff] }
 0x193   : > { %1168 = vrot.lane.b32.xlu2 %v5051_v45, %s4625_s10 }
 0x195   : > { %v974_v39 = vpop.permute.xlu2 %973  ;;  %1182 = vrot.lane.b32.xlu0 %v5100_v56, %s4625_s10 }
 0x196   : > { %1057 = vst.msk [vmem:[#allocation4 + $0x68] sm:$0xff] %vm1043_vm5, %v974_v39 }
 0x197   : > { %v970_v49 = vpop.permute.xlu0 %969  ;;  %1178 = vrot.lane.b32.xlu1 %v5065_v48, %s4625_s10 }
 0x198   : > { %1055 = vst.msk [vmem:[#allocation4 + $0x58] sm:$0xff] %vm1043_vm5, %v970_v49  ;;  %v7420_v49 = vld [vmem:[#allocation45_spill] sm:$0xff] }
 0x199   : > { %v966_v43 = vpop.permute.xlu1 %965 }
 0x19a   : > { %1053 = vst.msk [vmem:[#allocation4 + $0x48] sm:$0xff] %vm1043_vm5, %v966_v43 }
 0x19b   : > { %1174 = vrot.lane.b32.xlu2 %v5073_v50, %s4625_s10 }
 0x19d   : > { %v980_v45 = vpop.permute.xlu2 %979  ;;  %1188 = vrot.lane.b32.xlu0 %v5112_v59, %s4625_s10 }
 0x19e   : > { %1060 = vst.msk [vmem:[#allocation4 + $0x80] sm:$0xff] %vm1043_vm5, %v980_v45 }
 0x19f   : > { %v976_v53 = vpop.permute.xlu0 %975  ;;  %1184 = vrot.lane.b32.xlu1 %v5084_v52, %s4625_s10 }
 0x1a0   : > { %1058 = vst.msk [vmem:[#allocation4 + $0x70] sm:$0xff] %vm1043_vm5, %v976_v53  ;;  %v7421_v53 = vld [vmem:[#allocation55_spill] sm:$0xff] }
 0x1a1   : > { %v972_v48 = vpop.permute.xlu1 %971 }
 0x1a2   : > { %1056 = vst.msk [vmem:[#allocation4 + $0x60] sm:$0xff] %vm1043_vm5, %v972_v48  ;;  %v7422_v48 = vld [vmem:[#allocation50_spill] sm:$0xff] }
 0x1a3   : > { %1180 = vrot.lane.b32.xlu2 %v5090_v54, %s4625_s10  ;;  %v5586_v54 = vld [vmem:[#allocation2 + $0x181] sm:$0xff] }
 0x1a5   : > { %v986_v50 = vpop.permute.xlu2 %985  ;;  %1194 = vrot.lane.b32.xlu0 %v5127_v1, %s4625_s10 }
 0x1a6   : > { %1063 = vst.msk [vmem:[#allocation4 + $0x98] sm:$0xff] %vm1043_vm5, %v986_v50 }
 0x1a7   : > { %v982_v56 = vpop.permute.xlu0 %981  ;;  %1190 = vrot.lane.b32.xlu1 %v5096_v55, %s4625_s10 }
 0x1a8   : > { %1061 = vst.msk [vmem:[#allocation4 + $0x88] sm:$0xff] %vm1043_vm5, %v982_v56  ;;  %v7423_v56 = vld [vmem:[#allocation48_spill] sm:$0xff] }
 0x1a9   : > { %v978_v59 = vpop.permute.xlu1 %977 }
 0x1aa   : > { %1059 = vst.msk [vmem:[#allocation4 + $0x78] sm:$0xff] %vm1043_vm5, %v978_v59 }
 0x1ab   : > { %1186 = vrot.lane.b32.xlu2 %v5102_v57, %s4625_s10  ;;  %v7406_v57 = vld [vmem:[#allocation35_spill] sm:$0xff] }
 0x1ad   : > { %v992_v52 = vpop.permute.xlu2 %991  ;;  %1200 = vrot.lane.b32.xlu0 %v5586_v54, %s4625_s10 }
 0x1ae   : > { %1066 = vst.msk [vmem:[#allocation4 + $0xb0] sm:$0xff] %vm1043_vm5, %v992_v52 }
 0x1af   : > { %v988_v1 = vpop.permute.xlu0 %987  ;;  %1196 = vrot.lane.b32.xlu1 %v7406_v57, %s4625_s10 }
 0x1b0   : > { %1064 = vst.msk [vmem:[#allocation4 + $0xa0] sm:$0xff] %vm1043_vm5, %v988_v1  ;;  %v7424_v1 = vld [vmem:[#allocation58_spill] sm:$0xff] }
 0x1b1   : > { %v984_v47 = vpop.permute.xlu1 %983 }
 0x1b2   : > { %1062 = vst.msk [vmem:[#allocation4 + $0x90] sm:$0xff] %vm1043_vm5, %v984_v47  ;;  %v7426_v47 = vld [vmem:[#allocation51_spill] sm:$0xff] }
 0x1b3   : > { %1192 = vrot.lane.b32.xlu2 %v5114_v60, %s4625_s10  ;;  %v7408_v60 = vld [vmem:[#allocation36_spill] sm:$0xff] }
 0x1b5   : > { %v998_v55 = vpop.permute.xlu2 %997  ;;  %1335 = vrot.lane.b32.xlu0 %v7407_v42, %s4626_s11 }
 0x1b6   : > { %1069 = vst.msk [vmem:[#allocation4 + $0xc8] sm:$0xff] %vm1043_vm5, %v998_v55  ;;  %v7425_v55 = vld [vmem:[#allocation53_spill] sm:$0xff] }
 0x1b7   : > { %v994_v9 = vpop.permute.xlu0 %993  ;;  %1202 = vrot.lane.b32.xlu1 %v5601_v12, %s4625_s10 }
 0x1b8   : > { %1067 = vst.msk [vmem:[#allocation4 + $0xb8] sm:$0xff] %vm1043_vm5, %v994_v9 }
 0x1b9   : > { %v990_v23 = vpop.permute.xlu1 %989 }
 0x1ba   : > { %1065 = vst.msk [vmem:[#allocation4 + $0xa8] sm:$0xff] %vm1043_vm5, %v990_v23  ;;  %v7428_v23 = vld [vmem:[#allocation56_spill] sm:$0xff] }
 0x1bb   : > { %1198 = vrot.lane.b32.xlu2 %v7408_v60, %s4625_s10  ;;  %v7427_v60 = vld [vmem:[#allocation61_spill] sm:$0xff] }
 0x1bd   : > { %v1004_v14 = vpop.permute.xlu2 %1003  ;;  %1341 = vrot.lane.b32.xlu0 %v7409_v28, %s4626_s11  ;;  %v7429_v28 = vld [vmem:[#allocation54_spill] sm:$0xff] }
 0x1be   : > { %1072 = vst.msk [vmem:[#allocation4 + $0xe0] sm:$0xff] %vm1043_vm5, %v1004_v14 }
 0x1bf   : > { %v1000_v11 = vpop.permute.xlu0 %999  ;;  %1337 = vrot.lane.b32.xlu1 %v7411_v22, %s4626_s11  ;;  %v7430_v22 = vld [vmem:[#allocation64_spill] sm:$0xff] }
 0x1c0   : > { %1070 = vst.msk [vmem:[#allocation4 + $0xd0] sm:$0xff] %vm1043_vm5, %v1000_v11 }
 0x1c1   : > { %v996_v58 = vpop.permute.xlu1 %995 }
 0x1c2   : > { %1068 = vst.msk [vmem:[#allocation4 + $0xc0] sm:$0xff] %vm1043_vm5, %v996_v58  ;;  %v7431_v58 = vld [vmem:[#allocation59_spill] sm:$0xff] }
 0x1c3   : > { %1333 = vrot.lane.b32.xlu2 %v7410_v25, %s4626_s11 }
 0x1c5   : > { %v1010_v40 = vpop.permute.xlu2 %1009  ;;  %1347 = vrot.lane.b32.xlu0 %v7412_v26, %s4626_s11  ;;  %v7432_v26 = vld [vmem:[#allocation57_spill] sm:$0xff] }
 0x1c6   : > { %1075 = vst.msk [vmem:[#allocation4 + $0xf8] sm:$0xff] %vm1043_vm5, %v1010_v40 }
 0x1c7   : > { %v1006_v18 = vpop.permute.xlu0 %1005  ;;  %1343 = vrot.lane.b32.xlu1 %v7414_v32, %s4626_s11 }
 0x1c8   : > { %1073 = vst.msk [vmem:[#allocation4 + $0xe8] sm:$0xff] %vm1043_vm5, %v1006_v18 }
 0x1c9   : > { %v1002_v15 = vpop.permute.xlu1 %1001 }
 0x1ca   : > { %1071 = vst.msk [vmem:[#allocation4 + $0xd8] sm:$0xff] %vm1043_vm5, %v1002_v15  ;;  %v7434_v15 = vld [vmem:[#allocation60_spill] sm:$0xff] }
 0x1cb   : > { %1339 = vrot.lane.b32.xlu2 %v7413_v2, %s4626_s11 }
 0x1cd   : > { %v1145_v20 = vpop.permute.xlu2 %1144  ;;  %1353 = vrot.lane.b32.xlu0 %v7415_v29, %s4626_s11  ;;  %v5689_v29 = vld [vmem:[#allocation2 + $0x18a] sm:$0xff] }
 0x1ce   : > { %1239 = vst.msk [vmem:[#allocation4 + $0x10] sm:$0xff] %vm1236_vm6, %v1145_v20  ;;  %v7433_v20 = vld [vmem:[#allocation62_spill] sm:$0xff] }
 0x1cf   : > { %v1141_v27 = vpop.permute.xlu0 %1140  ;;  %1349 = vrot.lane.b32.xlu1 %v7417_v38, %s4626_s11  ;;  %v7435_v38 = vld [vmem:[#allocation65_spill] sm:$0xff] }
 0x1d0   : > { %1237 = vst.msk [vmem:[#allocation4] sm:$0xff] %vm1236_vm6, %v1141_v27 }
 0x1d1   : > { %v1008_v31 = vpop.permute.xlu1 %1007 }
 0x1d2   : > { %1074 = vst.msk [vmem:[#allocation4 + $0xf0] sm:$0xff] %vm1043_vm5, %v1008_v31  ;;  %v1465_v31 = vld [vmem:[#allocation2 + $0x48] sm:$0xff] }
 0x1d3   : > { %1345 = vrot.lane.b32.xlu2 %v7416_v24, %s4626_s11 }
 0x1d5   : > { %v1151_v33 = vpop.permute.xlu2 %1150  ;;  %1359 = vrot.lane.b32.xlu0 %v7418_v44, %s4626_s11 }
 0x1d6   : > { %1242 = vst.msk [vmem:[#allocation4 + $0x28] sm:$0xff] %vm1236_vm6, %v1151_v33  ;;  %v7436_v33 = vld [vmem:[#allocation63_spill] sm:$0xff] }
 0x1d7   : > { %v1147_v39 = vpop.permute.xlu0 %1146  ;;  %1355 = vrot.lane.b32.xlu1 %v7420_v49, %s4626_s11  ;;  %v1463_v49 = vld [vmem:[#allocation2 + $0x30] sm:$0xff] }
 0x1d8   : > { %1240 = vst.msk [vmem:[#allocation4 + $0x18] sm:$0xff] %vm1236_vm6, %v1147_v39 }
 0x1d9   : > { %v1143_v43 = vpop.permute.xlu1 %1142 }
 0x1da   : > { %1238 = vst.msk [vmem:[#allocation4 + $0x8] sm:$0xff] %vm1236_vm6, %v1143_v43 }
 0x1db   : > { %1351 = vrot.lane.b32.xlu2 %v7419_v37, %s4626_s11  ;;  %v5703_v37 = vld [vmem:[#allocation2 + $0x182] sm:$0xff] }
 0x1dd   : > { %v1157_v45 = vpop.permute.xlu2 %1156  ;;  %1365 = vrot.lane.b32.xlu0 %v7421_v53, %s4626_s11 }
 0x1de   : > { %1245 = vst.msk [vmem:[#allocation4 + $0x40] sm:$0xff] %vm1236_vm6, %v1157_v45 }
 0x1df   : > { %v1153_v50 = vpop.permute.xlu0 %1152  ;;  %1361 = vrot.lane.b32.xlu1 %v7423_v56, %s4626_s11 }
 0x1e0   : > { %1243 = vst.msk [vmem:[#allocation4 + $0x30] sm:$0xff] %vm1236_vm6, %v1153_v50  ;;  %v1464_v50 = vld [vmem:[#allocation2 + $0x38] sm:$0xff] }
 0x1e1   : > { %v1149_v59 = vpop.permute.xlu1 %1148 }
 0x1e2   : > { %1241 = vst.msk [vmem:[#allocation4 + $0x20] sm:$0xff] %vm1236_vm6, %v1149_v59 }
 0x1e3   : > { %1357 = vrot.lane.b32.xlu2 %v7422_v48, %s4626_s11 }
 0x1e5   : > { %v1163_v52 = vpop.permute.xlu2 %1162  ;;  %1371 = vrot.lane.b32.xlu0 %v7424_v1, %s4626_s11 }
 0x1e6   : > { %1248 = vst.msk [vmem:[#allocation4 + $0x58] sm:$0xff] %vm1236_vm6, %v1163_v52 }
 0x1e7   : > { %v1159_v57 = vpop.permute.xlu0 %1158  ;;  %1367 = vrot.lane.b32.xlu1 %v7426_v47, %s4626_s11  ;;  %v1473_v47 = vld [vmem:[#allocation2 + $0xa8] sm:$0xff] }
 0x1e8   : > { %1246 = vst.msk [vmem:[#allocation4 + $0x48] sm:$0xff] %vm1236_vm6, %v1159_v57  ;;  %v1470_v57 = vld [vmem:[#allocation2 + $0x80] sm:$0xff] }
 0x1e9   : > { %v1155_v9 = vpop.permute.xlu1 %1154 }
 0x1ea   : > { %1244 = vst.msk [vmem:[#allocation4 + $0x38] sm:$0xff] %vm1236_vm6, %v1155_v9  ;;  %v1476_v9 = vld [vmem:[#allocation2 + $0xc8] sm:$0xff] }
 0x1eb   : > { %1363 = vrot.lane.b32.xlu2 %v7425_v55, %s4626_s11 }
 0x1ed   : > { %v1169_v42 = vpop.permute.xlu2 %1168  ;;  %1377 = vrot.lane.b32.xlu0 %v7427_v60, %s4626_s11 }
 0x1ee   : > { %1251 = vst.msk [vmem:[#allocation4 + $0x70] sm:$0xff] %vm1236_vm6, %v1169_v42 }
 0x1ef   : > { %v1165_v14 = vpop.permute.xlu0 %1164  ;;  %1373 = vrot.lane.b32.xlu1 %v7429_v28, %s4626_s11  ;;  %v1482_v28 = vld [vmem:[#allocation2 + $0x110] sm:$0xff] }
 0x1f0   : > { %1249 = vst.msk [vmem:[#allocation4 + $0x60] sm:$0xff] %vm1236_vm6, %v1165_v14  ;;  %v1479_v14 = vld [vmem:[#allocation2 + $0xf0] sm:$0xff] }
 0x1f1   : > { %v1161_v25 = vpop.permute.xlu1 %1160 }
 0x1f2   : > { %1247 = vst.msk [vmem:[#allocation4 + $0x50] sm:$0xff] %vm1236_vm6, %v1161_v25  ;;  %v1485_v25 = vld [vmem:[#allocation2 + $0x138] sm:$0xff] }
 0x1f3   : > { %1369 = vrot.lane.b32.xlu2 %v7428_v23, %s4626_s11 }
 0x1f5   : > { %v1175_v11 = vpop.permute.xlu2 %1174  ;;  %1383 = vrot.lane.b32.xlu0 %v7430_v22, %s4626_s11 }
 0x1f6   : > { %1254 = vst.msk [vmem:[#allocation4 + $0x88] sm:$0xff] %vm1236_vm6, %v1175_v11 }
 0x1f7   : > { %v1171_v40 = vpop.permute.xlu0 %1170  ;;  %1379 = vrot.lane.b32.xlu1 %v7432_v26, %s4626_s11 }
 0x1f8   : > { %1252 = vst.msk [vmem:[#allocation4 + $0x78] sm:$0xff] %vm1236_vm6, %v1171_v40 }
 0x1f9   : > { %v1167_v2 = vpop.permute.xlu1 %1166 }
 0x1fa   : > { %1250 = vst.msk [vmem:[#allocation4 + $0x68] sm:$0xff] %vm1236_vm6, %v1167_v2  ;;  %v1494_v2 = vld [vmem:[#allocation2 + $0x1a0] sm:$0xff] }
 0x1fb   : > { %1375 = vrot.lane.b32.xlu2 %v7431_v58, %s4626_s11 }
 0x1fd   : > { %v1181_v18 = vpop.permute.xlu2 %1180  ;;  %1389 = vrot.lane.b32.xlu0 %v5394_v36, %s4626_s11 }
 0x1fe   : > { %1257 = vst.msk [vmem:[#allocation4 + $0xa0] sm:$0xff] %vm1236_vm6, %v1181_v18 }
 0x1ff   : > { %v1177_v32 = vpop.permute.xlu0 %1176  ;;  %1385 = vrot.lane.b32.xlu1 %v7434_v15, %s4626_s11 }
 0x200   : > { %1255 = vst.msk [vmem:[#allocation4 + $0x90] sm:$0xff] %vm1236_vm6, %v1177_v32  ;;  %v1657_v32 = vld [vmem:[#allocation2 + $0x39] sm:$0xff] }
 0x201   : > { %v1173_v24 = vpop.permute.xlu1 %1172 }
 0x202   : > { %1253 = vst.msk [vmem:[#allocation4 + $0x80] sm:$0xff] %vm1236_vm6, %v1173_v24  ;;  %v1658_v24 = vld [vmem:[#allocation2 + $0x49] sm:$0xff] }
 0x203   : > { %1381 = vrot.lane.b32.xlu2 %v7433_v20, %s4626_s11 }
 0x205   : > { %v1187_v27 = vpop.permute.xlu2 %1186  ;;  %1395 = vrot.lane.b32.xlu0 %v5689_v29, %s4626_s11 }
 0x206   : > { %1260 = vst.msk [vmem:[#allocation4 + $0xb8] sm:$0xff] %vm1236_vm6, %v1187_v27 }
 0x207   : > { %v1183_v36 = vpop.permute.xlu0 %1182  ;;  %1391 = vrot.lane.b32.xlu1 %v7436_v33, %s4626_s11  ;;  %v1665_v33 = vld [vmem:[#allocation2 + $0x99] sm:$0xff] }
 0x208   : > { %1258 = vst.msk [vmem:[#allocation4 + $0xa8] sm:$0xff] %vm1236_vm6, %v1183_v36  ;;  %v1660_v36 = vld [vmem:[#allocation2 + $0x61] sm:$0xff] }
 0x209   : > { %v1179_v39 = vpop.permute.xlu1 %1178 }
 0x20a   : > { %1256 = vst.msk [vmem:[#allocation4 + $0x98] sm:$0xff] %vm1236_vm6, %v1179_v39  ;;  %v1661_v39 = vld [vmem:[#allocation2 + $0x69] sm:$0xff] }
 0x20b   : > { %1387 = vrot.lane.b32.xlu2 %v7435_v38, %s4626_s11 }
 0x20d   : > { %v1193_v44 = vpop.permute.xlu2 %1192  ;;  %1531 = vrot.lane.b32.xlu0 %v1465_v31, %s4627_s12 }
 0x20e   : > { %1263 = vst.msk [vmem:[#allocation4 + $0xd0] sm:$0xff] %vm1236_vm6, %v1193_v44 }
 0x20f   : > { %v1189_v45 = vpop.permute.xlu0 %1188  ;;  %1527 = vrot.lane.b32.xlu1 %v1463_v49, %s4627_s12  ;;  %v1663_v49 = vld [vmem:[#allocation2 + $0x81] sm:$0xff] }
 0x210   : > { %1261 = vst.msk [vmem:[#allocation4 + $0xc0] sm:$0xff] %vm1236_vm6, %v1189_v45 }
 0x211   : > { %v1185_v53 = vpop.permute.xlu1 %1184 }
 0x212   : > { %1259 = vst.msk [vmem:[#allocation4 + $0xb0] sm:$0xff] %vm1236_vm6, %v1185_v53 }
 0x213   : > { %1393 = vrot.lane.b32.xlu2 %v5703_v37, %s4626_s11 }
 0x215   : > { %v1199_v43 = vpop.permute.xlu2 %1198  ;;  %1537 = vrot.lane.b32.xlu0 %v5177_v51, %s4627_s12  ;;  %v1467_v51 = vld [vmem:[#allocation2 + $0x60] sm:$0xff] }
 0x216   : > { %1266 = vst.msk [vmem:[#allocation4 + $0xe8] sm:$0xff] %vm1236_vm6, %v1199_v43  ;;  %v1668_v43 = vld [vmem:[#allocation2 + $0xc1] sm:$0xff] }
 0x217   : > { %v1195_v48 = vpop.permute.xlu0 %1194  ;;  %1533 = vrot.lane.b32.xlu1 %v5185_v34, %s4627_s12 }
 0x218   : > { %1264 = vst.msk [vmem:[#allocation4 + $0xd8] sm:$0xff] %vm1236_vm6, %v1195_v48  ;;  %v1664_v48 = vld [vmem:[#allocation2 + $0x91] sm:$0xff] }
 0x219   : > { %v1191_v52 = vpop.permute.xlu1 %1190 }
 0x21a   : > { %1262 = vst.msk [vmem:[#allocation4 + $0xc8] sm:$0xff] %vm1236_vm6, %v1191_v52 }
 0x21b   : > { %1529 = vrot.lane.b32.xlu2 %v1464_v50, %s4627_s12 }
 0x21d   : > { %v1334_v56 = vpop.permute.xlu2 %1333  ;;  %1543 = vrot.lane.b32.xlu0 %v5202_v19, %s4627_s12 }
 0x21e   : > { %1430 = vst.msk [vmem:[#allocation4] sm:$0xff] %vm1429_vm7, %v1334_v56  ;;  %v1666_v56 = vld [vmem:[#allocation2 + $0xa9] sm:$0xff] }
 0x21f   : > { %v1201_v59 = vpop.permute.xlu0 %1200  ;;  %1539 = vrot.lane.b32.xlu1 %v5211_v41, %s4627_s12 }
 0x220   : > { %1267 = vst.msk [vmem:[#allocation4 + $0xf0] sm:$0xff] %vm1236_vm6, %v1201_v59 }
 0x221   : > { %v1197_v34 = vpop.permute.xlu1 %1196 }
 0x222   : > { %1265 = vst.msk [vmem:[#allocation4 + $0xe0] sm:$0xff] %vm1236_vm6, %v1197_v34  ;;  %v1667_v34 = vld [vmem:[#allocation2 + $0xb1] sm:$0xff] }
 0x223   : > { %1535 = vrot.lane.b32.xlu2 %v1467_v51, %s4627_s12  ;;  %v1671_v51 = vld [vmem:[#allocation2 + $0xe1] sm:$0xff] }
 0x225   : > { %v1340_v1 = vpop.permute.xlu2 %1339  ;;  %1549 = vrot.lane.b32.xlu0 %v5228_v6, %s4627_s12 }
 0x226   : > { %1433 = vst.msk [vmem:[#allocation4 + $0x18] sm:$0xff] %vm1429_vm7, %v1340_v1 }
 0x227   : > { %v1336_v19 = vpop.permute.xlu0 %1335  ;;  %1545 = vrot.lane.b32.xlu1 %v5237_v35, %s4627_s12 }
 0x228   : > { %1431 = vst.msk [vmem:[#allocation4 + $0x8] sm:$0xff] %vm1429_vm7, %v1336_v19 }
 0x229   : > { %v1203_v41 = vpop.permute.xlu1 %1202 }
 0x22a   : > { %1268 = vst.msk [vmem:[#allocation4 + $0xf8] sm:$0xff] %vm1236_vm6, %v1203_v41 }
 0x22b   : > { %1541 = vrot.lane.b32.xlu2 %v1470_v57, %s4627_s12  ;;  %v1669_v57 = vld [vmem:[#allocation2 + $0xc9] sm:$0xff] }
 0x22d   : > { %v1346_v55 = vpop.permute.xlu2 %1345  ;;  %1555 = vrot.lane.b32.xlu0 %v5255_v4, %s4627_s12 }
 0x22e   : > { %1436 = vst.msk [vmem:[#allocation4 + $0x30] sm:$0xff] %vm1429_vm7, %v1346_v55  ;;  %v1674_v55 = vld [vmem:[#allocation2 + $0x109] sm:$0xff] }
 0x22f   : > { %v1342_v6 = vpop.permute.xlu0 %1341  ;;  %1551 = vrot.lane.b32.xlu1 %v5264_v5, %s4627_s12 }
 0x230   : > { %1434 = vst.msk [vmem:[#allocation4 + $0x20] sm:$0xff] %vm1429_vm7, %v1342_v6  ;;  %v1670_v6 = vld [vmem:[#allocation2 + $0xd9] sm:$0xff] }
 0x231   : > { %v1338_v35 = vpop.permute.xlu1 %1337 }
 0x232   : > { %1432 = vst.msk [vmem:[#allocation4 + $0x10] sm:$0xff] %vm1429_vm7, %v1338_v35 }
 0x233   : > { %1547 = vrot.lane.b32.xlu2 %v1473_v47, %s4627_s12 }
 0x235   : > { %v1352_v42 = vpop.permute.xlu2 %1351  ;;  %1561 = vrot.lane.b32.xlu0 %v5282_v17, %s4627_s12 }
 0x236   : > { %1439 = vst.msk [vmem:[#allocation4 + $0x48] sm:$0xff] %vm1429_vm7, %v1352_v42  ;;  %v1672_v42 = vld [vmem:[#allocation2 + $0xf1] sm:$0xff] }
 0x237   : > { %v1348_v4 = vpop.permute.xlu0 %1347  ;;  %1557 = vrot.lane.b32.xlu1 %v5291_v30, %s4627_s12 }
 0x238   : > { %1437 = vst.msk [vmem:[#allocation4 + $0x38] sm:$0xff] %vm1429_vm7, %v1348_v4 }
 0x239   : > { %v1344_v5 = vpop.permute.xlu1 %1343 }
 0x23a   : > { %1435 = vst.msk [vmem:[#allocation4 + $0x28] sm:$0xff] %vm1429_vm7, %v1344_v5  ;;  %v1673_v5 = vld [vmem:[#allocation2 + $0xf9] sm:$0xff] }
 0x23b   : > { %1553 = vrot.lane.b32.xlu2 %v1476_v9, %s4627_s12  ;;  %v1677_v9 = vld [vmem:[#allocation2 + $0x129] sm:$0xff] }
 0x23d   : > { %v1358_v60 = vpop.permute.xlu2 %1357  ;;  %1567 = vrot.lane.b32.xlu0 %v5309_v46, %s4627_s12 }
 0x23e   : > { %1442 = vst.msk [vmem:[#allocation4 + $0x60] sm:$0xff] %vm1429_vm7, %v1358_v60 }
 0x23f   : > { %v1354_v17 = vpop.permute.xlu0 %1353  ;;  %1563 = vrot.lane.b32.xlu1 %v5318_v7, %s4627_s12 }
 0x240   : > { %1440 = vst.msk [vmem:[#allocation4 + $0x50] sm:$0xff] %vm1429_vm7, %v1354_v17 }
 0x241   : > { %v1350_v30 = vpop.permute.xlu1 %1349 }
 0x242   : > { %1438 = vst.msk [vmem:[#allocation4 + $0x40] sm:$0xff] %vm1429_vm7, %v1350_v30 }
 0x243   : > { %1559 = vrot.lane.b32.xlu2 %v1479_v14, %s4627_s12  ;;  %v1675_v14 = vld [vmem:[#allocation2 + $0x111] sm:$0xff] }
 0x245   : > { %v1364_v23 = vpop.permute.xlu2 %1363  ;;  %1573 = vrot.lane.b32.xlu0 %v5336_v16, %s4627_s12 }
 0x246   : > { %1445 = vst.msk [vmem:[#allocation4 + $0x78] sm:$0xff] %vm1429_vm7, %v1364_v23  ;;  %v1680_v23 = vld [vmem:[#allocation2 + $0x151] sm:$0xff] }
 0x247   : > { %v1360_v46 = vpop.permute.xlu0 %1359  ;;  %1569 = vrot.lane.b32.xlu1 %v5345_v8, %s4627_s12 }
 0x248   : > { %1443 = vst.msk [vmem:[#allocation4 + $0x68] sm:$0xff] %vm1429_vm7, %v1360_v46  ;;  %v1676_v46 = vld [vmem:[#allocation2 + $0x121] sm:$0xff] }
 0x249   : > { %v1356_v7 = vpop.permute.xlu1 %1355 }
 0x24a   : > { %1441 = vst.msk [vmem:[#allocation4 + $0x58] sm:$0xff] %vm1429_vm7, %v1356_v7 }
 0x24b   : > { %1565 = vrot.lane.b32.xlu2 %v1482_v28, %s4627_s12 }
 0x24d   : > { %v1370_v11 = vpop.permute.xlu2 %1369  ;;  %1579 = vrot.lane.b32.xlu0 %v5363_v13, %s4627_s12  ;;  %v1656_v13 = vld [vmem:[#allocation2 + $0x31] sm:$0xff] }
 0x24e   : > { %1448 = vst.msk [vmem:[#allocation4 + $0x90] sm:$0xff] %vm1429_vm7, %v1370_v11  ;;  %v1678_v11 = vld [vmem:[#allocation2 + $0x139] sm:$0xff] }
 0x24f   : > { %v1366_v16 = vpop.permute.xlu0 %1365  ;;  %1575 = vrot.lane.b32.xlu1 %v5369_v3, %s4627_s12 }
 0x250   : > { %1446 = vst.msk [vmem:[#allocation4 + $0x80] sm:$0xff] %vm1429_vm7, %v1366_v16 }
 0x251   : > { %v1362_v8 = vpop.permute.xlu1 %1361 }
 0x252   : > { %1444 = vst.msk [vmem:[#allocation4 + $0x70] sm:$0xff] %vm1429_vm7, %v1362_v8  ;;  %v1679_v8 = vld [vmem:[#allocation2 + $0x141] sm:$0xff] }
 0x253   : > { %1571 = vrot.lane.b32.xlu2 %v1485_v25, %s4627_s12  ;;  %v1683_v25 = vld [vmem:[#allocation2 + $0x171] sm:$0xff] }
 0x255   : > { %v1376_v22 = vpop.permute.xlu2 %1375  ;;  %1585 = vrot.lane.b32.xlu0 %v5507_v10, %s4627_s12  ;;  %v1493_v10 = vld [vmem:[#allocation2 + $0x198] sm:$0xff] }
 0x256   : > { %1451 = vst.msk [vmem:[#allocation4 + $0xa8] sm:$0xff] %vm1429_vm7, %v1376_v22 }
 0x257   : > { %v1372_v40 = vpop.permute.xlu0 %1371  ;;  %1581 = vrot.lane.b32.xlu1 %v5386_v0, %s4627_s12 }
 0x258   : > { %1449 = vst.msk [vmem:[#allocation4 + $0x98] sm:$0xff] %vm1429_vm7, %v1372_v40  ;;  %v1681_v40 = vld [vmem:[#allocation2 + $0x159] sm:$0xff] }
 0x259   : > { %v1368_v58 = vpop.permute.xlu1 %1367 }
 0x25a   : > { %1447 = vst.msk [vmem:[#allocation4 + $0x88] sm:$0xff] %vm1429_vm7, %v1368_v58 }
 0x25b   : > { %1577 = vrot.lane.b32.xlu2 %v5342_v61, %s4627_s12  ;;  %v1659_v61 = vld [vmem:[#allocation2 + $0x51] sm:$0xff] }
 0x25d   : > { %v1382_v3 = vpop.permute.xlu2 %1381  ;;  %1720 = vrot.lane.b32.xlu0 %v1656_v13, %s4628_s13 }
 0x25e   : > { %1454 = vst.msk [vmem:[#allocation4 + $0xc0] sm:$0xff] %vm1429_vm7, %v1382_v3  ;;  %v1686_v3 = vld [vmem:[#allocation2 + $0x199] sm:$0xff] }
 0x25f   : > { %v1378_v26 = vpop.permute.xlu0 %1377  ;;  %1587 = vrot.lane.b32.xlu1 %v1493_v10, %s4627_s12 }
 0x260   : > { %1452 = vst.msk [vmem:[#allocation4 + $0xb0] sm:$0xff] %vm1429_vm7, %v1378_v26  ;;  %v1682_v26 = vld [vmem:[#allocation2 + $0x169] sm:$0xff] }
 0x261   : > { %v1374_v18 = vpop.permute.xlu1 %1373 }
 0x262   : > { %1450 = vst.msk [vmem:[#allocation4 + $0xa0] sm:$0xff] %vm1429_vm7, %v1374_v18 }
 0x263   : > { %1583 = vrot.lane.b32.xlu2 %v5496_v63, %s4627_s12  ;;  %v1662_v63 = vld [vmem:[#allocation2 + $0x79] sm:$0xff] }
 0x265   : > { %v1388_v0 = vpop.permute.xlu2 %1387  ;;  %1726 = vrot.lane.b32.xlu0 %v1659_v61, %s4628_s13 }
 0x266   : > { %1457 = vst.msk [vmem:[#allocation4 + $0xd8] sm:$0xff] %vm1429_vm7, %v1388_v0  ;;  %v1850_v0 = vld [vmem:[#allocation2 + $0x3a] sm:$0xff] }
 0x267   : > { %v1384_v20 = vpop.permute.xlu0 %1383  ;;  %1722 = vrot.lane.b32.xlu1 %v1657_v32, %s4628_s13  ;;  %v1687_v32 = vld [vmem:[#allocation2 + $0x1a1] sm:$0xff] }
 0x268   : > { %1455 = vst.msk [vmem:[#allocation4 + $0xc8] sm:$0xff] %vm1429_vm7, %v1384_v20 }
 0x269   : > { %v1380_v27 = vpop.permute.xlu1 %1379 }
 0x26a   : > { %1453 = vst.msk [vmem:[#allocation4 + $0xb8] sm:$0xff] %vm1429_vm7, %v1380_v27  ;;  %v1849_v27 = vld [vmem:[#allocation2 + $0x32] sm:$0xff] }
 0x26b   : > { %1589 = vrot.lane.b32.xlu2 %v1494_v2, %s4627_s12 }
 0x26d   : > { %v1394_v15 = vpop.permute.xlu2 %1393  ;;  %1732 = vrot.lane.b32.xlu0 %v1662_v63, %s4628_s13 }
 0x26e   : > { %1460 = vst.msk [vmem:[#allocation4 + $0xf0] sm:$0xff] %vm1429_vm7, %v1394_v15 }
 0x26f   : > { %v1390_v38 = vpop.permute.xlu0 %1389  ;;  %1728 = vrot.lane.b32.xlu1 %v1660_v36, %s4628_s13 }
 0x270   : > { %1458 = vst.msk [vmem:[#allocation4 + $0xe0] sm:$0xff] %vm1429_vm7, %v1390_v38 }
 0x271   : > { %v1386_v44 = vpop.permute.xlu1 %1385 }
 0x272   : > { %1456 = vst.msk [vmem:[#allocation4 + $0xd0] sm:$0xff] %vm1429_vm7, %v1386_v44  ;;  %v1854_v44 = vld [vmem:[#allocation2 + $0x6a] sm:$0xff] }
 0x273   : > { %1724 = vrot.lane.b32.xlu2 %v1658_v24, %s4628_s13  ;;  %v1851_v24 = vld [vmem:[#allocation2 + $0x4a] sm:$0xff] }
 0x275   : > { %v1530_v31 = vpop.permute.xlu2 %1529  ;;  %1738 = vrot.lane.b32.xlu0 %v1665_v33, %s4628_s13 }
 0x276   : > { %1625 = vst.msk [vmem:[#allocation4 + $0x8] sm:$0xff] %vm1623_vm8, %v1530_v31  ;;  %v1852_v31 = vld [vmem:[#allocation2 + $0x52] sm:$0xff] }
 0x277   : > { %v1396_v45 = vpop.permute.xlu0 %1395  ;;  %1734 = vrot.lane.b32.xlu1 %v1663_v49, %s4628_s13  ;;  %v1859_v49 = vld [vmem:[#allocation2 + $0xaa] sm:$0xff] }
 0x278   : > { %1461 = vst.msk [vmem:[#allocation4 + $0xf8] sm:$0xff] %vm1429_vm7, %v1396_v45 }
 0x279   : > { %v1392_v50 = vpop.permute.xlu1 %1391 }
 0x27a   : > { %1459 = vst.msk [vmem:[#allocation4 + $0xe8] sm:$0xff] %vm1429_vm7, %v1392_v50  ;;  %v1857_v50 = vld [vmem:[#allocation2 + $0x92] sm:$0xff] }
 0x27b   : > { %1730 = vrot.lane.b32.xlu2 %v1661_v39, %s4628_s13 }
 0x27d   : > { %v1536_v53 = vpop.permute.xlu2 %1535  ;;  %1744 = vrot.lane.b32.xlu0 %v1668_v43, %s4628_s13 }
 0x27e   : > { %1628 = vst.msk [vmem:[#allocation4 + $0x20] sm:$0xff] %vm1623_vm8, %v1536_v53  ;;  %v1855_v53 = vld [vmem:[#allocation2 + $0x7a] sm:$0xff] }
 0x27f   : > { %v1532_v52 = vpop.permute.xlu0 %1531  ;;  %1740 = vrot.lane.b32.xlu1 %v1666_v56, %s4628_s13  ;;  %v1862_v56 = vld [vmem:[#allocation2 + $0xca] sm:$0xff] }
 0x280   : > { %1626 = vst.msk [vmem:[#allocation4 + $0x10] sm:$0xff] %vm1623_vm8, %v1532_v52 }
 0x281   : > { %v1528_v1 = vpop.permute.xlu1 %1527 }
 0x282   : > { %1624 = vst.msk [vmem:[#allocation4] sm:$0xff] %vm1623_vm8, %v1528_v1  ;;  %v1860_v1 = vld [vmem:[#allocation2 + $0xb2] sm:$0xff] }
 0x283   : > { %1736 = vrot.lane.b32.xlu2 %v1664_v48, %s4628_s13 }
 0x285   : > { %v1542_v59 = vpop.permute.xlu2 %1541  ;;  %1750 = vrot.lane.b32.xlu0 %v1671_v51, %s4628_s13 }
 0x286   : > { %1631 = vst.msk [vmem:[#allocation4 + $0x38] sm:$0xff] %vm1623_vm8, %v1542_v59  ;;  %v1858_v59 = vld [vmem:[#allocation2 + $0x9a] sm:$0xff] }
 0x287   : > { %v1538_v19 = vpop.permute.xlu0 %1537  ;;  %1746 = vrot.lane.b32.xlu1 %v1669_v57, %s4628_s13  ;;  %v1865_v57 = vld [vmem:[#allocation2 + $0xf2] sm:$0xff] }
 0x288   : > { %1629 = vst.msk [vmem:[#allocation4 + $0x28] sm:$0xff] %vm1623_vm8, %v1538_v19 }
 0x289   : > { %v1534_v47 = vpop.permute.xlu1 %1533 }
 0x28a   : > { %1627 = vst.msk [vmem:[#allocation4 + $0x18] sm:$0xff] %vm1623_vm8, %v1534_v47  ;;  %v1863_v47 = vld [vmem:[#allocation2 + $0xda] sm:$0xff] }
 0x28b   : > { %1742 = vrot.lane.b32.xlu2 %v1667_v34, %s4628_s13 }
 0x28d   : > { %v1548_v41 = vpop.permute.xlu2 %1547  ;;  %1756 = vrot.lane.b32.xlu0 %v1674_v55, %s4628_s13 }
 0x28e   : > { %1634 = vst.msk [vmem:[#allocation4 + $0x50] sm:$0xff] %vm1623_vm8, %v1548_v41  ;;  %v1861_v41 = vld [vmem:[#allocation2 + $0xc2] sm:$0xff] }
 0x28f   : > { %v1544_v35 = vpop.permute.xlu0 %1543  ;;  %1752 = vrot.lane.b32.xlu1 %v1672_v42, %s4628_s13 }
 0x290   : > { %1632 = vst.msk [vmem:[#allocation4 + $0x40] sm:$0xff] %vm1623_vm8, %v1544_v35  ;;  %v1868_v35 = vld [vmem:[#allocation2 + $0x112] sm:$0xff] }
 0x291   : > { %v1540_v60 = vpop.permute.xlu1 %1539 }
 0x292   : > { %1630 = vst.msk [vmem:[#allocation4 + $0x30] sm:$0xff] %vm1623_vm8, %v1540_v60  ;;  %v1866_v60 = vld [vmem:[#allocation2 + $0xfa] sm:$0xff] }
 0x293   : > { %1748 = vrot.lane.b32.xlu2 %v1670_v6, %s4628_s13 }
 0x295   : > { %v1554_v4 = vpop.permute.xlu2 %1553  ;;  %1762 = vrot.lane.b32.xlu0 %v1677_v9, %s4628_s13 }
 0x296   : > { %1637 = vst.msk [vmem:[#allocation4 + $0x68] sm:$0xff] %vm1623_vm8, %v1554_v4  ;;  %v1864_v4 = vld [vmem:[#allocation2 + $0xe2] sm:$0xff] }
 0x297   : > { %v1550_v17 = vpop.permute.xlu0 %1549  ;;  %1758 = vrot.lane.b32.xlu1 %v1675_v14, %s4628_s13 }
 0x298   : > { %1635 = vst.msk [vmem:[#allocation4 + $0x58] sm:$0xff] %vm1623_vm8, %v1550_v17 }
 0x299   : > { %v1546_v28 = vpop.permute.xlu1 %1545 }
 0x29a   : > { %1633 = vst.msk [vmem:[#allocation4 + $0x48] sm:$0xff] %vm1623_vm8, %v1546_v28  ;;  %v1869_v28 = vld [vmem:[#allocation2 + $0x122] sm:$0xff] }
 0x29b   : > { %1754 = vrot.lane.b32.xlu2 %v1673_v5, %s4628_s13 }
 0x29d   : > { %v1560_v30 = vpop.permute.xlu2 %1559  ;;  %1768 = vrot.lane.b32.xlu0 %v1680_v23, %s4628_s13  ;;  %v1871_v23 = vld [vmem:[#allocation2 + $0x13a] sm:$0xff] }
 0x29e   : > { %1640 = vst.msk [vmem:[#allocation4 + $0x80] sm:$0xff] %vm1623_vm8, %v1560_v30  ;;  %v1867_v30 = vld [vmem:[#allocation2 + $0x10a] sm:$0xff] }
 0x29f   : > { %v1556_v7 = vpop.permute.xlu0 %1555  ;;  %1764 = vrot.lane.b32.xlu1 %v1678_v11, %s4628_s13 }
 0x2a0   : > { %1638 = vst.msk [vmem:[#allocation4 + $0x70] sm:$0xff] %vm1623_vm8, %v1556_v7 }
 0x2a1   : > { %v1552_v22 = vpop.permute.xlu1 %1551 }
 0x2a2   : > { %1636 = vst.msk [vmem:[#allocation4 + $0x60] sm:$0xff] %vm1623_vm8, %v1552_v22 }
 0x2a3   : > { %1760 = vrot.lane.b32.xlu2 %v1676_v46, %s4628_s13 }
 0x2a5   : > { %v1566_v16 = vpop.permute.xlu2 %1565  ;;  %1774 = vrot.lane.b32.xlu0 %v1683_v25, %s4628_s13  ;;  %v1872_v25 = vld [vmem:[#allocation2 + $0x142] sm:$0xff] }
 0x2a6   : > { %1643 = vst.msk [vmem:[#allocation4 + $0x98] sm:$0xff] %vm1623_vm8, %v1566_v16 }
 0x2a7   : > { %v1562_v13 = vpop.permute.xlu0 %1561  ;;  %1770 = vrot.lane.b32.xlu1 %v1681_v40, %s4628_s13  ;;  %v1870_v40 = vld [vmem:[#allocation2 + $0x12a] sm:$0xff] }
 0x2a8   : > { %1641 = vst.msk [vmem:[#allocation4 + $0x88] sm:$0xff] %vm1623_vm8, %v1562_v13  ;;  %v2078_v13 = vld [vmem:[%s7241_s1 + $0x20] sm:$0xf] }
 0x2a9   : > { %v1558_v10 = vpop.permute.xlu1 %1557  ;;  %4512 = vmatpush.msk.msra.mxu0 %vm2176_vm10, %v2078_v13  ;;  %4582 = vmatpush.msk.msra.mxu2 %vm2176_vm10, %v2078_v13 }
 0x2aa   : > { %1639 = vst.msk [vmem:[#allocation4 + $0x78] sm:$0xff] %vm1623_vm8, %v1558_v10 }
 0x2ab   : > { %1766 = vrot.lane.b32.xlu2 %v1679_v8, %s4628_s13 }
 0x2ad   : > { %v1572_v58 = vpop.permute.xlu2 %1571  ;;  %1780 = vrot.lane.b32.xlu0 %v1686_v3, %s4628_s13 }
 0x2ae   : > { %1646 = vst.msk [vmem:[#allocation4 + $0xb0] sm:$0xff] %vm1623_vm8, %v1572_v58 }
 0x2af   : > { %v1568_v61 = vpop.permute.xlu0 %1567  ;;  %1776 = vrot.lane.b32.xlu1 %v5586_v54, %s4628_s13  ;;  %v1853_v54 = vld [vmem:[#allocation2 + $0x62] sm:$0xff] }
 0x2b0   : > { %1644 = vst.msk [vmem:[#allocation4 + $0xa0] sm:$0xff] %vm1623_vm8, %v1568_v61  ;;  %v2076_v61 = vld [vmem:[%s7241_s1 + $0x10] sm:$0xff] }
 0x2b1   : > { %v1564_v2 = vpop.permute.xlu1 %1563 }
 0x2b2   : > { %1642 = vst.msk [vmem:[#allocation4 + $0x90] sm:$0xff] %vm1623_vm8, %v1564_v2 }
 0x2b3   : > { %1772 = vrot.lane.b32.xlu2 %v1682_v26, %s4628_s13  ;;  %v2077_v26 = vld [vmem:[%s7241_s1 + $0x18] sm:$0xff] }
 0x2b4   : > { %2192 = vmatpush.msra.mxu0 %v2077_v26  ;;  %4583 = vmatpush.msra.mxu2 %v2077_v26 }
 0x2b5   : > { %v1578_v18 = vpop.permute.xlu2 %1577  ;;  %1915 = vrot.lane.b32.xlu0 %v1850_v0, %s4629_s14  ;;  %v1874_v0 = vld [vmem:[#allocation2 + $0x15a] sm:$0xff] }
 0x2b6   : > { %1649 = vst.msk [vmem:[#allocation4 + $0xc8] sm:$0xff] %vm1623_vm8, %v1578_v18  ;;  %v2075_v18 = vld [vmem:[%s7241_s1 + $0x8] sm:$0xff]  ;;  %2193 = vmatpush.msra.mxu0 %v2076_v61  ;;  %4584 = vmatpush.msra.mxu2 %v2076_v61 }
 0x2b7   : > { %v1574_v20 = vpop.permute.xlu0 %1573  ;;  %1782 = vrot.lane.b32.xlu1 %v1687_v32, %s4628_s13  ;;  %v2074_v32 = vld [vmem:[%s7241_s1] sm:$0xff] }
 0x2b8   : > { %1647 = vst.msk [vmem:[#allocation4 + $0xb8] sm:$0xff] %vm1623_vm8, %v1574_v20  ;;  %2194 = vmatpush.msra.mxu0 %v2075_v18  ;;  %4585 = vmatpush.msra.mxu2 %v2075_v18 }
 0x2b9   : > { %v1570_v15 = vpop.permute.xlu1 %1569 }
 0x2ba   : > { %1645 = vst.msk [vmem:[#allocation4 + $0xa8] sm:$0xff] %vm1623_vm8, %v1570_v15  ;;  %2195 = vmatpush.msra.mxu0 %v2074_v32  ;;  %4586 = vmatpush.msra.mxu2 %v2074_v32  ;;  %v1880_v32 = vld [vmem:[#allocation2 + $0x1a2] sm:$0xff] }
 0x2bb   : > { %1778 = vrot.lane.b32.xlu2 %v5601_v12, %s4628_s13  ;;  %v1856_v12 = vld [vmem:[#allocation2 + $0x82] sm:$0xff] }
 0x2bd   : > { %v1584_v63 = vpop.permute.xlu2 %1583  ;;  %1921 = vrot.lane.b32.xlu0 %v1853_v54, %s4629_s14 }
 0x2be   : > { %1652 = vst.msk [vmem:[#allocation4 + $0xe0] sm:$0xff] %vm1623_vm8, %v1584_v63  ;;  %v1875_v63 = vld [vmem:[#allocation2 + $0x16a] sm:$0xff] }
 0x2bf   : > { %v1580_v36 = vpop.permute.xlu0 %1579  ;;  %1917 = vrot.lane.b32.xlu1 %v1851_v24, %s4629_s14 }
 0x2c0   : > { %1650 = vst.msk [vmem:[#allocation4 + $0xd0] sm:$0xff] %vm1623_vm8, %v1580_v36  ;;  %v1873_v36 = vld [vmem:[#allocation2 + $0x152] sm:$0xff] }
 0x2c1   : > { %v1576_v33 = vpop.permute.xlu1 %1575 }
 0x2c2   : > { %1648 = vst.msk [vmem:[#allocation4 + $0xc0] sm:$0xff] %vm1623_vm8, %v1576_v33 }
 0x2c3   : > { %1913 = vrot.lane.b32.xlu2 %v1849_v27, %s4629_s14 }
 0x2c5   : > { %v1590_v38 = vpop.permute.xlu2 %1589  ;;  %1927 = vrot.lane.b32.xlu0 %v1856_v12, %s4629_s14 }
 0x2c6   : > { %1655 = vst.msk [vmem:[#allocation4 + $0xf8] sm:$0xff] %vm1623_vm8, %v1590_v38 }
 0x2c7   : > { %v1586_v39 = vpop.permute.xlu0 %1585  ;;  %1923 = vrot.lane.b32.xlu1 %v1854_v44, %s4629_s14 }
 0x2c8   : > { %1653 = vst.msk [vmem:[#allocation4 + $0xe8] sm:$0xff] %vm1623_vm8, %v1586_v39 }
 0x2c9   : > { %v1582_v43 = vpop.permute.xlu1 %1581 }
 0x2ca   : > { %1651 = vst.msk [vmem:[#allocation4 + $0xd8] sm:$0xff] %vm1623_vm8, %v1582_v43  ;;  %v1876_v43 = vld [vmem:[#allocation2 + $0x172] sm:$0xff] }
 0x2cb   : > { %1919 = vrot.lane.b32.xlu2 %v1852_v31, %s4629_s14 }
 0x2cd   : > { %v1725_v45 = vpop.permute.xlu2 %1724  ;;  %1933 = vrot.lane.b32.xlu0 %v1859_v49, %s4629_s14 }
 0x2ce   : > { %1819 = vst.msk [vmem:[#allocation4 + $0x10] sm:$0xff] %vm1816_vm9, %v1725_v45 }
 0x2cf   : > { %v1721_v48 = vpop.permute.xlu0 %1720  ;;  %1929 = vrot.lane.b32.xlu1 %v1857_v50, %s4629_s14 }
 0x2d0   : > { %1817 = vst.msk [vmem:[#allocation4] sm:$0xff] %vm1816_vm9, %v1721_v48 }
 0x2d1   : > { %v1588_v51 = vpop.permute.xlu1 %1587 }
 0x2d2   : > { %1654 = vst.msk [vmem:[#allocation4 + $0xf0] sm:$0xff] %vm1623_vm8, %v1588_v51 }
 0x2d3   : > { %1925 = vrot.lane.b32.xlu2 %v1855_v53, %s4629_s14 }
 0x2d5   : > { %v1731_v52 = vpop.permute.xlu2 %1730  ;;  %1939 = vrot.lane.b32.xlu0 %v1862_v56, %s4629_s14 }
 0x2d6   : > { %1822 = vst.msk [vmem:[#allocation4 + $0x28] sm:$0xff] %vm1816_vm9, %v1731_v52 }
 0x2d7   : > { %v1727_v34 = vpop.permute.xlu0 %1726  ;;  %1935 = vrot.lane.b32.xlu1 %v1860_v1, %s4629_s14 }
 0x2d8   : > { %1820 = vst.msk [vmem:[#allocation4 + $0x18] sm:$0xff] %vm1816_vm9, %v1727_v34 }
 0x2d9   : > { %v1723_v55 = vpop.permute.xlu1 %1722 }
 0x2da   : > { %1818 = vst.msk [vmem:[#allocation4 + $0x8] sm:$0xff] %vm1816_vm9, %v1723_v55 }
 0x2db   : > { %1931 = vrot.lane.b32.xlu2 %v1858_v59, %s4629_s14 }
 0x2dd   : > { %v1737_v19 = vpop.permute.xlu2 %1736  ;;  %1945 = vrot.lane.b32.xlu0 %v1865_v57, %s4629_s14 }
 0x2de   : > { %1825 = vst.msk [vmem:[#allocation4 + $0x40] sm:$0xff] %vm1816_vm9, %v1737_v19 }
 0x2df   : > { %v1733_v6 = vpop.permute.xlu0 %1732  ;;  %1941 = vrot.lane.b32.xlu1 %v1863_v47, %s4629_s14 }
 0x2e0   : > { %1823 = vst.msk [vmem:[#allocation4 + $0x30] sm:$0xff] %vm1816_vm9, %v1733_v6 }
 0x2e1   : > { %v1729_v9 = vpop.permute.xlu1 %1728 }
 0x2e2   : > { %1821 = vst.msk [vmem:[#allocation4 + $0x20] sm:$0xff] %vm1816_vm9, %v1729_v9 }
 0x2e3   : > { %1937 = vrot.lane.b32.xlu2 %v1861_v41, %s4629_s14 }
 0x2e5   : > { %v1743_v42 = vpop.permute.xlu2 %1742  ;;  %1951 = vrot.lane.b32.xlu0 %v1868_v35, %s4629_s14 }
 0x2e6   : > { %1828 = vst.msk [vmem:[#allocation4 + $0x58] sm:$0xff] %vm1816_vm9, %v1743_v42 }
 0x2e7   : > { %v1739_v5 = vpop.permute.xlu0 %1738  ;;  %1947 = vrot.lane.b32.xlu1 %v1866_v60, %s4629_s14 }
 0x2e8   : > { %1826 = vst.msk [vmem:[#allocation4 + $0x48] sm:$0xff] %vm1816_vm9, %v1739_v5 }
 0x2e9   : > { %v1735_v17 = vpop.permute.xlu1 %1734 }
 0x2ea   : > { %1824 = vst.msk [vmem:[#allocation4 + $0x38] sm:$0xff] %vm1816_vm9, %v1735_v17 }
 0x2eb   : > { %1943 = vrot.lane.b32.xlu2 %v1864_v4, %s4629_s14 }
 0x2ed   : > { %v1749_v14 = vpop.permute.xlu2 %1748  ;;  %1957 = vrot.lane.b32.xlu0 %v1871_v23, %s4629_s14 }
 0x2ee   : > { %1831 = vst.msk [vmem:[#allocation4 + $0x70] sm:$0xff] %vm1816_vm9, %v1749_v14 }
 0x2ef   : > { %v1745_v46 = vpop.permute.xlu0 %1744  ;;  %1953 = vrot.lane.b32.xlu1 %v1869_v28, %s4629_s14 }
 0x2f0   : > { %1829 = vst.msk [vmem:[#allocation4 + $0x60] sm:$0xff] %vm1816_vm9, %v1745_v46 }
 0x2f1   : > { %v1741_v7 = vpop.permute.xlu1 %1740 }
 0x2f2   : > { %1827 = vst.msk [vmem:[#allocation4 + $0x50] sm:$0xff] %vm1816_vm9, %v1741_v7 }
 0x2f3   : > { %1949 = vrot.lane.b32.xlu2 %v1867_v30, %s4629_s14 }
 0x2f5   : > { %v1755_v11 = vpop.permute.xlu2 %1754  ;;  %1963 = vrot.lane.b32.xlu0 %v1874_v0, %s4629_s14 }
 0x2f6   : > { %1834 = vst.msk [vmem:[#allocation4 + $0x88] sm:$0xff] %vm1816_vm9, %v1755_v11 }
 0x2f7   : > { %v1751_v16 = vpop.permute.xlu0 %1750  ;;  %1959 = vrot.lane.b32.xlu1 %v1872_v25, %s4629_s14 }
 0x2f8   : > { %1832 = vst.msk [vmem:[#allocation4 + $0x78] sm:$0xff] %vm1816_vm9, %v1751_v16 }
 0x2f9   : > { %v1747_v8 = vpop.permute.xlu1 %1746 }
 0x2fa   : > { %1830 = vst.msk [vmem:[#allocation4 + $0x68] sm:$0xff] %vm1816_vm9, %v1747_v8 }
 0x2fb   : > { %1955 = vrot.lane.b32.xlu2 %v1870_v40, %s4629_s14 }
 0x2fd   : > { %v1761_v22 = vpop.permute.xlu2 %1760  ;;  %1969 = vrot.lane.b32.xlu0 %v5703_v37, %s4629_s14 }
 0x2fe   : > { %1837 = vst.msk [vmem:[#allocation4 + $0xa0] sm:$0xff] %vm1816_vm9, %v1761_v22 }
 0x2ff   : > { %v1757_v3 = vpop.permute.xlu0 %1756  ;;  %1965 = vrot.lane.b32.xlu1 %v1875_v63, %s4629_s14 }
 0x300   : > { %1835 = vst.msk [vmem:[#allocation4 + $0x90] sm:$0xff] %vm1816_vm9, %v1757_v3 }
 0x301   : > { %v1753_v10 = vpop.permute.xlu1 %1752 }
 0x302   : > { %1833 = vst.msk [vmem:[#allocation4 + $0x80] sm:$0xff] %vm1816_vm9, %v1753_v10 }
 0x303   : > { %1961 = vrot.lane.b32.xlu2 %v1873_v36, %s4629_s14 }
 0x305   : > { %v1767_v58 = vpop.permute.xlu2 %1766  ;;  %1975 = vrot.lane.b32.xlu0 %v1880_v32, %s4629_s14 }
 0x306   : > { %1840 = vst.msk [vmem:[#allocation4 + $0xb8] sm:$0xff] %vm1816_vm9, %v1767_v58 }
 0x307   : > { %v1763_v2 = vpop.permute.xlu0 %1762  ;;  %1971 = vrot.lane.b32.xlu1 %v5689_v29, %s4629_s14 }
 0x308   : > { %1838 = vst.msk [vmem:[#allocation4 + $0xa8] sm:$0xff] %vm1816_vm9, %v1763_v2 }
 0x309   : > { %v1759_v54 = vpop.permute.xlu1 %1758 }
 0x30a   : > { %1836 = vst.msk [vmem:[#allocation4 + $0x98] sm:$0xff] %vm1816_vm9, %v1759_v54 }
 0x30b   : > { %1967 = vrot.lane.b32.xlu2 %v1876_v43, %s4629_s14 }
 0x30d   : > { %v1773_v20 = vpop.permute.xlu2 %1772 }
 0x30e   : > { %1843 = vst.msk [vmem:[#allocation4 + $0xd0] sm:$0xff] %vm1816_vm9, %v1773_v20 }
 0x30f   : > { %v1769_v15 = vpop.permute.xlu0 %1768 }
 0x310   : > { %1841 = vst.msk [vmem:[#allocation4 + $0xc0] sm:$0xff] %vm1816_vm9, %v1769_v15  ;;  %v1879_v15 = vld [vmem:[#allocation2 + $0x19a] sm:$0xff] }
 0x311   : > { %v1765_v24 = vpop.permute.xlu1 %1764 }
 0x312   : > { %1839 = vst.msk [vmem:[#allocation4 + $0xb0] sm:$0xff] %vm1816_vm9, %v1765_v24 }
 0x313   : > { %1973 = vrot.lane.b32.xlu2 %v1879_v15, %s4629_s14 }
 0x315   : > { %v1779_v27 = vpop.permute.xlu2 %1778 }
 0x316   : > { %1846 = vst.msk [vmem:[#allocation4 + $0xe8] sm:$0xff] %vm1816_vm9, %v1779_v27  ;;  %v2494_v27 = vld [vmem:[#allocation3 + $0x1] sm:$0xff] }
 0x317   : > { %v1775_v12 = vpop.permute.xlu0 %1774  ;;  %2558 = vrot.lane.b32.xlu1 %v2494_v27, %s4622_s26 }
 0x318   : > { %1844 = vst.msk [vmem:[#allocation4 + $0xd8] sm:$0xff] %vm1816_vm9, %v1775_v12 }
 0x319   : > { %v1771_v38 = vpop.permute.xlu1 %1770 }
 0x31a   : > { %1842 = vst.msk [vmem:[#allocation4 + $0xc8] sm:$0xff] %vm1816_vm9, %v1771_v38  ;;  %v6010_v38 = vld [vmem:[%s7244_s4] ss:$0 sm:$0xff] }
 0x31d   : > { %v1914_v37 = vpop.permute.xlu2 %1913 }
 0x31e   : > { %2010 = vst.msk [vmem:[#allocation4] sm:$0xff] %vm2009_vm11, %v1914_v37  ;;  %v6005_v37 = vld [vmem:[%s7243_s3] ss:$0 sm:$0xff] }
 0x31f   : > { %v1781_v33 = vpop.permute.xlu0 %1780 }
 0x320   : > { %1847 = vst.msk [vmem:[#allocation4 + $0xf0] sm:$0xff] %vm1816_vm9, %v1781_v33  ;;  %v2495_v33 = vld [vmem:[#allocation3 + $0x9] sm:$0xff] }
 0x321   : > { %v1777_v39 = vpop.permute.xlu1 %1776  ;;  %2560 = vrot.lane.b32.xlu2 %v2495_v33, %s4622_s26 }
 0x322   : > { %1845 = vst.msk [vmem:[#allocation4 + $0xe0] sm:$0xff] %vm1816_vm9, %v1777_v39 }
 0x325   : > { %v2042_v31 = vld [vmem:[#allocation4] sm:$0xff]  ;;  %v1920_v44 = vpop.permute.xlu2 %1919 }
 0x326   : > { %4513 = vmatmul.msk.f32.vlgmr.msra.gmra.mxu0 %vm2079_vm12, %v2042_v31  ;;  %2013 = vst.msk [vmem:[#allocation4 + $0x18] sm:$0xff] %vm2009_vm11, %v1920_v44 }
 0x327   : > { %v1916_v29 = vpop.permute.xlu0 %1915 }
 0x328   : > { %2011 = vst.msk [vmem:[#allocation4 + $0x8] sm:$0xff] %vm2009_vm11, %v1916_v29 }
 0x329   : > { %v1783_v45 = vpop.permute.xlu1 %1782 }
 0x32a   : > { %1848 = vst.msk [vmem:[#allocation4 + $0xf8] sm:$0xff] %vm1816_vm9, %v1783_v45 }
 0x32d   : > { %v1926_v49 = vpop.permute.xlu2 %1925  ;;  %v2045_v57 = vld [vmem:[#allocation4 + $0x18] sm:$0xff] }
 0x32e   : > { %2016 = vst.msk [vmem:[#allocation4 + $0x30] sm:$0xff] %vm2009_vm11, %v1926_v49 }
 0x32f   : > { %v1922_v53 = vpop.permute.xlu0 %1921  ;;  %v2043_v50 = vld [vmem:[#allocation4 + $0x8] sm:$0xff] }
 0x330   : > { %2014 = vst.msk [vmem:[#allocation4 + $0x20] sm:$0xff] %vm2009_vm11, %v1922_v53  ;;  %4514 = vmatmul.msk.f32.gmra.mxu0 %vm2079_vm12, %v2043_v50 }
 0x331   : > { %v1918_v56 = vpop.permute.xlu1 %1917 }
 0x332   : > { %2012 = vst.msk [vmem:[#allocation4 + $0x10] sm:$0xff] %vm2009_vm11, %v1918_v56 }
 0x335   : > { %v1932_v48 = vpop.permute.xlu2 %1931  ;;  %v2048_v23 = vld [vmem:[#allocation4 + $0x30] sm:$0xff] }
 0x336   : > { %2019 = vst.msk [vmem:[#allocation4 + $0x48] sm:$0xff] %vm2009_vm11, %v1932_v48 }
 0x337   : > { %v1928_v52 = vpop.permute.xlu0 %1927  ;;  %v2046_v42 = vld [vmem:[#allocation4 + $0x20] sm:$0xff] }
 0x338   : > { %2017 = vst.msk [vmem:[#allocation4 + $0x38] sm:$0xff] %vm2009_vm11, %v1928_v52 }
 0x339   : > { %v1924_v59 = vpop.permute.xlu1 %1923  ;;  %v2044_v1 = vld [vmem:[#allocation4 + $0x10] sm:$0xff] }
 0x33a   : > { %2015 = vst.msk [vmem:[#allocation4 + $0x28] sm:$0xff] %vm2009_vm11, %v1924_v59  ;;  %4515 = vmatmul.msk.f32.gmra.mxu0 %vm2079_vm12, %v2044_v1 }
 0x33d   : > { %v1938_v51 = vpop.permute.xlu2 %1937  ;;  %v2051_v40 = vld [vmem:[#allocation4 + $0x48] sm:$0xff] }
 0x33e   : > { %2022 = vst.msk [vmem:[#allocation4 + $0x60] sm:$0xff] %vm2009_vm11, %v1938_v51 }
 0x33f   : > { %v1934_v34 = vpop.permute.xlu0 %1933  ;;  %v2049_v28 = vld [vmem:[#allocation4 + $0x38] sm:$0xff] }
 0x340   : > { %2020 = vst.msk [vmem:[#allocation4 + $0x50] sm:$0xff] %vm2009_vm11, %v1934_v34 }
 0x341   : > { %v1930_v55 = vpop.permute.xlu1 %1929  ;;  %v2047_v4 = vld [vmem:[#allocation4 + $0x28] sm:$0xff] }
 0x342   : > { %2018 = vst.msk [vmem:[#allocation4 + $0x40] sm:$0xff] %vm2009_vm11, %v1930_v55  ;;  %4516 = vmatmul.msk.f32.gmra.mxu0 %vm2079_vm12, %v2045_v57 }
 0x345   : > { %v1944_v19 = vpop.permute.xlu2 %1943  ;;  %v2054_v2 = vld [vmem:[#allocation4 + $0x60] sm:$0xff] }
 0x346   : > { %2025 = vst.msk [vmem:[#allocation4 + $0x78] sm:$0xff] %vm2009_vm11, %v1944_v19 }
 0x347   : > { %v1940_v41 = vpop.permute.xlu0 %1939  ;;  %v2052_v58 = vld [vmem:[#allocation4 + $0x50] sm:$0xff] }
 0x348   : > { %2023 = vst.msk [vmem:[#allocation4 + $0x68] sm:$0xff] %vm2009_vm11, %v1940_v41 }
 0x349   : > { %v1936_v6 = vpop.permute.xlu1 %1935  ;;  %v2050_v25 = vld [vmem:[#allocation4 + $0x40] sm:$0xff] }
 0x34a   : > { %2021 = vst.msk [vmem:[#allocation4 + $0x58] sm:$0xff] %vm2009_vm11, %v1936_v6  ;;  %4517 = vmatmul.msk.f32.gmra.mxu0 %vm2079_vm12, %v2046_v42 }
 0x34d   : > { %v1950_v47 = vpop.permute.xlu2 %1949  ;;  %v2057_v29 = vld [vmem:[#allocation4 + $0x78] sm:$0xff] }
 0x34e   : > { %2028 = vst.msk [vmem:[#allocation4 + $0x90] sm:$0xff] %vm2009_vm11, %v1950_v47 }
 0x34f   : > { %v1946_v35 = vpop.permute.xlu0 %1945  ;;  %v2055_v54 = vld [vmem:[#allocation4 + $0x68] sm:$0xff] }
 0x350   : > { %2026 = vst.msk [vmem:[#allocation4 + $0x80] sm:$0xff] %vm2009_vm11, %v1946_v35 }
 0x351   : > { %v1942_v9 = vpop.permute.xlu1 %1941  ;;  %v2053_v61 = vld [vmem:[#allocation4 + $0x58] sm:$0xff] }
 0x352   : > { %2024 = vst.msk [vmem:[#allocation4 + $0x70] sm:$0xff] %vm2009_vm11, %v1942_v9  ;;  %4518 = vmatmul.msk.f32.gmra.mxu0 %vm2079_vm12, %v2047_v4 }
 0x355   : > { %v1956_v14 = vpop.permute.xlu2 %1955  ;;  %v2060_v7 = vld [vmem:[#allocation4 + $0x90] sm:$0xff] }
 0x356   : > { %2031 = vst.msk [vmem:[#allocation4 + $0xa8] sm:$0xff] %vm2009_vm11, %v1956_v14 }
 0x357   : > { %v2058_v60 = vld [vmem:[#allocation4 + $0x80] sm:$0xff]  ;;  %v1952_v5 = vpop.permute.xlu0 %1951 }
 0x358   : > { %4529 = vmatmul.msk.f32.vlgmr.msra.gmra.mxu2 %vm2079_vm12, %v2058_v60  ;;  %2029 = vst.msk [vmem:[#allocation4 + $0x98] sm:$0xff] %vm2009_vm11, %v1952_v5 }
 0x359   : > { %v1948_v17 = vpop.permute.xlu1 %1947  ;;  %v2056_v36 = vld [vmem:[#allocation4 + $0x70] sm:$0xff] }
 0x35a   : > { %2027 = vst.msk [vmem:[#allocation4 + $0x88] sm:$0xff] %vm2009_vm11, %v1948_v17  ;;  %4519 = vmatmul.msk.f32.gmra.mxu0 %vm2079_vm12, %v2048_v23 }
 0x35d   : > { %v1962_v22 = vpop.permute.xlu2 %1961  ;;  %v2063_v26 = vld [vmem:[#allocation4 + $0xa8] sm:$0xff] }
 0x35e   : > { %2034 = vst.msk [vmem:[#allocation4 + $0xc0] sm:$0xff] %vm2009_vm11, %v1962_v22 }
 0x35f   : > { %v1958_v30 = vpop.permute.xlu0 %1957  ;;  %v2061_v8 = vld [vmem:[#allocation4 + $0x98] sm:$0xff] }
 0x360   : > { %2032 = vst.msk [vmem:[#allocation4 + $0xb0] sm:$0xff] %vm2009_vm11, %v1958_v30 }
 0x361   : > { %v2059_v46 = vld [vmem:[#allocation4 + $0x88] sm:$0xff]  ;;  %v1954_v11 = vpop.permute.xlu1 %1953 }
 0x362   : > { %4520 = vmatmul.msk.f32.gmra.mxu0 %vm2079_vm12, %v2049_v28  ;;  %4530 = vmatmul.msk.f32.gmra.mxu2 %vm2079_vm12, %v2059_v46  ;;  %2030 = vst.msk [vmem:[#allocation4 + $0xa0] sm:$0xff] %vm2009_vm11, %v1954_v11 }
 0x365   : > { %v1968_v0 = vpop.permute.xlu2 %1967  ;;  %v2066_v24 = vld [vmem:[#allocation4 + $0xc0] sm:$0xff] }
 0x366   : > { %2037 = vst.msk [vmem:[#allocation4 + $0xd8] sm:$0xff] %vm2009_vm11, %v1968_v0 }
 0x367   : > { %v1964_v13 = vpop.permute.xlu0 %1963  ;;  %v2064_v18 = vld [vmem:[#allocation4 + $0xb0] sm:$0xff] }
 0x368   : > { %2035 = vst.msk [vmem:[#allocation4 + $0xc8] sm:$0xff] %vm2009_vm11, %v1964_v13 }
 0x369   : > { %v1960_v16 = vpop.permute.xlu1 %1959  ;;  %v2062_v3 = vld [vmem:[#allocation4 + $0xa0] sm:$0xff] }
 0x36a   : > { %4521 = vmatmul.msk.f32.gmra.mxu0 %vm2079_vm12, %v2050_v25  ;;  %4531 = vmatmul.msk.f32.gmra.mxu2 %vm2079_vm12, %v2060_v7  ;;  %2033 = vst.msk [vmem:[#allocation4 + $0xb8] sm:$0xff] %vm2009_vm11, %v1960_v16 }
 0x36d   : > { %v2069_v51 = vld [vmem:[#allocation4 + $0xd8] sm:$0xff] }
 0x36f   : > { %v1970_v63 = vpop.permute.xlu0 %1969  ;;  %v2067_v44 = vld [vmem:[#allocation4 + $0xc8] sm:$0xff] }
 0x370   : > { %2038 = vst.msk [vmem:[#allocation4 + $0xe0] sm:$0xff] %vm2009_vm11, %v1970_v63 }
 0x371   : > { %v1966_v10 = vpop.permute.xlu1 %1965  ;;  %v2065_v20 = vld [vmem:[#allocation4 + $0xb8] sm:$0xff] }
 0x372   : > { %4522 = vmatmul.msk.f32.gmra.mxu0 %vm2079_vm12, %v2051_v40  ;;  %4532 = vmatmul.msk.f32.gmra.mxu2 %vm2079_vm12, %v2061_v8  ;;  %2036 = vst.msk [vmem:[#allocation4 + $0xd0] sm:$0xff] %vm2009_vm11, %v1966_v10 }
 0x377   : > { %v2070_v34 = vld [vmem:[#allocation4 + $0xe0] sm:$0xff] }
 0x379   : > { %v1972_v12 = vpop.permute.xlu1 %1971  ;;  %v2068_v43 = vld [vmem:[#allocation4 + $0xd0] sm:$0xff] }
 0x37a   : > { %4523 = vmatmul.msk.f32.gmra.mxu0 %vm2079_vm12, %v2052_v58  ;;  %4533 = vmatmul.msk.f32.gmra.mxu2 %vm2079_vm12, %v2062_v3  ;;  %2039 = vst.msk [vmem:[#allocation4 + $0xe8] sm:$0xff] %vm2009_vm11, %v1972_v12 }
 0x381   : > { %v2071_v42 = vld [vmem:[#allocation4 + $0xe8] sm:$0xff] }
 0x382   : > { %4524 = vmatmul.msk.f32.gmra.mxu0 %vm2079_vm12, %v2053_v61  ;;  %4534 = vmatmul.msk.f32.gmra.mxu2 %vm2079_vm12, %v2063_v26 }
 0x38a   : > { %4525 = vmatmul.msk.f32.gmra.mxu0 %vm2079_vm12, %v2054_v2  ;;  %4535 = vmatmul.msk.f32.gmra.mxu2 %vm2079_vm12, %v2064_v18 }
 0x392   : > { %4526 = vmatmul.msk.f32.gmra.mxu0 %vm2079_vm12, %v2055_v54  ;;  %4536 = vmatmul.msk.f32.gmra.mxu2 %vm2079_vm12, %v2065_v20 }
 0x39a   : > { %4527 = vmatmul.msk.f32.gmra.mxu0 %vm2079_vm12, %v2056_v36  ;;  %4537 = vmatmul.msk.f32.gmra.mxu2 %vm2079_vm12, %v2066_v24 }
 0x3a2   : > { %4528 = vmatmul.msk.f32.gmra.mxu0 %vm2079_vm12, %v2057_v29  ;;  %4538 = vmatmul.msk.f32.gmra.mxu2 %vm2079_vm12, %v2067_v44 }
 0x3a3   : > { %v2197_v31 = vpop.f32.mrf.mxu0 }
 0x3a4   : > { %v2297_v39 = vmul.f32 %v6005_v37, %v2197_v31 }
 0x3a6   : > { %v2333_v49 = vadd.f32 %v6010_v38, %v2297_v39 }
 0x3a8   : > { %v2365_v45 = vmax.f32 %v2333_v49, 0.0 }
 0x3aa   : > { %2398 = vst.msk [vmem:[#allocation3 + $0x19] sm:$0xff] %vm279_vm0, %v2365_v45  ;;  %4539 = vmatmul.msk.f32.gmra.mxu2 %vm2079_vm12, %v2068_v43 }
 0x3ad   : > { %v2200_v53 = vpop.f32.mrf.mxu0 }
 0x3ae   : > { %v2298_v50 = vmul.f32 %v6005_v37, %v2200_v53 }
 0x3b0   : > { %v2334_v52 = vadd.f32 %v6010_v38, %v2298_v50 }
 0x3b1   : > { %v2496_v48 = vld [vmem:[#allocation3 + $0x19] sm:$0xff] }
 0x3b2   : > { %v6020_v56 = vld [vmem:[#allocation3 + $0x18] sm:$0xff]  ;;  %2562 = vrot.lane.b32.xlu0 %v2496_v48, %s4622_s26  ;;  %v2366_v59 = vmax.f32 %v2334_v52, 0.0  ;;  %4540 = vmatmul.msk.f32.gmra.mxu2 %vm2079_vm12, %v2069_v51 }
 0x3b3   : > { %2464 = vst.msk [vmem:[#allocation4 + $0x10] sm:$0xff] %vm279_vm0, %v6020_v56 }
 0x3b4   : > { %2399 = vst.msk [vmem:[#allocation3 + $0x21] sm:$0xff] %vm279_vm0, %v2366_v59  ;;  %v1974_v59 = vpop.permute.xlu2 %1973 }
 0x3b5   : > { %2040 = vst.msk [vmem:[#allocation4 + $0xf0] sm:$0xff] %vm2009_vm11, %v1974_v59 }
 0x3b7   : > { %v2203_v1 = vpop.f32.mrf.mxu0 }
 0x3b8   : > { %v2299_v57 = vmul.f32 %v6005_v37, %v2203_v1 }
 0x3ba   : > { %v2335_v41 = vadd.f32 %v6010_v38, %v2299_v57  ;;  %4541 = vmatmul.msk.f32.gmra.mxu2 %vm2079_vm12, %v2070_v34 }
 0x3bb   : > { %v2497_v19 = vld [vmem:[#allocation3 + $0x21] sm:$0xff] }
 0x3bc   : > { %v6029_v55 = vld [vmem:[#allocation3 + $0x20] sm:$0xff]  ;;  %2564 = vrot.lane.b32.xlu1 %v2497_v19, %s4622_s26  ;;  %v2367_v47 = vmax.f32 %v2335_v41, 0.0 }
 0x3bd   : > { %2465 = vst.msk [vmem:[#allocation4 + $0x18] sm:$0xff] %vm279_vm0, %v6029_v55  ;;  %v6360_v21 = vld [vmem:[#allocation3 + $0x1a] sm:$0xff] }
 0x3be   : > { %2400 = vst.msk [vmem:[#allocation3 + $0x31] sm:$0xff] %vm279_vm0, %v2367_v47 }
 0x3bf   : > { %v2206_v6 = vpop.f32.mrf.mxu0  ;;  %7441 = vst [vmem:[#allocation38_spill] sm:$0xff] %v6360_v21 }
 0x3c0   : > { %v2300_v35 = vmul.f32 %v6005_v37, %v2206_v6 }
 0x3c2   : > { %v2336_v9 = vadd.f32 %v6010_v38, %v2300_v35  ;;  %4542 = vmatmul.msk.f32.gmra.mxu2 %vm2079_vm12, %v2071_v42 }
 0x3c4   : > { %v2368_v4 = vmax.f32 %v2336_v9, 0.0 }
 0x3c5   : > { %v2498_v60 = vld [vmem:[#allocation3 + $0x31] sm:$0xff] }
 0x3c6   : > { %v6040_v5 = vld [vmem:[#allocation3 + $0x30] sm:$0xff]  ;;  %2401 = vst.msk [vmem:[#allocation3 + $0x39] sm:$0xff] %vm279_vm0, %v2368_v4  ;;  %2566 = vrot.lane.b32.xlu2 %v2498_v60, %s4622_s26 }
 0x3c7   : > { %v2209_v14 = vpop.f32.mrf.mxu0  ;;  %2466 = vst.msk [vmem:[#allocation4 + $0x20] sm:$0xff] %vm279_vm0, %v6040_v5 }
 0x3c8   : > { %v2301_v17 = vmul.f32 %v6005_v37, %v2209_v14 }
 0x3ca   : > { %v2337_v23 = vadd.f32 %v6010_v38, %v2301_v17 }
 0x3cc   : > { %v2369_v30 = vmax.f32 %v2337_v23, 0.0 }
 0x3cd   : > { %v6048_v28 = vld [vmem:[#allocation3 + $0x39] sm:$0xff] }
 0x3ce   : > { %v6050_v46 = vld [vmem:[#allocation3 + $0x38] sm:$0xff]  ;;  %2402 = vst.msk [vmem:[#allocation3 + $0x49] sm:$0xff] %vm279_vm0, %v2369_v30  ;;  %2568 = vrot.lane.b32.xlu0 %v6048_v28, %s4622_s26 }
 0x3cf   : > { %v2212_v11 = vpop.f32.mrf.mxu0  ;;  %2467 = vst.msk [vmem:[#allocation4 + $0x28] sm:$0xff] %vm279_vm0, %v6050_v46 }
 0x3d0   : > { %v2302_v7 = vmul.f32 %v6005_v37, %v2212_v11 }
 0x3d2   : > { %v2338_v25 = vadd.f32 %v6010_v38, %v2302_v7 }
 0x3d4   : > { %v2370_v16 = vmax.f32 %v2338_v25, 0.0  ;;  %v2431_v25 = vld [vmem:[#allocation3 + $0x8] sm:$0xff] }
 0x3d5   : > { %v6059_v22 = vld [vmem:[#allocation3 + $0x49] sm:$0xff]  ;;  %2463 = vst.msk [vmem:[#allocation4 + $0x8] sm:$0xff] %vm279_vm0, %v2431_v25 }
 0x3d6   : > { %v6061_v8 = vld [vmem:[#allocation3 + $0x48] sm:$0xff]  ;;  %2403 = vst.msk [vmem:[#allocation3 + $0x51] sm:$0xff] %vm279_vm0, %v2370_v16  ;;  %2570 = vrot.lane.b32.xlu1 %v6059_v22, %s4622_s26 }
 0x3d7   : > { %v2215_v40 = vpop.f32.mrf.mxu0  ;;  %2468 = vst.msk [vmem:[#allocation4 + $0x30] sm:$0xff] %vm279_vm0, %v6061_v8 }
 0x3d8   : > { %v2303_v13 = vmul.f32 %v6005_v37, %v2215_v40  ;;  %v2561_v40 = vpop.permute.xlu2 %2560 }
 0x3d9   : > { %2655 = vst.msk [vmem:[#allocation4 + $0x8] sm:$0xff] %vm657_vm3, %v2561_v40 }
 0x3da   : > { %v2339_v58 = vadd.f32 %v6010_v38, %v2303_v13 }
 0x3db   : > { %v2245_v3 = vpop.f32.mrf.mxu2 }
 0x3dc   : > { %v2313_v10 = vmul.f32 %v6005_v37, %v2245_v3  ;;  %v2371_v26 = vmax.f32 %v2339_v58, 0.0 }
 0x3dd   : > { %v6072_v0 = vld [vmem:[#allocation3 + $0x51] sm:$0xff] }
 0x3de   : > { %v2349_v61 = vadd.f32 %v6010_v38, %v2313_v10  ;;  %v6074_v18 = vld [vmem:[#allocation3 + $0x50] sm:$0xff]  ;;  %2404 = vst.msk [vmem:[#allocation3 + $0x61] sm:$0xff] %vm279_vm0, %v2371_v26  ;;  %2572 = vrot.lane.b32.xlu2 %v6072_v0, %s4622_s26  ;;  %v1976_v10 = vpop.permute.xlu0 %1975 }
 0x3df   : > { %v2218_v32 = vpop.f32.mrf.mxu0  ;;  %2469 = vst.msk [vmem:[#allocation4 + $0x38] sm:$0xff] %vm279_vm0, %v6074_v18 }
 0x3e0   : > { %v2381_v2 = vmax.f32 %v2349_v61, 0.0  ;;  %v2304_v20 = vmul.f32 %v6005_v37, %v2218_v32  ;;  %2041 = vst.msk [vmem:[#allocation4 + $0xf8] sm:$0xff] %vm2009_vm11, %v1976_v10 }
 0x3e2   : > { %2414 = vst.msk [vmem:[#allocation3 + $0xd9] sm:$0xff] %vm279_vm0, %v2381_v2  ;;  %v2340_v54 = vadd.f32 %v6010_v38, %v2304_v20 }
 0x3e4   : > { %v2372_v63 = vmax.f32 %v2340_v54, 0.0 }
 0x3e5   : > { %v2248_v15 = vpop.f32.mrf.mxu2  ;;  %v6084_v27 = vld [vmem:[#allocation3 + $0x61] sm:$0xff] }
 0x3e6   : > { %v6086_v24 = vld [vmem:[#allocation3 + $0x60] sm:$0xff]  ;;  %2405 = vst.msk [vmem:[#allocation3 + $0x69] sm:$0xff] %vm279_vm0, %v2372_v63  ;;  %v2314_v36 = vmul.f32 %v6005_v37, %v2248_v15  ;;  %2574 = vrot.lane.b32.xlu0 %v6084_v27, %s4622_s26 }
 0x3e7   : > { %v2221_v12 = vpop.f32.mrf.mxu0  ;;  %2470 = vst.msk [vmem:[#allocation4 + $0x40] sm:$0xff] %vm279_vm0, %v6086_v24 }
 0x3e8   : > { %v2350_v31 = vadd.f32 %v6010_v38, %v2314_v36  ;;  %v2305_v44 = vmul.f32 %v6005_v37, %v2221_v12 }
 0x3e9   : > { %v6094_v33 = vld [vmem:[#allocation3 + $0xd8] sm:$0xff] }
 0x3ea   : > { %2480 = vst.msk [vmem:[#allocation4 + $0x90] sm:$0xff] %vm279_vm0, %v6094_v33  ;;  %v2382_v39 = vmax.f32 %v2350_v31, 0.0  ;;  %v2341_v29 = vadd.f32 %v6010_v38, %v2305_v44 }
 0x3ec   : > { %2415 = vst.msk [vmem:[#allocation3 + $0xe1] sm:$0xff] %vm279_vm0, %v2382_v39  ;;  %v2373_v49 = vmax.f32 %v2341_v29, 0.0 }
 0x3ed   : > { %v2251_v45 = vpop.f32.mrf.mxu2  ;;  %v6102_v43 = vld [vmem:[#allocation3 + $0x69] sm:$0xff] }
 0x3ee   : > { %v6104_v53 = vld [vmem:[#allocation3 + $0x68] sm:$0xff]  ;;  %2406 = vst.msk [vmem:[#allocation3 + $0x79] sm:$0xff] %vm279_vm0, %v2373_v49  ;;  %v2315_v50 = vmul.f32 %v6005_v37, %v2251_v45  ;;  %2576 = vrot.lane.b32.xlu1 %v6102_v43, %s4622_s26  ;;  %v2430_v49 = vld [vmem:[#allocation3] sm:$0xff] }
 0x3ef   : > { %v2224_v48 = vpop.f32.mrf.mxu0  ;;  %2471 = vst.msk [vmem:[#allocation4 + $0x48] sm:$0xff] %vm279_vm0, %v6104_v53 }
 0x3f0   : > { %v2351_v52 = vadd.f32 %v6010_v38, %v2315_v50  ;;  %v2306_v51 = vmul.f32 %v6005_v37, %v2224_v48  ;;  %2462 = vst.msk [vmem:[#allocation4] sm:$0xff] %vm279_vm0, %v2430_v49 }
 0x3f2   : > { %v2383_v1 = vmax.f32 %v2351_v52, 0.0  ;;  %v2342_v34 = vadd.f32 %v6010_v38, %v2306_v51  ;;  %v2559_v51 = vpop.permute.xlu1 %2558 }
 0x3f3   : > { %v6117_v19 = vld [vmem:[#allocation3 + $0xe0] sm:$0xff]  ;;  %2654 = vst.msk [vmem:[#allocation4] sm:$0xff] %vm657_vm3, %v2559_v51 }
 0x3f4   : > { %2416 = vst.msk [vmem:[#allocation3 + $0xf1] sm:$0xff] %vm279_vm0, %v2383_v1  ;;  %v2374_v57 = vmax.f32 %v2342_v34, 0.0 }
 0x3f5   : > { %v2254_v41 = vpop.f32.mrf.mxu2  ;;  %v6119_v47 = vld [vmem:[#allocation3 + $0x79] sm:$0xff]  ;;  %2481 = vst.msk [vmem:[#allocation4 + $0x98] sm:$0xff] %vm279_vm0, %v6117_v19 }
 0x3f6   : > { %v6121_v6 = vld [vmem:[#allocation3 + $0x78] sm:$0xff]  ;;  %2407 = vst.msk [vmem:[#allocation3 + $0x81] sm:$0xff] %vm279_vm0, %v2374_v57  ;;  %v2316_v42 = vmul.f32 %v6005_v37, %v2254_v41  ;;  %2578 = vrot.lane.b32.xlu2 %v6119_v47, %s4622_s26 }
 0x3f7   : > { %v2227_v35 = vpop.f32.mrf.mxu0  ;;  %2472 = vst.msk [vmem:[#allocation4 + $0x50] sm:$0xff] %vm279_vm0, %v6121_v6 }
 0x3f8   : > { %v2352_v9 = vadd.f32 %v6010_v38, %v2316_v42  ;;  %v2307_v4 = vmul.f32 %v6005_v37, %v2227_v35 }
 0x3fa   : > { %v2384_v60 = vmax.f32 %v2352_v9, 0.0  ;;  %v2343_v14 = vadd.f32 %v6010_v38, %v2307_v4 }
 0x3fb   : > { %v6134_v17 = vld [vmem:[#allocation3 + $0xf0] sm:$0xff] }
 0x3fc   : > { %2417 = vst.msk [vmem:[#allocation3 + $0xf9] sm:$0xff] %vm279_vm0, %v2384_v60  ;;  %v2375_v23 = vmax.f32 %v2343_v14, 0.0 }
 0x3fd   : > { %v2257_v30 = vpop.f32.mrf.mxu2  ;;  %v6137_v11 = vld [vmem:[#allocation3 + $0x81] sm:$0xff]  ;;  %2482 = vst.msk [vmem:[#allocation4 + $0xa0] sm:$0xff] %vm279_vm0, %v6134_v17 }
 0x3fe   : > { %2408 = vst.msk [vmem:[#allocation3 + $0x91] sm:$0xff] %vm279_vm0, %v2375_v23  ;;  %v2317_v7 = vmul.f32 %v6005_v37, %v2257_v30  ;;  %2580 = vrot.lane.b32.xlu0 %v6137_v11, %s4622_s26  ;;  %v6146_v13 = vld [vmem:[#allocation3 + $0x80] sm:$0xff] }
 0x3ff   : > { %v2230_v16 = vpop.f32.mrf.mxu0  ;;  %2473 = vst.msk [vmem:[#allocation4 + $0x58] sm:$0xff] %vm279_vm0, %v6146_v13 }
 0x400   : > { %v2353_v3 = vadd.f32 %v6010_v38, %v2317_v7  ;;  %v2308_v58 = vmul.f32 %v6005_v37, %v2230_v16 }
 0x402   : > { %v2385_v26 = vmax.f32 %v2353_v3, 0.0  ;;  %v2344_v61 = vadd.f32 %v6010_v38, %v2308_v58 }
 0x403   : > { %v6156_v32 = vld [vmem:[#allocation3 + $0xf8] sm:$0xff] }
 0x404   : > { %2418 = vst.msk [vmem:[#allocation3 + $0x109] sm:$0xff] %vm279_vm0, %v2385_v26  ;;  %v2376_v2 = vmax.f32 %v2344_v61, 0.0 }
 0x405   : > { %v2260_v20 = vpop.f32.mrf.mxu2  ;;  %v6158_v54 = vld [vmem:[#allocation3 + $0x91] sm:$0xff]  ;;  %2483 = vst.msk [vmem:[#allocation4 + $0xa8] sm:$0xff] %vm279_vm0, %v6156_v32 }
 0x406   : > { %v6160_v63 = vld [vmem:[#allocation3 + $0x90] sm:$0xff]  ;;  %2409 = vst.msk [vmem:[#allocation3 + $0x99] sm:$0xff] %vm279_vm0, %v2376_v2  ;;  %v2318_v15 = vmul.f32 %v6005_v37, %v2260_v20  ;;  %2582 = vrot.lane.b32.xlu1 %v6158_v54, %s4622_s26 }
 0x407   : > { %v2233_v36 = vpop.f32.mrf.mxu0  ;;  %2474 = vst.msk [vmem:[#allocation4 + $0x60] sm:$0xff] %vm279_vm0, %v6160_v63 }
 0x408   : > { %v2354_v12 = vadd.f32 %v6010_v38, %v2318_v15  ;;  %v2309_v31 = vmul.f32 %v6005_v37, %v2233_v36 }
 0x40a   : > { %v2386_v44 = vmax.f32 %v2354_v12, 0.0  ;;  %v2345_v39 = vadd.f32 %v6010_v38, %v2309_v31 }
 0x40b   : > { %v6183_v59 = vld [vmem:[#allocation3 + $0x108] sm:$0xff] }
 0x40c   : > { %2419 = vst.msk [vmem:[#allocation3 + $0x111] sm:$0xff] %vm279_vm0, %v2386_v44  ;;  %v2377_v29 = vmax.f32 %v2345_v39, 0.0 }
 0x40d   : > { %v2263_v45 = vpop.f32.mrf.mxu2  ;;  %v6174_v50 = vld [vmem:[#allocation3 + $0x99] sm:$0xff]  ;;  %2484 = vst.msk [vmem:[#allocation4 + $0xb0] sm:$0xff] %vm279_vm0, %v6183_v59 }
 0x40e   : > { %v6177_v48 = vld [vmem:[#allocation3 + $0x98] sm:$0xff]  ;;  %2410 = vst.msk [vmem:[#allocation3 + $0xa9] sm:$0xff] %vm279_vm0, %v2377_v29  ;;  %v2319_v52 = vmul.f32 %v6005_v37, %v2263_v45  ;;  %2584 = vrot.lane.b32.xlu2 %v6174_v50, %s4622_s26 }
 0x40f   : > { %v2236_v1 = vpop.f32.mrf.mxu0  ;;  %2475 = vst.msk [vmem:[#allocation4 + $0x68] sm:$0xff] %vm279_vm0, %v6177_v48 }
 0x410   : > { %v2355_v34 = vadd.f32 %v6010_v38, %v2319_v52  ;;  %v2310_v57 = vmul.f32 %v6005_v37, %v2236_v1  ;;  %v6234_v52 = vld [vmem:[#allocation3 + $0xd9] sm:$0xff] }
 0x412   : > { %v2387_v41 = vmax.f32 %v2355_v34, 0.0  ;;  %v2346_v42 = vadd.f32 %v6010_v38, %v2310_v57 }
 0x413   : > { %v6194_v9 = vld [vmem:[#allocation3 + $0x110] sm:$0xff] }
 0x414   : > { %2420 = vst.msk [vmem:[#allocation3 + $0x121] sm:$0xff] %vm279_vm0, %v2387_v41  ;;  %v2378_v35 = vmax.f32 %v2346_v42, 0.0 }
 0x415   : > { %v2266_v4 = vpop.f32.mrf.mxu2  ;;  %v6196_v60 = vld [vmem:[#allocation3 + $0xa9] sm:$0xff]  ;;  %2485 = vst.msk [vmem:[#allocation4 + $0xb8] sm:$0xff] %vm279_vm0, %v6194_v9 }
 0x416   : > { %v6198_v14 = vld [vmem:[#allocation3 + $0xa8] sm:$0xff]  ;;  %2411 = vst.msk [vmem:[#allocation3 + $0xb1] sm:$0xff] %vm279_vm0, %v2378_v35  ;;  %v2320_v23 = vmul.f32 %v6005_v37, %v2266_v4  ;;  %2586 = vrot.lane.b32.xlu0 %v6196_v60, %s4622_s26 }
 0x417   : > { %v2239_v30 = vpop.f32.mrf.mxu0  ;;  %2476 = vst.msk [vmem:[#allocation4 + $0x70] sm:$0xff] %vm279_vm0, %v6198_v14 }
 0x418   : > { %v2356_v7 = vadd.f32 %v6010_v38, %v2320_v23  ;;  %v2311_v25 = vmul.f32 %v6005_v37, %v2239_v30  ;;  %v6254_v23 = vld [vmem:[#allocation3 + $0xf9] sm:$0xff]  ;;  %v6256_v30 = vld [vmem:[#allocation3 + $0xe1] sm:$0xff] }
 0x41a   : > { %v2388_v16 = vmax.f32 %v2356_v7, 0.0  ;;  %v2347_v40 = vadd.f32 %v6010_v38, %v2311_v25 }
 0x41b   : > { %v6211_v3 = vld [vmem:[#allocation3 + $0x120] sm:$0xff] }
 0x41c   : > { %2421 = vst.msk [vmem:[#allocation3 + $0x129] sm:$0xff] %vm279_vm0, %v2388_v16  ;;  %v2379_v58 = vmax.f32 %v2347_v40, 0.0  ;;  %v2072_v40 = vld [vmem:[#allocation4 + $0xf0] sm:$0xff] }
 0x41d   : > { %v2269_v10 = vpop.f32.mrf.mxu2  ;;  %v6214_v26 = vld [vmem:[#allocation3 + $0xb1] sm:$0xff]  ;;  %2486 = vst.msk [vmem:[#allocation4 + $0xc0] sm:$0xff] %vm279_vm0, %v6211_v3  ;;  %4543 = vmatmul.msk.f32.gmra.mxu2 %vm2079_vm12, %v2072_v40 }
 0x41e   : > { %2412 = vst.msk [vmem:[#allocation3 + $0xc1] sm:$0xff] %vm279_vm0, %v2379_v58  ;;  %v2321_v61 = vmul.f32 %v6005_v37, %v2269_v10  ;;  %2588 = vrot.lane.b32.xlu1 %v6214_v26, %s4622_s26  ;;  %v6222_v2 = vld [vmem:[#allocation3 + $0xb0] sm:$0xff] }
 0x41f   : > { %v2242_v20 = vpop.f32.mrf.mxu0  ;;  %2477 = vst.msk [vmem:[#allocation4 + $0x78] sm:$0xff] %vm279_vm0, %v6222_v2 }
 0x420   : > { %v2357_v36 = vadd.f32 %v6010_v38, %v2321_v61  ;;  %v2312_v12 = vmul.f32 %v6005_v37, %v2242_v20  ;;  %v2567_v31 = vpop.permute.xlu2 %2566 }
 0x421   : > { %2658 = vst.msk [vmem:[#allocation4 + $0x20] sm:$0xff] %vm657_vm3, %v2567_v31  ;;  %v6290_v31 = vld [vmem:[#allocation3 + $0xf1] sm:$0xff] }
 0x422   : > { %v2389_v44 = vmax.f32 %v2357_v36, 0.0  ;;  %v2348_v39 = vadd.f32 %v6010_v38, %v2312_v12  ;;  %v6281_v36 = vld [vmem:[#allocation3 + $0x109] sm:$0xff] }
 0x423   : > { %v6232_v49 = vld [vmem:[#allocation3 + $0x128] sm:$0xff] }
 0x424   : > { %v2563_v15 = vpop.permute.xlu0 %2562  ;;  %2422 = vst.msk [vmem:[#allocation3 + $0x139] sm:$0xff] %vm279_vm0, %v2389_v44  ;;  %v2380_v29 = vmax.f32 %v2348_v39, 0.0  ;;  %v2073_v44 = vld [vmem:[#allocation4 + $0xf8] sm:$0xff] }
 0x425   : > { %2656 = vst.msk [vmem:[#allocation4 + $0x10] sm:$0xff] %vm657_vm3, %v2563_v15  ;;  %v2272_v45 = vpop.f32.mrf.mxu2  ;;  %v6236_v51 = vld [vmem:[#allocation3 + $0xc1] sm:$0xff]  ;;  %4544 = vmatmul.msk.f32.gmra.mxu2 %vm2079_vm12, %v2073_v44 }
 0x426   : > { %v6238_v1 = vld [vmem:[#allocation3 + $0xc0] sm:$0xff]  ;;  %2487 = vst.msk [vmem:[#allocation4 + $0xc8] sm:$0xff] %vm279_vm0, %v6232_v49  ;;  %v2322_v34 = vmul.f32 %v6005_v37, %v2272_v45  ;;  %2594 = vrot.lane.b32.xlu1 %v6234_v52, %s4622_s26  ;;  %2590 = vrot.lane.b32.xlu2 %v6236_v51, %s4622_s26 }
 0x427   : > { %2413 = vst.msk [vmem:[#allocation3 + $0xc9] sm:$0xff] %vm279_vm0, %v2380_v29  ;;  %v6279_v15 = vld [vmem:[#allocation3 + $0x121] sm:$0xff] }
 0x428   : > { %2478 = vst.msk [vmem:[#allocation4 + $0x80] sm:$0xff] %vm279_vm0, %v6238_v1  ;;  %v2358_v57 = vadd.f32 %v6010_v38, %v2322_v34 }
 0x42a   : > { %v2390_v41 = vmax.f32 %v2358_v57, 0.0 }
 0x42b   : > { %v6251_v42 = vld [vmem:[#allocation3 + $0x138] sm:$0xff] }
 0x42c   : > { %2423 = vst.msk [vmem:[#allocation3 + $0x141] sm:$0xff] %vm279_vm0, %v2390_v41 }
 0x42d   : > { %v2275_v4 = vpop.f32.mrf.mxu2  ;;  %2488 = vst.msk [vmem:[#allocation4 + $0xd0] sm:$0xff] %vm279_vm0, %v6251_v42 }
 0x42e   : > { %v2565_v35 = vpop.permute.xlu1 %2564  ;;  %v6258_v7 = vld [vmem:[#allocation3 + $0xc9] sm:$0xff]  ;;  %v2323_v25 = vmul.f32 %v6005_v37, %v2275_v4  ;;  %2600 = vrot.lane.b32.xlu1 %v6254_v23, %s4622_s26  ;;  %2596 = vrot.lane.b32.xlu2 %v6256_v30, %s4622_s26 }
 0x42f   : > { %2657 = vst.msk [vmem:[#allocation4 + $0x18] sm:$0xff] %vm657_vm3, %v2565_v35  ;;  %v6266_v16 = vld [vmem:[#allocation3 + $0xc8] sm:$0xff]  ;;  %2592 = vrot.lane.b32.xlu0 %v6258_v7, %s4622_s26 }
 0x430   : > { %2479 = vst.msk [vmem:[#allocation4 + $0x88] sm:$0xff] %vm279_vm0, %v6266_v16  ;;  %v2359_v58 = vadd.f32 %v6010_v38, %v2323_v25  ;;  %v6302_v35 = vld [vmem:[#allocation3 + $0x129] sm:$0xff]  ;;  %v6311_v25 = vld [vmem:[#allocation3 + $0x111] sm:$0xff] }
 0x432   : > { %v2391_v10 = vmax.f32 %v2359_v58, 0.0 }
 0x433   : > { %v6277_v61 = vld [vmem:[#allocation3 + $0x140] sm:$0xff] }
 0x434   : > { %2424 = vst.msk [vmem:[#allocation3 + $0x151] sm:$0xff] %vm279_vm0, %v2391_v10  ;;  %v6300_v41 = vld [vmem:[#allocation3 + $0x141] sm:$0xff] }
 0x435   : > { %v2278_v20 = vpop.f32.mrf.mxu2  ;;  %2489 = vst.msk [vmem:[#allocation4 + $0xd8] sm:$0xff] %vm279_vm0, %v6277_v61 }
 0x436   : > { %v2324_v12 = vmul.f32 %v6005_v37, %v2278_v20  ;;  %2606 = vrot.lane.b32.xlu1 %v6279_v15, %s4622_s26  ;;  %2602 = vrot.lane.b32.xlu2 %v6281_v36, %s4622_s26 }
 0x437   : > { %2598 = vrot.lane.b32.xlu0 %v6290_v31, %s4622_s26 }
 0x438   : > { %v2360_v39 = vadd.f32 %v6010_v38, %v2324_v12  ;;  %v2573_v29 = vpop.permute.xlu2 %2572 }
 0x439   : > { %2661 = vst.msk [vmem:[#allocation4 + $0x38] sm:$0xff] %vm657_vm3, %v2573_v29  ;;  %v6327_v29 = vld [vmem:[#allocation3 + $0x139] sm:$0xff] }
 0x43a   : > { %v2392_v45 = vmax.f32 %v2360_v39, 0.0 }
 0x43b   : > { %v6297_v34 = vld [vmem:[#allocation3 + $0x150] sm:$0xff] }
 0x43c   : > { %2425 = vst.msk [vmem:[#allocation3 + $0x159] sm:$0xff] %vm279_vm0, %v2392_v45  ;;  %v6320_v44 = vld [vmem:[#allocation3 + $0x151] sm:$0xff] }
 0x43d   : > { %v2281_v57 = vpop.f32.mrf.mxu2  ;;  %2490 = vst.msk [vmem:[#allocation4 + $0xe0] sm:$0xff] %vm279_vm0, %v6297_v34 }
 0x43e   : > { %v2325_v4 = vmul.f32 %v6005_v37, %v2281_v57  ;;  %2612 = vrot.lane.b32.xlu1 %v6300_v41, %s4622_s26  ;;  %2608 = vrot.lane.b32.xlu2 %v6302_v35, %s4622_s26  ;;  %7437 = vst [vmem:[#allocation35_spill] sm:$0xff] %v6320_v44 }
 0x43f   : > { %2604 = vrot.lane.b32.xlu0 %v6311_v25, %s4622_s26 }
 0x440   : > { %v2361_v40 = vadd.f32 %v6010_v38, %v2325_v4  ;;  %v2569_v58 = vpop.permute.xlu0 %2568 }
 0x441   : > { %2659 = vst.msk [vmem:[#allocation4 + $0x28] sm:$0xff] %vm657_vm3, %v2569_v58 }
 0x442   : > { %v2393_v10 = vmax.f32 %v2361_v40, 0.0 }
 0x443   : > { %v6318_v20 = vld [vmem:[#allocation3 + $0x158] sm:$0xff] }
 0x444   : > { %2426 = vst.msk [vmem:[#allocation3 + $0x169] sm:$0xff] %vm279_vm0, %v2393_v10  ;;  %v6342_v10 = vld [vmem:[#allocation3 + $0x159] sm:$0xff] }
 0x445   : > { %v2284_v12 = vpop.f32.mrf.mxu2  ;;  %2491 = vst.msk [vmem:[#allocation4 + $0xe8] sm:$0xff] %vm279_vm0, %v6318_v20 }
 0x446   : > { %v2326_v39 = vmul.f32 %v6005_v37, %v2284_v12  ;;  %2614 = vrot.lane.b32.xlu2 %v6320_v44, %s4622_s26 }
 0x447   : > { %2610 = vrot.lane.b32.xlu0 %v6327_v29, %s4622_s26 }
 0x448   : > { %v2362_v45 = vadd.f32 %v6010_v38, %v2326_v39  ;;  %v2571_v57 = vpop.permute.xlu1 %2570  ;;  %v2687_v39 = vld [vmem:[#allocation3 + $0xa] sm:$0xff] }
 0x449   : > { %2660 = vst.msk [vmem:[#allocation4 + $0x30] sm:$0xff] %vm657_vm3, %v2571_v57  ;;  %v2686_v57 = vld [vmem:[#allocation3 + $0x2] sm:$0xff] }
 0x44a   : > { %v2394_v4 = vmax.f32 %v2362_v45, 0.0 }
 0x44b   : > { %v6333_v40 = vld [vmem:[#allocation3 + $0x169] sm:$0xff] }
 0x44c   : > { %7438 = vst [vmem:[#allocation40_spill] sm:$0xff] %v6333_v40  ;;  %v6335_v58 = vld [vmem:[#allocation3 + $0x168] sm:$0xff]  ;;  %2618 = vrot.lane.b32.xlu1 %v6333_v40, %s4622_s26 }
 0x44d   : > { %2427 = vst.msk [vmem:[#allocation3 + $0x171] sm:$0xff] %vm279_vm0, %v2394_v4  ;;  %v6439_v40 = vld [vmem:[#allocation3 + $0x10a] sm:$0xff] }
 0x44e   : > { %2492 = vst.msk [vmem:[#allocation4 + $0xf0] sm:$0xff] %vm279_vm0, %v6335_v58 }
 0x44f   : > { %2616 = vrot.lane.b32.xlu0 %v6342_v10, %s4622_s26  ;;  %7459 = vst [vmem:[#allocation56_spill] sm:$0xff] %v6439_v40 }
 0x450   : > { %v2579_v12 = vpop.permute.xlu2 %2578 }
 0x451   : > { %2664 = vst.msk [vmem:[#allocation4 + $0x50] sm:$0xff] %vm657_vm3, %v2579_v12  ;;  %v6358_v12 = vld [vmem:[#allocation3 + $0x32] sm:$0xff] }
 0x452   : > { %7440 = vst [vmem:[#allocation43_spill] sm:$0xff] %v6358_v12 }
 0x454   : > { %v6347_v45 = vld [vmem:[#allocation3 + $0x171] sm:$0xff]  ;;  %2752 = vrot.lane.b32.xlu1 %v2687_v39, %s4623_s8  ;;  %v6366_v39 = vld [vmem:[#allocation3 + $0x22] sm:$0xff] }
 0x455   : > { %7439 = vst [vmem:[#allocation36_spill] sm:$0xff] %v6347_v45  ;;  %2620 = vrot.lane.b32.xlu2 %v6347_v45, %s4622_s26  ;;  %v6352_v4 = vld [vmem:[#allocation3 + $0x170] sm:$0xff] }
 0x456   : > { %2493 = vst.msk [vmem:[#allocation4 + $0xf8] sm:$0xff] %vm279_vm0, %v6352_v4 }
 0x457   : > { %2750 = vrot.lane.b32.xlu0 %v2686_v57, %s4623_s8  ;;  %7442 = vst [vmem:[#allocation37_spill] sm:$0xff] %v6366_v39  ;;  %v6371_v57 = vld [vmem:[#allocation3 + $0x52] sm:$0xff] }
 0x458   : > { %v2575_v62 = vpop.permute.xlu0 %2574  ;;  %7443 = vst [vmem:[#allocation46_spill] sm:$0xff] %v6371_v57 }
 0x459   : > { %2662 = vst.msk [vmem:[#allocation4 + $0x40] sm:$0xff] %vm657_vm3, %v2575_v62  ;;  %v6373_v62 = vld [vmem:[#allocation3 + $0x3a] sm:$0xff] }
 0x45a   : > { %7444 = vst [vmem:[#allocation41_spill] sm:$0xff] %v6373_v62 }
 0x45c   : > { %2758 = vrot.lane.b32.xlu1 %v6358_v12, %s4623_s8  ;;  %v6379_v12 = vld [vmem:[#allocation3 + $0x4a] sm:$0xff] }
 0x45d   : > { %2754 = vrot.lane.b32.xlu2 %v6360_v21, %s4623_s8  ;;  %7445 = vst [vmem:[#allocation39_spill] sm:$0xff] %v6379_v12 }
 0x45f   : > { %2756 = vrot.lane.b32.xlu0 %v6366_v39, %s4623_s8  ;;  %v6384_v39 = vld [vmem:[#allocation3 + $0x7a] sm:$0xff] }
 0x460   : > { %v2577_v45 = vpop.permute.xlu1 %2576  ;;  %7446 = vst [vmem:[#allocation49_spill] sm:$0xff] %v6384_v39 }
 0x461   : > { %2663 = vst.msk [vmem:[#allocation4 + $0x48] sm:$0xff] %vm657_vm3, %v2577_v45  ;;  %v6386_v45 = vld [vmem:[#allocation3 + $0x62] sm:$0xff] }
 0x462   : > { %7447 = vst [vmem:[#allocation44_spill] sm:$0xff] %v6386_v45 }
 0x464   : > { %2764 = vrot.lane.b32.xlu1 %v6371_v57, %s4623_s8  ;;  %v6392_v57 = vld [vmem:[#allocation3 + $0x6a] sm:$0xff] }
 0x465   : > { %2760 = vrot.lane.b32.xlu2 %v6373_v62, %s4623_s8  ;;  %7448 = vst [vmem:[#allocation42_spill] sm:$0xff] %v6392_v57 }
 0x467   : > { %2762 = vrot.lane.b32.xlu0 %v6379_v12, %s4623_s8  ;;  %v6397_v12 = vld [vmem:[#allocation3 + $0x9a] sm:$0xff] }
 0x468   : > { %v2585_v21 = vpop.permute.xlu2 %2584  ;;  %7449 = vst [vmem:[#allocation52_spill] sm:$0xff] %v6397_v12 }
 0x469   : > { %2667 = vst.msk [vmem:[#allocation4 + $0x68] sm:$0xff] %vm657_vm3, %v2585_v21  ;;  %v6399_v21 = vld [vmem:[#allocation3 + $0x82] sm:$0xff] }
 0x46a   : > { %7450 = vst [vmem:[#allocation47_spill] sm:$0xff] %v6399_v21 }
 0x46c   : > { %2770 = vrot.lane.b32.xlu1 %v6384_v39, %s4623_s8  ;;  %v6405_v39 = vld [vmem:[#allocation3 + $0x92] sm:$0xff] }
 0x46d   : > { %2766 = vrot.lane.b32.xlu2 %v6386_v45, %s4623_s8  ;;  %7451 = vst [vmem:[#allocation45_spill] sm:$0xff] %v6405_v39 }
 0x46f   : > { %2768 = vrot.lane.b32.xlu0 %v6392_v57, %s4623_s8  ;;  %v6410_v57 = vld [vmem:[#allocation3 + $0xaa] sm:$0xff] }
 0x470   : > { %v2581_v62 = vpop.permute.xlu0 %2580  ;;  %7452 = vst [vmem:[#allocation55_spill] sm:$0xff] %v6410_v57 }
 0x471   : > { %2665 = vst.msk [vmem:[#allocation4 + $0x58] sm:$0xff] %vm657_vm3, %v2581_v62  ;;  %v6412_v62 = vld [vmem:[#allocation3 + $0xc2] sm:$0xff] }
 0x472   : > { %7453 = vst [vmem:[#allocation50_spill] sm:$0xff] %v6412_v62 }
 0x474   : > { %2776 = vrot.lane.b32.xlu1 %v6397_v12, %s4623_s8  ;;  %v6418_v12 = vld [vmem:[#allocation3 + $0xb2] sm:$0xff] }
 0x475   : > { %2772 = vrot.lane.b32.xlu2 %v6399_v21, %s4623_s8  ;;  %7454 = vst [vmem:[#allocation48_spill] sm:$0xff] %v6418_v12 }
 0x477   : > { %2774 = vrot.lane.b32.xlu0 %v6405_v39, %s4623_s8  ;;  %v6423_v39 = vld [vmem:[#allocation3 + $0xca] sm:$0xff] }
 0x478   : > { %v2583_v45 = vpop.permute.xlu1 %2582  ;;  %7455 = vst [vmem:[#allocation58_spill] sm:$0xff] %v6423_v39 }
 0x479   : > { %2666 = vst.msk [vmem:[#allocation4 + $0x60] sm:$0xff] %vm657_vm3, %v2583_v45  ;;  %v6425_v45 = vld [vmem:[#allocation3 + $0xe2] sm:$0xff] }
 0x47a   : > { %7456 = vst [vmem:[#allocation53_spill] sm:$0xff] %v6425_v45 }
 0x47c   : > { %2782 = vrot.lane.b32.xlu1 %v6412_v62, %s4623_s8 }
 0x47d   : > { %2778 = vrot.lane.b32.xlu2 %v6410_v57, %s4623_s8  ;;  %v6431_v57 = vld [vmem:[#allocation3 + $0xda] sm:$0xff] }
 0x47e   : > { %7457 = vst [vmem:[#allocation51_spill] sm:$0xff] %v6431_v57 }
 0x47f   : > { %2780 = vrot.lane.b32.xlu0 %v6418_v12, %s4623_s8 }
 0x480   : > { %v2591_v21 = vpop.permute.xlu2 %2590 }
 0x481   : > { %2670 = vst.msk [vmem:[#allocation4 + $0x80] sm:$0xff] %vm657_vm3, %v2591_v21  ;;  %v6437_v21 = vld [vmem:[#allocation3 + $0xf2] sm:$0xff] }
 0x482   : > { %7458 = vst [vmem:[#allocation61_spill] sm:$0xff] %v6437_v21 }
 0x484   : > { %2788 = vrot.lane.b32.xlu1 %v6425_v45, %s4623_s8  ;;  %v6445_v45 = vld [vmem:[#allocation3 + $0xfa] sm:$0xff] }
 0x485   : > { %2784 = vrot.lane.b32.xlu2 %v6423_v39, %s4623_s8  ;;  %7460 = vst [vmem:[#allocation54_spill] sm:$0xff] %v6445_v45 }
 0x487   : > { %2786 = vrot.lane.b32.xlu0 %v6431_v57, %s4623_s8 }
 0x488   : > { %v2587_v62 = vpop.permute.xlu0 %2586  ;;  %v2597_v12 = vpop.permute.xlu2 %2596 }
 0x489   : > { %2668 = vst.msk [vmem:[#allocation4 + $0x70] sm:$0xff] %vm657_vm3, %v2587_v62  ;;  %v6453_v62 = vld [vmem:[#allocation3 + $0x12a] sm:$0xff] }
 0x48a   : > { %2673 = vst.msk [vmem:[#allocation4 + $0x98] sm:$0xff] %vm657_vm3, %v2597_v12  ;;  %v6451_v12 = vld [vmem:[#allocation3 + $0x112] sm:$0xff] }
 0x48b   : > { %7461 = vst [vmem:[#allocation64_spill] sm:$0xff] %v6451_v12 }
 0x48c   : > { %2794 = vrot.lane.b32.xlu1 %v6439_v40, %s4623_s8  ;;  %7462 = vst [vmem:[#allocation59_spill] sm:$0xff] %v6453_v62  ;;  %v6459_v40 = vld [vmem:[#allocation3 + $0x122] sm:$0xff] }
 0x48d   : > { %2790 = vrot.lane.b32.xlu2 %v6437_v21, %s4623_s8  ;;  %7463 = vst [vmem:[#allocation57_spill] sm:$0xff] %v6459_v40 }
 0x48f   : > { %2792 = vrot.lane.b32.xlu0 %v6445_v45, %s4623_s8 }
 0x490   : > { %v2589_v39 = vpop.permute.xlu1 %2588  ;;  %v2603_v57 = vpop.permute.xlu2 %2602 }
 0x491   : > { %2669 = vst.msk [vmem:[#allocation4 + $0x78] sm:$0xff] %vm657_vm3, %v2589_v39  ;;  %v6465_v39 = vld [vmem:[#allocation3 + $0x13a] sm:$0xff] }
 0x492   : > { %2676 = vst.msk [vmem:[#allocation4 + $0xb0] sm:$0xff] %vm657_vm3, %v2603_v57  ;;  %v2714_v57 = vld [vmem:[#allocation3 + $0x152] sm:$0xff] }
 0x493   : > { %7464 = vst [vmem:[#allocation62_spill] sm:$0xff] %v6465_v39 }
 0x494   : > { %2800 = vrot.lane.b32.xlu1 %v6453_v62, %s4623_s8  ;;  %v2713_v62 = vld [vmem:[#allocation3 + $0x142] sm:$0xff] }
 0x495   : > { %2796 = vrot.lane.b32.xlu2 %v6451_v12, %s4623_s8 }
 0x497   : > { %2798 = vrot.lane.b32.xlu0 %v6459_v40, %s4623_s8 }
 0x498   : > { %v2595_v21 = vpop.permute.xlu1 %2594  ;;  %v2609_v45 = vpop.permute.xlu2 %2608 }
 0x499   : > { %2672 = vst.msk [vmem:[#allocation4 + $0x90] sm:$0xff] %vm657_vm3, %v2595_v21  ;;  %v2717_v21 = vld [vmem:[#allocation3 + $0x172] sm:$0xff] }
 0x49a   : > { %2679 = vst.msk [vmem:[#allocation4 + $0xc8] sm:$0xff] %vm657_vm3, %v2609_v45  ;;  %v2715_v45 = vld [vmem:[#allocation3 + $0x15a] sm:$0xff] }
 0x49c   : > { %2806 = vrot.lane.b32.xlu1 %v2714_v57, %s4623_s8 }
 0x49d   : > { %2802 = vrot.lane.b32.xlu2 %v6465_v39, %s4623_s8  ;;  %v2716_v39 = vld [vmem:[#allocation3 + $0x16a] sm:$0xff] }
 0x49f   : > { %2804 = vrot.lane.b32.xlu0 %v2713_v62, %s4623_s8 }
 0x4a0   : > { %v2601_v12 = vpop.permute.xlu1 %2600  ;;  %v2615_v44 = vpop.permute.xlu2 %2614 }
 0x4a1   : > { %2675 = vst.msk [vmem:[#allocation4 + $0xa8] sm:$0xff] %vm657_vm3, %v2601_v12  ;;  %v2593_v40 = vpop.permute.xlu0 %2592 }
 0x4a2   : > { %2682 = vst.msk [vmem:[#allocation4 + $0xe0] sm:$0xff] %vm657_vm3, %v2615_v44 }
 0x4a3   : > { %2671 = vst.msk [vmem:[#allocation4 + $0x88] sm:$0xff] %vm657_vm3, %v2593_v40 }
 0x4a4   : > { %2812 = vrot.lane.b32.xlu1 %v2717_v21, %s4623_s8 }
 0x4a5   : > { %2808 = vrot.lane.b32.xlu2 %v2715_v45, %s4623_s8 }
 0x4a7   : > { %2810 = vrot.lane.b32.xlu0 %v2716_v39, %s4623_s8 }
 0x4a8   : > { %v2607_v57 = vpop.permute.xlu1 %2606 }
 0x4a9   : > { %2678 = vst.msk [vmem:[#allocation4 + $0xc0] sm:$0xff] %vm657_vm3, %v2607_v57  ;;  %v2599_v62 = vpop.permute.xlu0 %2598 }
 0x4aa   : > { %2674 = vst.msk [vmem:[#allocation4 + $0xa0] sm:$0xff] %vm657_vm3, %v2599_v62 }
 0x4ac   : > { %2946 = vrot.lane.b32.xlu1 %v6040_v5, %s4624_s9 }
 0x4ad   : > { %2942 = vrot.lane.b32.xlu2 %v6020_v56, %s4624_s9 }
 0x4af   : > { %v2621_v44 = vpop.permute.xlu2 %2620  ;;  %2944 = vrot.lane.b32.xlu0 %v6029_v55, %s4624_s9 }
 0x4b0   : > { %2685 = vst.msk [vmem:[#allocation4 + $0xf8] sm:$0xff] %vm657_vm3, %v2621_v44  ;;  %v2613_v40 = vpop.permute.xlu1 %2612 }
 0x4b1   : > { %2681 = vst.msk [vmem:[#allocation4 + $0xd8] sm:$0xff] %vm657_vm3, %v2613_v40  ;;  %v2605_v12 = vpop.permute.xlu0 %2604 }
 0x4b2   : > { %2677 = vst.msk [vmem:[#allocation4 + $0xb8] sm:$0xff] %vm657_vm3, %v2605_v12 }
 0x4b4   : > { %2952 = vrot.lane.b32.xlu1 %v6074_v18, %s4624_s9  ;;  %v2287_v18 = vpop.f32.mrf.mxu2 }
 0x4b5   : > { %2948 = vrot.lane.b32.xlu2 %v6050_v46, %s4624_s9  ;;  %v2327_v39 = vmul.f32 %v6005_v37, %v2287_v18  ;;  %v3070_v18 = vld [vmem:[#allocation3 + $0x19] sm:$0xff] }
 0x4b7   : > { %v2755_v56 = vpop.permute.xlu2 %2754  ;;  %2950 = vrot.lane.b32.xlu0 %v6061_v8, %s4624_s9 }
 0x4b8   : > { %2848 = vst.msk [vmem:[#allocation4 + $0x10] sm:$0xff] %vm850_vm4, %v2755_v56 }
 0x4b9   : > { %v2611_v5 = vpop.permute.xlu0 %2610 }
 0x4ba   : > { %2680 = vst.msk [vmem:[#allocation4 + $0xd0] sm:$0xff] %vm657_vm3, %v2611_v5 }
 0x4bc   : > { %2958 = vrot.lane.b32.xlu1 %v6121_v6, %s4624_s9 }
 0x4bd   : > { %2954 = vrot.lane.b32.xlu2 %v6086_v24, %s4624_s9  ;;  %v2363_v24 = vadd.f32 %v6010_v38, %v2327_v39  ;;  %v3071_v39 = vld [vmem:[#allocation3 + $0x21] sm:$0xff] }
 0x4be   : > { %v2619_v55 = vpop.permute.xlu1 %2618 }
 0x4bf   : > { %v2761_v46 = vpop.permute.xlu2 %2760  ;;  %2684 = vst.msk [vmem:[#allocation4 + $0xf0] sm:$0xff] %vm657_vm3, %v2619_v55  ;;  %2956 = vrot.lane.b32.xlu0 %v6104_v53, %s4624_s9  ;;  %v2395_v6 = vmax.f32 %v2363_v24, 0.0  ;;  %v2290_v53 = vpop.f32.mrf.mxu2 }
 0x4c0   : > { %2851 = vst.msk [vmem:[#allocation4 + $0x28] sm:$0xff] %vm850_vm4, %v2761_v46  ;;  %v2328_v62 = vmul.f32 %v6005_v37, %v2290_v53 }
 0x4c1   : > { %v2617_v8 = vpop.permute.xlu0 %2616  ;;  %2428 = vst.msk [vmem:[#allocation3 + $0x181] sm:$0xff] %vm279_vm0, %v2395_v6 }
 0x4c2   : > { %2683 = vst.msk [vmem:[#allocation4 + $0xe8] sm:$0xff] %vm657_vm3, %v2617_v8 }
 0x4c4   : > { %2964 = vrot.lane.b32.xlu1 %v6177_v48, %s4624_s9 }
 0x4c5   : > { %2960 = vrot.lane.b32.xlu2 %v6146_v13, %s4624_s9  ;;  %v2364_v13 = vadd.f32 %v6010_v38, %v2328_v62  ;;  %v7465_v62 = vld [vmem:[#allocation35_spill] sm:$0xff] }
 0x4c6   : > { %v2753_v45 = vpop.permute.xlu1 %2752 }
 0x4c7   : > { %v2767_v21 = vpop.permute.xlu2 %2766  ;;  %2847 = vst.msk [vmem:[#allocation4 + $0x8] sm:$0xff] %vm850_vm4, %v2753_v45  ;;  %2962 = vrot.lane.b32.xlu0 %v6160_v63, %s4624_s9  ;;  %v2396_v48 = vmax.f32 %v2364_v13, 0.0  ;;  %v6583_v45 = vld [vmem:[#allocation3 + $0x31] sm:$0xff] }
 0x4c8   : > { %2854 = vst.msk [vmem:[#allocation4 + $0x40] sm:$0xff] %vm850_vm4, %v2767_v21  ;;  %v2908_v46 = vld [vmem:[#allocation3 + $0x180] sm:$0xff] }
 0x4c9   : > { %v2751_v57 = vpop.permute.xlu0 %2750  ;;  %2429 = vst.msk [vmem:[#allocation3 + $0x189] sm:$0xff] %vm279_vm0, %v2396_v48  ;;  %v6662_v13 = vld [vmem:[#allocation3 + $0x181] sm:$0xff] }
 0x4ca   : > { %2846 = vst.msk [vmem:[#allocation4] sm:$0xff] %vm850_vm4, %v2751_v57  ;;  %v7466_v48 = vld [vmem:[#allocation40_spill] sm:$0xff] }
 0x4cc   : > { %2970 = vrot.lane.b32.xlu1 %v6238_v1, %s4624_s9 }
 0x4cd   : > { %2966 = vrot.lane.b32.xlu2 %v6198_v14, %s4624_s9 }
 0x4ce   : > { %v2759_v63 = vpop.permute.xlu1 %2758 }
 0x4cf   : > { %v2773_v44 = vpop.permute.xlu2 %2772  ;;  %2850 = vst.msk [vmem:[#allocation4 + $0x20] sm:$0xff] %vm850_vm4, %v2759_v63  ;;  %2968 = vrot.lane.b32.xlu0 %v6222_v2, %s4624_s9  ;;  %v7467_v63 = vld [vmem:[#allocation36_spill] sm:$0xff] }
 0x4d0   : > { %2857 = vst.msk [vmem:[#allocation4 + $0x58] sm:$0xff] %vm850_vm4, %v2773_v44  ;;  %v2909_v8 = vld [vmem:[#allocation3 + $0x188] sm:$0xff] }
 0x4d1   : > { %v2757_v37 = vpop.permute.xlu0 %2756 }
 0x4d2   : > { %2849 = vst.msk [vmem:[#allocation4 + $0x18] sm:$0xff] %vm850_vm4, %v2757_v37  ;;  %v6673_v37 = vld [vmem:[#allocation3 + $0x189] sm:$0xff] }
 0x4d4   : > { %2976 = vrot.lane.b32.xlu1 %v6117_v19, %s4624_s9 }
 0x4d5   : > { %2972 = vrot.lane.b32.xlu2 %v6266_v16, %s4624_s9 }
 0x4d6   : > { %v2765_v38 = vpop.permute.xlu1 %2764 }
 0x4d7   : > { %v2779_v14 = vpop.permute.xlu2 %2778  ;;  %2853 = vst.msk [vmem:[#allocation4 + $0x38] sm:$0xff] %vm850_vm4, %v2765_v38  ;;  %2974 = vrot.lane.b32.xlu0 %v6094_v33, %s4624_s9  ;;  %v7468_v38 = vld [vmem:[#allocation37_spill] sm:$0xff] }
 0x4d8   : > { %2860 = vst.msk [vmem:[#allocation4 + $0x70] sm:$0xff] %vm850_vm4, %v2779_v14 }
 0x4d9   : > { %v2763_v2 = vpop.permute.xlu0 %2762 }
 0x4da   : > { %2852 = vst.msk [vmem:[#allocation4 + $0x30] sm:$0xff] %vm850_vm4, %v2763_v2 }
 0x4dc   : > { %2982 = vrot.lane.b32.xlu1 %v6183_v59, %s4624_s9 }
 0x4dd   : > { %2978 = vrot.lane.b32.xlu2 %v6134_v17, %s4624_s9 }
 0x4de   : > { %v2771_v1 = vpop.permute.xlu1 %2770 }
 0x4df   : > { %v2785_v19 = vpop.permute.xlu2 %2784  ;;  %2856 = vst.msk [vmem:[#allocation4 + $0x50] sm:$0xff] %vm850_vm4, %v2771_v1  ;;  %2980 = vrot.lane.b32.xlu0 %v6156_v32, %s4624_s9  ;;  %v7469_v1 = vld [vmem:[#allocation38_spill] sm:$0xff] }
 0x4e0   : > { %2863 = vst.msk [vmem:[#allocation4 + $0x88] sm:$0xff] %vm850_vm4, %v2785_v19 }
 0x4e1   : > { %v2769_v33 = vpop.permute.xlu0 %2768 }
 0x4e2   : > { %2855 = vst.msk [vmem:[#allocation4 + $0x48] sm:$0xff] %vm850_vm4, %v2769_v33  ;;  %v7470_v33 = vld [vmem:[#allocation43_spill] sm:$0xff] }
 0x4e4   : > { %2988 = vrot.lane.b32.xlu1 %v6232_v49, %s4624_s9 }
 0x4e5   : > { %2984 = vrot.lane.b32.xlu2 %v6194_v9, %s4624_s9 }
 0x4e6   : > { %v2777_v16 = vpop.permute.xlu1 %2776 }
 0x4e7   : > { %v2791_v40 = vpop.permute.xlu2 %2790  ;;  %2859 = vst.msk [vmem:[#allocation4 + $0x68] sm:$0xff] %vm850_vm4, %v2777_v16  ;;  %2986 = vrot.lane.b32.xlu0 %v6211_v3, %s4624_s9  ;;  %v7471_v16 = vld [vmem:[#allocation39_spill] sm:$0xff] }
 0x4e8   : > { %2866 = vst.msk [vmem:[#allocation4 + $0xa0] sm:$0xff] %vm850_vm4, %v2791_v40 }
 0x4e9   : > { %v2775_v12 = vpop.permute.xlu0 %2774 }
 0x4ea   : > { %2858 = vst.msk [vmem:[#allocation4 + $0x60] sm:$0xff] %vm850_vm4, %v2775_v12 }
 0x4ec   : > { %2994 = vrot.lane.b32.xlu1 %v6297_v34, %s4624_s9 }
 0x4ed   : > { %2990 = vrot.lane.b32.xlu2 %v6251_v42, %s4624_s9 }
 0x4ee   : > { %v2783_v49 = vpop.permute.xlu1 %2782 }
 0x4ef   : > { %v2797_v56 = vpop.permute.xlu2 %2796  ;;  %2992 = vrot.lane.b32.xlu0 %v6277_v61, %s4624_s9  ;;  %2862 = vst.msk [vmem:[#allocation4 + $0x80] sm:$0xff] %vm850_vm4, %v2783_v49 }
 0x4f0   : > { %2869 = vst.msk [vmem:[#allocation4 + $0xb8] sm:$0xff] %vm850_vm4, %v2797_v56  ;;  %v7472_v56 = vld [vmem:[#allocation41_spill] sm:$0xff] }
 0x4f1   : > { %v2781_v5 = vpop.permute.xlu0 %2780 }
 0x4f2   : > { %2861 = vst.msk [vmem:[#allocation4 + $0x78] sm:$0xff] %vm850_vm4, %v2781_v5  ;;  %v7473_v5 = vld [vmem:[#allocation46_spill] sm:$0xff] }
 0x4f4   : > { %3000 = vrot.lane.b32.xlu1 %v6352_v4, %s4624_s9 }
 0x4f5   : > { %2996 = vrot.lane.b32.xlu2 %v6318_v20, %s4624_s9 }
 0x4f6   : > { %v2789_v34 = vpop.permute.xlu1 %2788 }
 0x4f7   : > { %v2803_v55 = vpop.permute.xlu2 %2802  ;;  %2998 = vrot.lane.b32.xlu0 %v6335_v58, %s4624_s9  ;;  %2865 = vst.msk [vmem:[#allocation4 + $0x98] sm:$0xff] %vm850_vm4, %v2789_v34 }
 0x4f8   : > { %2872 = vst.msk [vmem:[#allocation4 + $0xd0] sm:$0xff] %vm850_vm4, %v2803_v55  ;;  %v7474_v55 = vld [vmem:[#allocation42_spill] sm:$0xff] }
 0x4f9   : > { %v2787_v61 = vpop.permute.xlu0 %2786 }
 0x4fa   : > { %2864 = vst.msk [vmem:[#allocation4 + $0x90] sm:$0xff] %vm850_vm4, %v2787_v61 }
 0x4fc   : > { %3134 = vrot.lane.b32.xlu1 %v3070_v18, %s4625_s10 }
 0x4fd   : > { %3002 = vrot.lane.b32.xlu2 %v2908_v46, %s4624_s9  ;;  %v7475_v46 = vld [vmem:[#allocation44_spill] sm:$0xff] }
 0x4fe   : > { %v2795_v4 = vpop.permute.xlu1 %2794 }
 0x4ff   : > { %v2809_v20 = vpop.permute.xlu2 %2808  ;;  %3004 = vrot.lane.b32.xlu0 %v2909_v8, %s4624_s9  ;;  %2868 = vst.msk [vmem:[#allocation4 + $0xb0] sm:$0xff] %vm850_vm4, %v2795_v4  ;;  %v7477_v4 = vld [vmem:[#allocation45_spill] sm:$0xff] }
 0x500   : > { %2875 = vst.msk [vmem:[#allocation4 + $0xe8] sm:$0xff] %vm850_vm4, %v2809_v20  ;;  %v7476_v20 = vld [vmem:[#allocation49_spill] sm:$0xff] }
 0x501   : > { %v2793_v58 = vpop.permute.xlu0 %2792 }
 0x502   : > { %2867 = vst.msk [vmem:[#allocation4 + $0xa8] sm:$0xff] %vm850_vm4, %v2793_v58 }
 0x504   : > { %3140 = vrot.lane.b32.xlu1 %v6048_v28, %s4625_s10 }
 0x505   : > { %3136 = vrot.lane.b32.xlu2 %v3071_v39, %s4625_s10  ;;  %v7478_v39 = vld [vmem:[#allocation47_spill] sm:$0xff] }
 0x506   : > { %v2801_v6 = vpop.permute.xlu1 %2800 }
 0x507   : > { %v2943_v24 = vpop.permute.xlu2 %2942  ;;  %3138 = vrot.lane.b32.xlu0 %v6583_v45, %s4625_s10  ;;  %2871 = vst.msk [vmem:[#allocation4 + $0xc8] sm:$0xff] %vm850_vm4, %v2801_v6  ;;  %v7479_v6 = vld [vmem:[#allocation52_spill] sm:$0xff] }
 0x508   : > { %3038 = vst.msk [vmem:[#allocation4] sm:$0xff] %vm1043_vm5, %v2943_v24 }
 0x509   : > { %v2799_v21 = vpop.permute.xlu0 %2798 }
 0x50a   : > { %2870 = vst.msk [vmem:[#allocation4 + $0xc0] sm:$0xff] %vm850_vm4, %v2799_v21  ;;  %v7480_v21 = vld [vmem:[#allocation48_spill] sm:$0xff] }
 0x50c   : > { %3146 = vrot.lane.b32.xlu1 %v6084_v27, %s4625_s10 }
 0x50d   : > { %3142 = vrot.lane.b32.xlu2 %v6059_v22, %s4625_s10 }
 0x50e   : > { %v2807_v53 = vpop.permute.xlu1 %2806 }
 0x50f   : > { %v2949_v28 = vpop.permute.xlu2 %2948  ;;  %3144 = vrot.lane.b32.xlu0 %v6072_v0, %s4625_s10  ;;  %2874 = vst.msk [vmem:[#allocation4 + $0xe0] sm:$0xff] %vm850_vm4, %v2807_v53 }
 0x510   : > { %3041 = vst.msk [vmem:[#allocation4 + $0x18] sm:$0xff] %vm1043_vm5, %v2949_v28 }
 0x511   : > { %v2805_v57 = vpop.permute.xlu0 %2804 }
 0x512   : > { %2873 = vst.msk [vmem:[#allocation4 + $0xd8] sm:$0xff] %vm850_vm4, %v2805_v57  ;;  %v7481_v57 = vld [vmem:[#allocation55_spill] sm:$0xff] }
 0x514   : > { %3152 = vrot.lane.b32.xlu1 %v6137_v11, %s4625_s10 }
 0x515   : > { %3148 = vrot.lane.b32.xlu2 %v6102_v43, %s4625_s10 }
 0x516   : > { %v2813_v27 = vpop.permute.xlu1 %2812 }
 0x517   : > { %v2955_v22 = vpop.permute.xlu2 %2954  ;;  %3150 = vrot.lane.b32.xlu0 %v6119_v47, %s4625_s10  ;;  %2877 = vst.msk [vmem:[#allocation4 + $0xf8] sm:$0xff] %vm850_vm4, %v2813_v27  ;;  %v7482_v27 = vld [vmem:[#allocation50_spill] sm:$0xff] }
 0x518   : > { %3044 = vst.msk [vmem:[#allocation4 + $0x30] sm:$0xff] %vm1043_vm5, %v2955_v22 }
 0x519   : > { %v2811_v0 = vpop.permute.xlu0 %2810 }
 0x51a   : > { %2876 = vst.msk [vmem:[#allocation4 + $0xf0] sm:$0xff] %vm850_vm4, %v2811_v0  ;;  %v7483_v0 = vld [vmem:[#allocation51_spill] sm:$0xff] }
 0x51c   : > { %3158 = vrot.lane.b32.xlu1 %v6196_v60, %s4625_s10 }
 0x51d   : > { %3154 = vrot.lane.b32.xlu2 %v6158_v54, %s4625_s10 }
 0x51e   : > { %v2947_v11 = vpop.permute.xlu1 %2946 }
 0x51f   : > { %v2961_v43 = vpop.permute.xlu2 %2960  ;;  %3156 = vrot.lane.b32.xlu0 %v6174_v50, %s4625_s10  ;;  %3040 = vst.msk [vmem:[#allocation4 + $0x10] sm:$0xff] %vm1043_vm5, %v2947_v11 }
 0x520   : > { %3047 = vst.msk [vmem:[#allocation4 + $0x48] sm:$0xff] %vm1043_vm5, %v2961_v43 }
 0x521   : > { %v2945_v47 = vpop.permute.xlu0 %2944 }
 0x522   : > { %3039 = vst.msk [vmem:[#allocation4 + $0x8] sm:$0xff] %vm1043_vm5, %v2945_v47  ;;  %v7484_v47 = vld [vmem:[#allocation58_spill] sm:$0xff] }
 0x524   : > { %3164 = vrot.lane.b32.xlu1 %v6258_v7, %s4625_s10 }
 0x525   : > { %3160 = vrot.lane.b32.xlu2 %v6214_v26, %s4625_s10 }
 0x526   : > { %v2953_v60 = vpop.permute.xlu1 %2952 }
 0x527   : > { %v2967_v54 = vpop.permute.xlu2 %2966  ;;  %3162 = vrot.lane.b32.xlu0 %v6236_v51, %s4625_s10  ;;  %3043 = vst.msk [vmem:[#allocation4 + $0x28] sm:$0xff] %vm1043_vm5, %v2953_v60  ;;  %v7485_v60 = vld [vmem:[#allocation53_spill] sm:$0xff] }
 0x528   : > { %3050 = vst.msk [vmem:[#allocation4 + $0x60] sm:$0xff] %vm1043_vm5, %v2967_v54 }
 0x529   : > { %v2951_v50 = vpop.permute.xlu0 %2950 }
 0x52a   : > { %3042 = vst.msk [vmem:[#allocation4 + $0x20] sm:$0xff] %vm1043_vm5, %v2951_v50  ;;  %v7486_v50 = vld [vmem:[#allocation54_spill] sm:$0xff] }
 0x52c   : > { %3170 = vrot.lane.b32.xlu1 %v6290_v31, %s4625_s10 }
 0x52d   : > { %3166 = vrot.lane.b32.xlu2 %v6234_v52, %s4625_s10 }
 0x52e   : > { %v2959_v7 = vpop.permute.xlu1 %2958 }
 0x52f   : > { %v2973_v26 = vpop.permute.xlu2 %2972  ;;  %3168 = vrot.lane.b32.xlu0 %v6256_v30, %s4625_s10  ;;  %3046 = vst.msk [vmem:[#allocation4 + $0x40] sm:$0xff] %vm1043_vm5, %v2959_v7 }
 0x530   : > { %3053 = vst.msk [vmem:[#allocation4 + $0x78] sm:$0xff] %vm1043_vm5, %v2973_v26 }
 0x531   : > { %v2957_v51 = vpop.permute.xlu0 %2956 }
 0x532   : > { %3045 = vst.msk [vmem:[#allocation4 + $0x38] sm:$0xff] %vm1043_vm5, %v2957_v51  ;;  %v7487_v51 = vld [vmem:[#allocation61_spill] sm:$0xff] }
 0x534   : > { %3176 = vrot.lane.b32.xlu1 %v6311_v25, %s4625_s10 }
 0x535   : > { %3172 = vrot.lane.b32.xlu2 %v6254_v23, %s4625_s10 }
 0x536   : > { %v2965_v31 = vpop.permute.xlu1 %2964 }
 0x537   : > { %v2979_v52 = vpop.permute.xlu2 %2978  ;;  %3174 = vrot.lane.b32.xlu0 %v6281_v36, %s4625_s10  ;;  %3049 = vst.msk [vmem:[#allocation4 + $0x58] sm:$0xff] %vm1043_vm5, %v2965_v31  ;;  %v7488_v31 = vld [vmem:[#allocation56_spill] sm:$0xff] }
 0x538   : > { %3056 = vst.msk [vmem:[#allocation4 + $0x90] sm:$0xff] %vm1043_vm5, %v2979_v52 }
 0x539   : > { %v2963_v30 = vpop.permute.xlu0 %2962 }
 0x53a   : > { %3048 = vst.msk [vmem:[#allocation4 + $0x50] sm:$0xff] %vm1043_vm5, %v2963_v30  ;;  %v7489_v30 = vld [vmem:[#allocation57_spill] sm:$0xff] }
 0x53c   : > { %3182 = vrot.lane.b32.xlu1 %v6327_v29, %s4625_s10 }
 0x53d   : > { %3178 = vrot.lane.b32.xlu2 %v6279_v15, %s4625_s10 }
 0x53e   : > { %v2971_v25 = vpop.permute.xlu1 %2970 }
 0x53f   : > { %v2985_v23 = vpop.permute.xlu2 %2984  ;;  %3180 = vrot.lane.b32.xlu0 %v6302_v35, %s4625_s10  ;;  %3052 = vst.msk [vmem:[#allocation4 + $0x70] sm:$0xff] %vm1043_vm5, %v2971_v25 }
 0x540   : > { %3059 = vst.msk [vmem:[#allocation4 + $0xa8] sm:$0xff] %vm1043_vm5, %v2985_v23 }
 0x541   : > { %v2969_v36 = vpop.permute.xlu0 %2968 }
 0x542   : > { %3051 = vst.msk [vmem:[#allocation4 + $0x68] sm:$0xff] %vm1043_vm5, %v2969_v36  ;;  %v7490_v36 = vld [vmem:[#allocation64_spill] sm:$0xff] }
 0x544   : > { %3188 = vrot.lane.b32.xlu1 %v6342_v10, %s4625_s10 }
 0x545   : > { %3184 = vrot.lane.b32.xlu2 %v6300_v41, %s4625_s10 }
 0x546   : > { %v2977_v29 = vpop.permute.xlu1 %2976 }
 0x547   : > { %v2991_v15 = vpop.permute.xlu2 %2990  ;;  %3186 = vrot.lane.b32.xlu0 %v7465_v62, %s4625_s10  ;;  %3055 = vst.msk [vmem:[#allocation4 + $0x88] sm:$0xff] %vm1043_vm5, %v2977_v29  ;;  %v7491_v29 = vld [vmem:[#allocation59_spill] sm:$0xff] }
 0x548   : > { %3062 = vst.msk [vmem:[#allocation4 + $0xc0] sm:$0xff] %vm1043_vm5, %v2991_v15 }
 0x549   : > { %v2975_v35 = vpop.permute.xlu0 %2974 }
 0x54a   : > { %3054 = vst.msk [vmem:[#allocation4 + $0x80] sm:$0xff] %vm1043_vm5, %v2975_v35 }
 0x54c   : > { %3194 = vrot.lane.b32.xlu1 %v6662_v13, %s4625_s10 }
 0x54d   : > { %3190 = vrot.lane.b32.xlu2 %v7466_v48, %s4625_s10  ;;  %v7492_v48 = vld [vmem:[#allocation62_spill] sm:$0xff] }
 0x54e   : > { %v2983_v10 = vpop.permute.xlu1 %2982 }
 0x54f   : > { %v2997_v41 = vpop.permute.xlu2 %2996  ;;  %3192 = vrot.lane.b32.xlu0 %v7467_v63, %s4625_s10  ;;  %3058 = vst.msk [vmem:[#allocation4 + $0xa0] sm:$0xff] %vm1043_vm5, %v2983_v10  ;;  %v3663_v10 = vld [vmem:[#allocation3 + $0xf1] sm:$0xff] }
 0x550   : > { %3065 = vst.msk [vmem:[#allocation4 + $0xd8] sm:$0xff] %vm1043_vm5, %v2997_v41  ;;  %v3455_v63 = vld [vmem:[#allocation3 + $0x30] sm:$0xff] }
 0x551   : > { %v2981_v44 = vpop.permute.xlu0 %2980 }
 0x552   : > { %3057 = vst.msk [vmem:[#allocation4 + $0x98] sm:$0xff] %vm1043_vm5, %v2981_v44 }
 0x554   : > { %3328 = vrot.lane.b32.xlu1 %v7468_v38, %s4626_s11 }
 0x555   : > { %3196 = vrot.lane.b32.xlu2 %v6673_v37, %s4625_s10 }
 0x556   : > { %v2989_v2 = vpop.permute.xlu1 %2988 }
 0x557   : > { %v3003_v14 = vpop.permute.xlu2 %3002  ;;  %3326 = vrot.lane.b32.xlu0 %v7469_v1, %s4626_s11  ;;  %3061 = vst.msk [vmem:[#allocation4 + $0xb8] sm:$0xff] %vm1043_vm5, %v2989_v2 }
 0x558   : > { %3068 = vst.msk [vmem:[#allocation4 + $0xf0] sm:$0xff] %vm1043_vm5, %v3003_v14  ;;  %v3839_v14 = vld [vmem:[#allocation3 + $0x32] sm:$0xff] }
 0x559   : > { %v2987_v19 = vpop.permute.xlu0 %2986 }
 0x55a   : > { %3060 = vst.msk [vmem:[#allocation4 + $0xb0] sm:$0xff] %vm1043_vm5, %v2987_v19 }
 0x55c   : > { %3334 = vrot.lane.b32.xlu1 %v7471_v16, %s4626_s11  ;;  %v3456_v16 = vld [vmem:[#allocation3 + $0x38] sm:$0xff] }
 0x55d   : > { %3330 = vrot.lane.b32.xlu2 %v7470_v33, %s4626_s11  ;;  %v3664_v33 = vld [vmem:[#allocation3 + $0xf9] sm:$0xff] }
 0x55e   : > { %v2995_v12 = vpop.permute.xlu1 %2994 }
 0x55f   : > { %v3137_v40 = vpop.permute.xlu2 %3136  ;;  %3332 = vrot.lane.b32.xlu0 %v7472_v56, %s4626_s11  ;;  %3064 = vst.msk [vmem:[#allocation4 + $0xd0] sm:$0xff] %vm1043_vm5, %v2995_v12  ;;  %v3648_v12 = vld [vmem:[#allocation3 + $0x39] sm:$0xff] }
 0x560   : > { %3231 = vst.msk [vmem:[#allocation4 + $0x8] sm:$0xff] %vm1236_vm6, %v3137_v40  ;;  %v3840_v56 = vld [vmem:[#allocation3 + $0x3a] sm:$0xff] }
 0x561   : > { %v2993_v49 = vpop.permute.xlu0 %2992 }
 0x562   : > { %3063 = vst.msk [vmem:[#allocation4 + $0xc8] sm:$0xff] %vm1043_vm5, %v2993_v49 }
 0x564   : > { %3340 = vrot.lane.b32.xlu1 %v7474_v55, %s4626_s11 }
 0x565   : > { %3336 = vrot.lane.b32.xlu2 %v7473_v5, %s4626_s11 }
 0x566   : > { %v3001_v61 = vpop.permute.xlu1 %3000 }
 0x567   : > { %v3143_v34 = vpop.permute.xlu2 %3142  ;;  %3338 = vrot.lane.b32.xlu0 %v7475_v46, %s4626_s11  ;;  %3067 = vst.msk [vmem:[#allocation4 + $0xe8] sm:$0xff] %vm1043_vm5, %v3001_v61  ;;  %v3457_v61 = vld [vmem:[#allocation3 + $0x48] sm:$0xff] }
 0x568   : > { %3234 = vst.msk [vmem:[#allocation4 + $0x20] sm:$0xff] %vm1236_vm6, %v3143_v34  ;;  %v3665_v34 = vld [vmem:[#allocation3 + $0x109] sm:$0xff] }
 0x569   : > { %v2999_v18 = vpop.permute.xlu0 %2998 }
 0x56a   : > { %3066 = vst.msk [vmem:[#allocation4 + $0xe0] sm:$0xff] %vm1043_vm5, %v2999_v18 }
 0x56c   : > { %3346 = vrot.lane.b32.xlu1 %v7477_v4, %s4626_s11  ;;  %v3841_v4 = vld [vmem:[#allocation3 + $0x4a] sm:$0xff] }
 0x56d   : > { %3342 = vrot.lane.b32.xlu2 %v7476_v20, %s4626_s11  ;;  %v3649_v20 = vld [vmem:[#allocation3 + $0x49] sm:$0xff] }
 0x56e   : > { %v3135_v58 = vpop.permute.xlu1 %3134 }
 0x56f   : > { %v3149_v8 = vpop.permute.xlu2 %3148  ;;  %3344 = vrot.lane.b32.xlu0 %v7478_v39, %s4626_s11  ;;  %3230 = vst.msk [vmem:[#allocation4] sm:$0xff] %vm1236_vm6, %v3135_v58 }
 0x570   : > { %3237 = vst.msk [vmem:[#allocation4 + $0x38] sm:$0xff] %vm1236_vm6, %v3149_v8 }
 0x571   : > { %v3005_v24 = vpop.permute.xlu0 %3004 }
 0x572   : > { %3069 = vst.msk [vmem:[#allocation4 + $0xf8] sm:$0xff] %vm1043_vm5, %v3005_v24  ;;  %v3666_v24 = vld [vmem:[#allocation3 + $0x111] sm:$0xff] }
 0x574   : > { %3352 = vrot.lane.b32.xlu1 %v7480_v21, %s4626_s11 }
 0x575   : > { %3348 = vrot.lane.b32.xlu2 %v7479_v6, %s4626_s11  ;;  %v3458_v6 = vld [vmem:[#allocation3 + $0x50] sm:$0xff] }
 0x576   : > { %v3141_v53 = vpop.permute.xlu1 %3140 }
 0x577   : > { %v3155_v28 = vpop.permute.xlu2 %3154  ;;  %3350 = vrot.lane.b32.xlu0 %v7481_v57, %s4626_s11  ;;  %3233 = vst.msk [vmem:[#allocation4 + $0x18] sm:$0xff] %vm1236_vm6, %v3141_v53  ;;  %v3650_v53 = vld [vmem:[#allocation3 + $0x51] sm:$0xff] }
 0x578   : > { %3240 = vst.msk [vmem:[#allocation4 + $0x50] sm:$0xff] %vm1236_vm6, %v3155_v28  ;;  %v3842_v57 = vld [vmem:[#allocation3 + $0x52] sm:$0xff] }
 0x579   : > { %v3139_v22 = vpop.permute.xlu0 %3138 }
 0x57a   : > { %3232 = vst.msk [vmem:[#allocation4 + $0x10] sm:$0xff] %vm1236_vm6, %v3139_v22 }
 0x57c   : > { %3358 = vrot.lane.b32.xlu1 %v7483_v0, %s4626_s11 }
 0x57d   : > { %3354 = vrot.lane.b32.xlu2 %v7482_v27, %s4626_s11 }
 0x57e   : > { %v3147_v11 = vpop.permute.xlu1 %3146 }
 0x57f   : > { %v3161_v43 = vpop.permute.xlu2 %3160  ;;  %3356 = vrot.lane.b32.xlu0 %v7484_v47, %s4626_s11  ;;  %3236 = vst.msk [vmem:[#allocation4 + $0x30] sm:$0xff] %vm1236_vm6, %v3147_v11  ;;  %v3459_v11 = vld [vmem:[#allocation3 + $0x60] sm:$0xff] }
 0x580   : > { %3243 = vst.msk [vmem:[#allocation4 + $0x68] sm:$0xff] %vm1236_vm6, %v3161_v43  ;;  %v3667_v43 = vld [vmem:[#allocation3 + $0x121] sm:$0xff] }
 0x581   : > { %v3145_v54 = vpop.permute.xlu0 %3144 }
 0x582   : > { %3235 = vst.msk [vmem:[#allocation4 + $0x28] sm:$0xff] %vm1236_vm6, %v3145_v54 }
 0x584   : > { %3364 = vrot.lane.b32.xlu1 %v7486_v50, %s4626_s11 }
 0x585   : > { %3360 = vrot.lane.b32.xlu2 %v7485_v60, %s4626_s11  ;;  %v3859_v60 = vld [vmem:[#allocation3 + $0x122] sm:$0xff] }
 0x586   : > { %v3153_v7 = vpop.permute.xlu1 %3152 }
 0x587   : > { %v3167_v26 = vpop.permute.xlu2 %3166  ;;  %3362 = vrot.lane.b32.xlu0 %v7487_v51, %s4626_s11  ;;  %3239 = vst.msk [vmem:[#allocation4 + $0x48] sm:$0xff] %vm1236_vm6, %v3153_v7 }
 0x588   : > { %3246 = vst.msk [vmem:[#allocation4 + $0x80] sm:$0xff] %vm1236_vm6, %v3167_v26  ;;  %v3843_v26 = vld [vmem:[#allocation3 + $0x62] sm:$0xff] }
 0x589   : > { %v3151_v52 = vpop.permute.xlu0 %3150 }
 0x58a   : > { %3238 = vst.msk [vmem:[#allocation4 + $0x40] sm:$0xff] %vm1236_vm6, %v3151_v52  ;;  %v3476_v52 = vld [vmem:[#allocation3 + $0x128] sm:$0xff] }
 0x58c   : > { %3370 = vrot.lane.b32.xlu1 %v7489_v30, %s4626_s11  ;;  %v3668_v30 = vld [vmem:[#allocation3 + $0x129] sm:$0xff] }
 0x58d   : > { %3366 = vrot.lane.b32.xlu2 %v7488_v31, %s4626_s11 }
 0x58e   : > { %v3159_v25 = vpop.permute.xlu1 %3158 }
 0x58f   : > { %v3173_v23 = vpop.permute.xlu2 %3172  ;;  %3368 = vrot.lane.b32.xlu0 %v7490_v36, %s4626_s11  ;;  %3242 = vst.msk [vmem:[#allocation4 + $0x60] sm:$0xff] %vm1236_vm6, %v3159_v25 }
 0x590   : > { %3249 = vst.msk [vmem:[#allocation4 + $0x98] sm:$0xff] %vm1236_vm6, %v3173_v23  ;;  %v3460_v23 = vld [vmem:[#allocation3 + $0x68] sm:$0xff] }
 0x591   : > { %v3157_v15 = vpop.permute.xlu0 %3156 }
 0x592   : > { %3241 = vst.msk [vmem:[#allocation4 + $0x58] sm:$0xff] %vm1236_vm6, %v3157_v15  ;;  %v3860_v15 = vld [vmem:[#allocation3 + $0x12a] sm:$0xff] }
 0x594   : > { %3551 = vrot.lane.b32.xlu1 %v6134_v17, %s4627_s12 }
 0x595   : > { %3372 = vrot.lane.b32.xlu2 %v7491_v29, %s4626_s11  ;;  %v4067_v29 = vld [vmem:[%s7242_s2 + $0x20] sm:$0xf] }
 0x596   : > { %v3165_v35 = vpop.permute.xlu1 %3164  ;;  %4587 = vmatpush.msk.msra.mxu3 %vm2176_vm10, %v4067_v29  ;;  %4545 = vmatpush.msk.msra.mxu1 %vm2176_vm10, %v4067_v29  ;;  %v3481_v29 = vld [vmem:[#allocation3 + $0x168] sm:$0xff] }
 0x597   : > { %v3179_v62 = vpop.permute.xlu2 %3178  ;;  %3374 = vrot.lane.b32.xlu0 %v7492_v48, %s4626_s11  ;;  %3245 = vst.msk [vmem:[#allocation4 + $0x78] sm:$0xff] %vm1236_vm6, %v3165_v35  ;;  %v4066_v35 = vld [vmem:[%s7242_s2 + $0x18] sm:$0xff]  ;;  %v4065_v48 = vld [vmem:[%s7242_s2 + $0x10] sm:$0xff] }
 0x598   : > { %3252 = vst.msk [vmem:[#allocation4 + $0xb0] sm:$0xff] %vm1236_vm6, %v3179_v62  ;;  %4588 = vmatpush.msra.mxu3 %v4066_v35  ;;  %4179 = vmatpush.msra.mxu1 %v4066_v35 }
 0x599   : > { %v3163_v41 = vpop.permute.xlu0 %3162 }
 0x59a   : > { %3244 = vst.msk [vmem:[#allocation4 + $0x70] sm:$0xff] %vm1236_vm6, %v3163_v41  ;;  %v3652_v41 = vld [vmem:[#allocation3 + $0x69] sm:$0xff]  ;;  %4589 = vmatpush.msra.mxu3 %v4065_v48  ;;  %4180 = vmatpush.msra.mxu1 %v4065_v48 }
 0x59c   : > { %3519 = vrot.lane.b32.xlu1 %v3455_v63, %s4627_s12  ;;  %v4064_v63 = vld [vmem:[%s7242_s2 + $0x8] sm:$0xff] }
 0x59d   : > { %3743 = vrot.lane.b32.xlu2 %v3663_v10, %s4628_s13  ;;  %v3844_v10 = vld [vmem:[#allocation3 + $0x6a] sm:$0xff]  ;;  %4590 = vmatpush.msra.mxu3 %v4064_v63 }
 0x59e   : > { %v3171_v17 = vpop.permute.xlu1 %3170  ;;  %4181 = vmatpush.msra.mxu1 %v4064_v63 }
 0x59f   : > { %v3185_v44 = vpop.permute.xlu2 %3184  ;;  %3935 = vrot.lane.b32.xlu0 %v7487_v51, %s4629_s14  ;;  %3248 = vst.msk [vmem:[#allocation4 + $0x90] sm:$0xff] %vm1236_vm6, %v3171_v17 }
 0x5a0   : > { %3255 = vst.msk [vmem:[#allocation4 + $0xc8] sm:$0xff] %vm1236_vm6, %v3185_v44 }
 0x5a1   : > { %v3169_v38 = vpop.permute.xlu0 %3168 }
 0x5a2   : > { %3247 = vst.msk [vmem:[#allocation4 + $0x88] sm:$0xff] %vm1236_vm6, %v3169_v38  ;;  %v4063_v38 = vld [vmem:[%s7242_s2] sm:$0xff] }
 0x5a3   : > { %4591 = vmatpush.msra.mxu3 %v4063_v38  ;;  %4182 = vmatpush.msra.mxu1 %v4063_v38 }
 0x5a4   : > { %3903 = vrot.lane.b32.xlu1 %v3839_v14, %s4629_s14 }
 0x5a5   : > { %3711 = vrot.lane.b32.xlu2 %v6583_v45, %s4628_s13 }
 0x5a6   : > { %v3177_v1 = vpop.permute.xlu1 %3176 }
 0x5a7   : > { %v3191_v2 = vpop.permute.xlu2 %3190  ;;  %3553 = vrot.lane.b32.xlu0 %v6156_v32, %s4627_s12  ;;  %3251 = vst.msk [vmem:[#allocation4 + $0xa8] sm:$0xff] %vm1236_vm6, %v3177_v1  ;;  %v3461_v1 = vld [vmem:[#allocation3 + $0x78] sm:$0xff] }
 0x5a8   : > { %3258 = vst.msk [vmem:[#allocation4 + $0xe0] sm:$0xff] %vm1236_vm6, %v3191_v2  ;;  %v3669_v2 = vld [vmem:[#allocation3 + $0x139] sm:$0xff] }
 0x5a9   : > { %v3175_v19 = vpop.permute.xlu0 %3174 }
 0x5aa   : > { %3250 = vst.msk [vmem:[#allocation4 + $0xa0] sm:$0xff] %vm1236_vm6, %v3175_v19 }
 0x5ac   : > { %3521 = vrot.lane.b32.xlu1 %v3456_v16, %s4627_s12 }
 0x5ad   : > { %3745 = vrot.lane.b32.xlu2 %v3664_v33, %s4628_s13 }
 0x5ae   : > { %v3183_v40 = vpop.permute.xlu1 %3182 }
 0x5af   : > { %v3197_v45 = vpop.permute.xlu2 %3196  ;;  %3937 = vrot.lane.b32.xlu0 %v7486_v50, %s4629_s14  ;;  %3254 = vst.msk [vmem:[#allocation4 + $0xc0] sm:$0xff] %vm1236_vm6, %v3183_v40  ;;  %v3651_v50 = vld [vmem:[#allocation3 + $0x61] sm:$0xff] }
 0x5b0   : > { %3261 = vst.msk [vmem:[#allocation4 + $0xf8] sm:$0xff] %vm1236_vm6, %v3197_v45  ;;  %v3653_v45 = vld [vmem:[#allocation3 + $0x79] sm:$0xff] }
 0x5b1   : > { %v3181_v32 = vpop.permute.xlu0 %3180  ;;  %v3845_v40 = vld [vmem:[#allocation3 + $0x7a] sm:$0xff] }
 0x5b2   : > { %3253 = vst.msk [vmem:[#allocation4 + $0xb8] sm:$0xff] %vm1236_vm6, %v3181_v32 }
 0x5b4   : > { %3905 = vrot.lane.b32.xlu1 %v3840_v56, %s4629_s14  ;;  %v3478_v56 = vld [vmem:[#allocation3 + $0x140] sm:$0xff] }
 0x5b5   : > { %3713 = vrot.lane.b32.xlu2 %v3648_v12, %s4628_s13 }
 0x5b6   : > { %v3189_v5 = vpop.permute.xlu1 %3188 }
 0x5b7   : > { %v3331_v49 = vpop.permute.xlu2 %3330  ;;  %3555 = vrot.lane.b32.xlu0 %v6183_v59, %s4627_s12  ;;  %3257 = vst.msk [vmem:[#allocation4 + $0xd8] sm:$0xff] %vm1236_vm6, %v3189_v5  ;;  %v3670_v5 = vld [vmem:[#allocation3 + $0x141] sm:$0xff] }
 0x5b8   : > { %3424 = vst.msk [vmem:[#allocation4 + $0x10] sm:$0xff] %vm1429_vm7, %v3331_v49 }
 0x5b9   : > { %v3187_v55 = vpop.permute.xlu0 %3186 }
 0x5ba   : > { %3256 = vst.msk [vmem:[#allocation4 + $0xd0] sm:$0xff] %vm1236_vm6, %v3187_v55  ;;  %v3462_v55 = vld [vmem:[#allocation3 + $0x80] sm:$0xff] }
 0x5bc   : > { %3523 = vrot.lane.b32.xlu1 %v3457_v61, %s4627_s12 }
 0x5bd   : > { %3747 = vrot.lane.b32.xlu2 %v3665_v34, %s4628_s13 }
 0x5be   : > { %v3195_v18 = vpop.permute.xlu1 %3194 }
 0x5bf   : > { %v3337_v46 = vpop.permute.xlu2 %3336  ;;  %3939 = vrot.lane.b32.xlu0 %v7488_v31, %s4629_s14  ;;  %3260 = vst.msk [vmem:[#allocation4 + $0xf0] sm:$0xff] %vm1236_vm6, %v3195_v18 }
 0x5c0   : > { %3427 = vst.msk [vmem:[#allocation4 + $0x28] sm:$0xff] %vm1429_vm7, %v3337_v46  ;;  %v3862_v46 = vld [vmem:[#allocation3 + $0x142] sm:$0xff] }
 0x5c1   : > { %v3193_v59 = vpop.permute.xlu0 %3192 }
 0x5c2   : > { %3259 = vst.msk [vmem:[#allocation4 + $0xe8] sm:$0xff] %vm1236_vm6, %v3193_v59  ;;  %v3654_v59 = vld [vmem:[#allocation3 + $0x81] sm:$0xff] }
 0x5c4   : > { %3907 = vrot.lane.b32.xlu1 %v3841_v4, %s4629_s14 }
 0x5c5   : > { %3715 = vrot.lane.b32.xlu2 %v3649_v20, %s4628_s13  ;;  %v3846_v20 = vld [vmem:[#allocation3 + $0x82] sm:$0xff] }
 0x5c6   : > { %v3329_v58 = vpop.permute.xlu1 %3328 }
 0x5c7   : > { %v3343_v8 = vpop.permute.xlu2 %3342  ;;  %3557 = vrot.lane.b32.xlu0 %v6194_v9, %s4627_s12  ;;  %3423 = vst.msk [vmem:[#allocation4 + $0x8] sm:$0xff] %vm1429_vm7, %v3329_v58  ;;  %v3479_v58 = vld [vmem:[#allocation3 + $0x150] sm:$0xff] }
 0x5c8   : > { %3430 = vst.msk [vmem:[#allocation4 + $0x40] sm:$0xff] %vm1429_vm7, %v3343_v8 }
 0x5c9   : > { %v3327_v39 = vpop.permute.xlu0 %3326 }
 0x5ca   : > { %3422 = vst.msk [vmem:[#allocation4] sm:$0xff] %vm1429_vm7, %v3327_v39 }
 0x5cc   : > { %3525 = vrot.lane.b32.xlu1 %v3458_v6, %s4627_s12  ;;  %v3671_v6 = vld [vmem:[#allocation3 + $0x151] sm:$0xff] }
 0x5cd   : > { %3749 = vrot.lane.b32.xlu2 %v3666_v24, %s4628_s13 }
 0x5ce   : > { %v3335_v28 = vpop.permute.xlu1 %3334 }
 0x5cf   : > { %v3349_v21 = vpop.permute.xlu2 %3348  ;;  %3941 = vrot.lane.b32.xlu0 %v7490_v36, %s4629_s14  ;;  %3426 = vst.msk [vmem:[#allocation4 + $0x20] sm:$0xff] %vm1429_vm7, %v3335_v28 }
 0x5d0   : > { %3433 = vst.msk [vmem:[#allocation4 + $0x58] sm:$0xff] %vm1429_vm7, %v3349_v21  ;;  %v3463_v21 = vld [vmem:[#allocation3 + $0x90] sm:$0xff] }
 0x5d1   : > { %v3333_v9 = vpop.permute.xlu0 %3332 }
 0x5d2   : > { %3425 = vst.msk [vmem:[#allocation4 + $0x18] sm:$0xff] %vm1429_vm7, %v3333_v9 }
 0x5d4   : > { %3909 = vrot.lane.b32.xlu1 %v3842_v57, %s4629_s14 }
 0x5d5   : > { %3717 = vrot.lane.b32.xlu2 %v3650_v53, %s4628_s13  ;;  %v3863_v53 = vld [vmem:[#allocation3 + $0x152] sm:$0xff] }
 0x5d6   : > { %v3341_v27 = vpop.permute.xlu1 %3340 }
 0x5d7   : > { %v3355_v22 = vpop.permute.xlu2 %3354  ;;  %3559 = vrot.lane.b32.xlu0 %v6211_v3, %s4627_s12  ;;  %3429 = vst.msk [vmem:[#allocation4 + $0x38] sm:$0xff] %vm1429_vm7, %v3341_v27  ;;  %v3480_v27 = vld [vmem:[#allocation3 + $0x158] sm:$0xff] }
 0x5d8   : > { %3436 = vst.msk [vmem:[#allocation4 + $0x70] sm:$0xff] %vm1429_vm7, %v3355_v22 }
 0x5d9   : > { %v3339_v0 = vpop.permute.xlu0 %3338 }
 0x5da   : > { %3428 = vst.msk [vmem:[#allocation4 + $0x30] sm:$0xff] %vm1429_vm7, %v3339_v0 }
 0x5dc   : > { %3527 = vrot.lane.b32.xlu1 %v3459_v11, %s4627_s12  ;;  %v3655_v11 = vld [vmem:[#allocation3 + $0x91] sm:$0xff] }
 0x5dd   : > { %3751 = vrot.lane.b32.xlu2 %v3667_v43, %s4628_s13 }
 0x5de   : > { %v3347_v54 = vpop.permute.xlu1 %3346 }
 0x5df   : > { %v3361_v47 = vpop.permute.xlu2 %3360  ;;  %3943 = vrot.lane.b32.xlu0 %v3859_v60, %s4629_s14  ;;  %3432 = vst.msk [vmem:[#allocation4 + $0x50] sm:$0xff] %vm1429_vm7, %v3347_v54  ;;  %v3847_v60 = vld [vmem:[#allocation3 + $0x92] sm:$0xff] }
 0x5e0   : > { %3439 = vst.msk [vmem:[#allocation4 + $0x88] sm:$0xff] %vm1429_vm7, %v3361_v47 }
 0x5e1   : > { %v3345_v3 = vpop.permute.xlu0 %3344 }
 0x5e2   : > { %3431 = vst.msk [vmem:[#allocation4 + $0x48] sm:$0xff] %vm1429_vm7, %v3345_v3  ;;  %v3864_v3 = vld [vmem:[#allocation3 + $0x15a] sm:$0xff] }
 0x5e4   : > { %3911 = vrot.lane.b32.xlu1 %v3843_v26, %s4629_s14 }
 0x5e5   : > { %3719 = vrot.lane.b32.xlu2 %v3651_v50, %s4628_s13 }
 0x5e6   : > { %v3353_v51 = vpop.permute.xlu1 %3352 }
 0x5e7   : > { %v3367_v7 = vpop.permute.xlu2 %3366  ;;  %3561 = vrot.lane.b32.xlu0 %v3476_v52, %s4627_s12  ;;  %3435 = vst.msk [vmem:[#allocation4 + $0x68] sm:$0xff] %vm1429_vm7, %v3353_v51 }
 0x5e8   : > { %3442 = vst.msk [vmem:[#allocation4 + $0xa0] sm:$0xff] %vm1429_vm7, %v3367_v7  ;;  %v3672_v7 = vld [vmem:[#allocation3 + $0x159] sm:$0xff] }
 0x5e9   : > { %v3351_v31 = vpop.permute.xlu0 %3350 }
 0x5ea   : > { %3434 = vst.msk [vmem:[#allocation4 + $0x60] sm:$0xff] %vm1429_vm7, %v3351_v31  ;;  %v3464_v31 = vld [vmem:[#allocation3 + $0x98] sm:$0xff] }
 0x5ec   : > { %3529 = vrot.lane.b32.xlu1 %v3460_v23, %s4627_s12 }
 0x5ed   : > { %3753 = vrot.lane.b32.xlu2 %v3668_v30, %s4628_s13  ;;  %v3656_v30 = vld [vmem:[#allocation3 + $0x99] sm:$0xff] }
 0x5ee   : > { %v3359_v36 = vpop.permute.xlu1 %3358 }
 0x5ef   : > { %v3373_v25 = vpop.permute.xlu2 %3372  ;;  %3945 = vrot.lane.b32.xlu0 %v3860_v15, %s4629_s14  ;;  %3438 = vst.msk [vmem:[#allocation4 + $0x80] sm:$0xff] %vm1429_vm7, %v3359_v36 }
 0x5f0   : > { %3445 = vst.msk [vmem:[#allocation4 + $0xb8] sm:$0xff] %vm1429_vm7, %v3373_v25 }
 0x5f1   : > { %v3357_v62 = vpop.permute.xlu0 %3356 }
 0x5f2   : > { %3437 = vst.msk [vmem:[#allocation4 + $0x78] sm:$0xff] %vm1429_vm7, %v3357_v62  ;;  %v3673_v62 = vld [vmem:[#allocation3 + $0x169] sm:$0xff] }
 0x5f4   : > { %3913 = vrot.lane.b32.xlu1 %v3844_v10, %s4629_s14 }
 0x5f5   : > { %3721 = vrot.lane.b32.xlu2 %v3652_v41, %s4628_s13  ;;  %v3848_v41 = vld [vmem:[#allocation3 + $0x9a] sm:$0xff] }
 0x5f6   : > { %v3365_v17 = vpop.permute.xlu1 %3364 }
 0x5f7   : > { %v3744_v44 = vpop.permute.xlu2 %3743  ;;  %3441 = vst.msk [vmem:[#allocation4 + $0x98] sm:$0xff] %vm1429_vm7, %v3365_v17  ;;  %3563 = vrot.lane.b32.xlu0 %v6251_v42, %s4627_s12  ;;  %v3861_v42 = vld [vmem:[#allocation3 + $0x13a] sm:$0xff] }
 0x5f9   : > { %v3363_v14 = vpop.permute.xlu0 %3362 }
 0x5fa   : > { %3440 = vst.msk [vmem:[#allocation4 + $0x90] sm:$0xff] %vm1429_vm7, %v3363_v14  ;;  %v3465_v14 = vld [vmem:[#allocation3 + $0xa8] sm:$0xff] }
 0x5fc   : > { %3531 = vrot.lane.b32.xlu1 %v3461_v1, %s4627_s12 }
 0x5fd   : > { %3755 = vrot.lane.b32.xlu2 %v3669_v2, %s4628_s13 }
 0x5fe   : > { %v3371_v33 = vpop.permute.xlu1 %3370 }
 0x5ff   : > { %v3712_v19 = vpop.permute.xlu2 %3711  ;;  %3444 = vst.msk [vmem:[#allocation4 + $0xb0] sm:$0xff] %vm1429_vm7, %v3371_v33  ;;  %3947 = vrot.lane.b32.xlu0 %v3861_v42, %s4629_s14  ;;  %v3849_v33 = vld [vmem:[#allocation3 + $0xaa] sm:$0xff] }
 0x601   : > { %v3369_v16 = vpop.permute.xlu0 %3368 }
 0x602   : > { %3443 = vst.msk [vmem:[#allocation4 + $0xa8] sm:$0xff] %vm1429_vm7, %v3369_v16 }
 0x604   : > { %3915 = vrot.lane.b32.xlu1 %v3845_v40, %s4629_s14 }
 0x605   : > { %3723 = vrot.lane.b32.xlu2 %v3653_v45, %s4628_s13  ;;  %v3482_v45 = vld [vmem:[#allocation3 + $0x170] sm:$0xff] }
 0x606   : > { %v3552_v12 = vpop.permute.xlu1 %3551 }
 0x607   : > { %v3746_v32 = vpop.permute.xlu2 %3745  ;;  %3631 = vst.msk [vmem:[#allocation4 + $0x80] sm:$0xff] %vm1623_vm8, %v3552_v12  ;;  %3565 = vrot.lane.b32.xlu0 %v3478_v56, %s4627_s12  ;;  %v3674_v12 = vld [vmem:[#allocation3 + $0x171] sm:$0xff] }
 0x608   : > { %3823 = vst.msk [vmem:[#allocation4 + $0x80] sm:$0xff] %vm1816_vm9, %v3744_v44  ;;  %v3865_v44 = vld [vmem:[#allocation3 + $0x16a] sm:$0xff] }
 0x609   : > { %v3375_v49 = vpop.permute.xlu0 %3374  ;;  %v3466_v56 = vld [vmem:[#allocation3 + $0xb0] sm:$0xff] }
 0x60a   : > { %3446 = vst.msk [vmem:[#allocation4 + $0xc0] sm:$0xff] %vm1429_vm7, %v3375_v49 }
 0x60c   : > { %3533 = vrot.lane.b32.xlu1 %v3462_v55, %s4627_s12  ;;  %v3866_v55 = vld [vmem:[#allocation3 + $0x172] sm:$0xff] }
 0x60d   : > { %3757 = vrot.lane.b32.xlu2 %v3670_v5, %s4628_s13 }
 0x60e   : > { %v3520_v61 = vpop.permute.xlu1 %3519 }
 0x60f   : > { %v3714_v34 = vpop.permute.xlu2 %3713  ;;  %3615 = vst.msk [vmem:[#allocation4] sm:$0xff] %vm1623_vm8, %v3520_v61  ;;  %3949 = vrot.lane.b32.xlu0 %v3862_v46, %s4629_s14 }
 0x610   : > { %3807 = vst.msk [vmem:[#allocation4] sm:$0xff] %vm1816_vm9, %v3712_v19  ;;  %v3657_v19 = vld [vmem:[#allocation3 + $0xa9] sm:$0xff] }
 0x611   : > { %v3936_v18 = vpop.permute.xlu0 %3935 }
 0x612   : > { %4015 = vst.msk [vmem:[#allocation4 + $0x80] sm:$0xff] %vm2009_vm11, %v3936_v18 }
 0x614   : > { %3917 = vrot.lane.b32.xlu1 %v3846_v20, %s4629_s14  ;;  %v3658_v20 = vld [vmem:[#allocation3 + $0xb1] sm:$0xff] }
 0x615   : > { %3725 = vrot.lane.b32.xlu2 %v3654_v59, %s4628_s13 }
 0x616   : > { %v3904_v8 = vpop.permute.xlu1 %3903 }
 0x617   : > { %v3748_v4 = vpop.permute.xlu2 %3747  ;;  %3999 = vst.msk [vmem:[#allocation4] sm:$0xff] %vm2009_vm11, %v3904_v8  ;;  %3567 = vrot.lane.b32.xlu0 %v3479_v58, %s4627_s12  ;;  %v3850_v58 = vld [vmem:[#allocation3 + $0xb2] sm:$0xff] }
 0x619   : > { %v3554_v39 = vpop.permute.xlu0 %3553  ;;  %v4047_v24 = vld [vmem:[#allocation4 + $0x80] sm:$0xff] }
 0x61a   : > { %3632 = vst.msk [vmem:[#allocation4 + $0x88] sm:$0xff] %vm1623_vm8, %v3554_v39  ;;  %4562 = vmatmul.msk.f32.vlgmr.msra.gmra.mxu3 %vm2079_vm12, %v4047_v24  ;;  %v3867_v39 = vld [vmem:[#allocation3 + $0x182] sm:$0xff] }
 0x61b   : > { %3824 = vst.msk [vmem:[#allocation4 + $0x88] sm:$0xff] %vm1816_vm9, %v3746_v32 }
 0x61c   : > { %3535 = vrot.lane.b32.xlu1 %v3463_v21, %s4627_s12 }
 0x61d   : > { %3759 = vrot.lane.b32.xlu2 %v3671_v6, %s4628_s13 }
 0x61e   : > { %v3522_v9 = vpop.permute.xlu1 %3521  ;;  %v4031_v57 = vld [vmem:[#allocation4] sm:$0xff] }
 0x61f   : > { %v3716_v28 = vpop.permute.xlu2 %3715  ;;  %3616 = vst.msk [vmem:[#allocation4 + $0x8] sm:$0xff] %vm1623_vm8, %v3522_v9  ;;  %3951 = vrot.lane.b32.xlu0 %v3863_v53, %s4629_s14  ;;  %4546 = vmatmul.msk.f32.vlgmr.msra.gmra.mxu1 %vm2079_vm12, %v4031_v57  ;;  %v3467_v9 = vld [vmem:[#allocation3 + $0xc0] sm:$0xff] }
 0x620   : > { %3808 = vst.msk [vmem:[#allocation4 + $0x8] sm:$0xff] %vm1816_vm9, %v3714_v34 }
 0x621   : > { %v3938_v22 = vpop.permute.xlu0 %3937 }
 0x622   : > { %4016 = vst.msk [vmem:[#allocation4 + $0x88] sm:$0xff] %vm2009_vm11, %v3938_v22 }
 0x624   : > { %3569 = vrot.lane.b32.xlu1 %v3480_v27, %s4627_s12 }
 0x625   : > { %3376 = vrot.lane.b32.xlu2 %v3862_v46, %s4626_s11  ;;  %v3483_v46 = vld [vmem:[#allocation3 + $0x180] sm:$0xff] }
 0x626   : > { %v3906_v43 = vpop.permute.xlu1 %3905 }
 0x627   : > { %v3750_v0 = vpop.permute.xlu2 %3749  ;;  %4000 = vst.msk [vmem:[#allocation4 + $0x8] sm:$0xff] %vm2009_vm11, %v3906_v43  ;;  %3727 = vrot.lane.b32.xlu0 %v3655_v11, %s4628_s13 }
 0x629   : > { %v3556_v47 = vpop.permute.xlu0 %3555  ;;  %v4048_v54 = vld [vmem:[#allocation4 + $0x88] sm:$0xff] }
 0x62a   : > { %3633 = vst.msk [vmem:[#allocation4 + $0x90] sm:$0xff] %vm1623_vm8, %v3556_v47  ;;  %4563 = vmatmul.msk.f32.gmra.mxu3 %vm2079_vm12, %v4048_v54  ;;  %v3851_v47 = vld [vmem:[#allocation3 + $0xc2] sm:$0xff] }
 0x62b   : > { %3825 = vst.msk [vmem:[#allocation4 + $0x90] sm:$0xff] %vm1816_vm9, %v3748_v4 }
 0x62c   : > { %3953 = vrot.lane.b32.xlu1 %v3864_v3, %s4629_s14 }
 0x62d   : > { %3919 = vrot.lane.b32.xlu2 %v3847_v60, %s4629_s14 }
 0x62e   : > { %v3524_v26 = vpop.permute.xlu1 %3523  ;;  %v4032_v51 = vld [vmem:[#allocation4 + $0x8] sm:$0xff] }
 0x62f   : > { %v3718_v50 = vpop.permute.xlu2 %3717  ;;  %3617 = vst.msk [vmem:[#allocation4 + $0x10] sm:$0xff] %vm1623_vm8, %v3524_v26  ;;  %3761 = vrot.lane.b32.xlu0 %v3672_v7, %s4628_s13  ;;  %4547 = vmatmul.msk.f32.gmra.mxu1 %vm2079_vm12, %v4032_v51  ;;  %v3468_v26 = vld [vmem:[#allocation3 + $0xc8] sm:$0xff] }
 0x630   : > { %3809 = vst.msk [vmem:[#allocation4 + $0x10] sm:$0xff] %vm1816_vm9, %v3716_v28 }
 0x631   : > { %v3940_v52 = vpop.permute.xlu0 %3939 }
 0x632   : > { %4017 = vst.msk [vmem:[#allocation4 + $0x90] sm:$0xff] %vm2009_vm11, %v3940_v52  ;;  %v3660_v52 = vld [vmem:[#allocation3 + $0xc9] sm:$0xff] }
 0x634   : > { %3729 = vrot.lane.b32.xlu1 %v3656_v30, %s4628_s13  ;;  %v3485_v30 = vld [vmem:[#allocation3 + $0x198] sm:$0xff] }
 0x635   : > { %3537 = vrot.lane.b32.xlu2 %v3464_v31, %s4627_s12  ;;  %v3852_v31 = vld [vmem:[#allocation3 + $0xca] sm:$0xff] }
 0x636   : > { %v3908_v25 = vpop.permute.xlu1 %3907 }
 0x637   : > { %v3752_v23 = vpop.permute.xlu2 %3751  ;;  %4001 = vst.msk [vmem:[#allocation4 + $0x10] sm:$0xff] %vm2009_vm11, %v3908_v25  ;;  %3378 = vrot.lane.b32.xlu0 %v3863_v53, %s4626_s11  ;;  %v3659_v53 = vld [vmem:[#allocation3 + $0xc1] sm:$0xff] }
 0x639   : > { %v3558_v36 = vpop.permute.xlu0 %3557  ;;  %v4049_v15 = vld [vmem:[#allocation4 + $0x90] sm:$0xff] }
 0x63a   : > { %3634 = vst.msk [vmem:[#allocation4 + $0x98] sm:$0xff] %vm1623_vm8, %v3558_v36  ;;  %4564 = vmatmul.msk.f32.gmra.mxu3 %vm2079_vm12, %v4049_v15 }
 0x63b   : > { %3826 = vst.msk [vmem:[#allocation4 + $0x98] sm:$0xff] %vm1816_vm9, %v3750_v0  ;;  %v3484_v0 = vld [vmem:[#allocation3 + $0x188] sm:$0xff] }
 0x63c   : > { %3763 = vrot.lane.b32.xlu1 %v3673_v62, %s4628_s13  ;;  %v3469_v62 = vld [vmem:[#allocation3 + $0xd8] sm:$0xff] }
 0x63d   : > { %3571 = vrot.lane.b32.xlu2 %v3481_v29, %s4627_s12  ;;  %v3677_v29 = vld [vmem:[#allocation3 + $0x199] sm:$0xff] }
 0x63e   : > { %v3526_v48 = vpop.permute.xlu1 %3525  ;;  %v4033_v10 = vld [vmem:[#allocation4 + $0x10] sm:$0xff] }
 0x63f   : > { %v3720_v35 = vpop.permute.xlu2 %3719  ;;  %3618 = vst.msk [vmem:[#allocation4 + $0x18] sm:$0xff] %vm1623_vm8, %v3526_v48  ;;  %3921 = vrot.lane.b32.xlu0 %v3848_v41, %s4629_s14  ;;  %4548 = vmatmul.msk.f32.gmra.mxu1 %vm2079_vm12, %v4033_v10 }
 0x640   : > { %3810 = vst.msk [vmem:[#allocation4 + $0x18] sm:$0xff] %vm1816_vm9, %v3718_v50 }
 0x641   : > { %v3942_v63 = vpop.permute.xlu0 %3941 }
 0x642   : > { %4018 = vst.msk [vmem:[#allocation4 + $0x98] sm:$0xff] %vm2009_vm11, %v3942_v63 }
 0x644   : > { %3380 = vrot.lane.b32.xlu1 %v3864_v3, %s4626_s11  ;;  %v3868_v3 = vld [vmem:[#allocation3 + $0x18a] sm:$0xff] }
 0x645   : > { %3955 = vrot.lane.b32.xlu2 %v3865_v44, %s4629_s14 }
 0x646   : > { %v3910_v38 = vpop.permute.xlu1 %3909 }
 0x647   : > { %v3754_v17 = vpop.permute.xlu2 %3753  ;;  %4002 = vst.msk [vmem:[#allocation4 + $0x18] sm:$0xff] %vm2009_vm11, %v3910_v38  ;;  %3539 = vrot.lane.b32.xlu0 %v3465_v14, %s4627_s12  ;;  %v3661_v14 = vld [vmem:[#allocation3 + $0xd9] sm:$0xff] }
 0x649   : > { %v3560_v2 = vpop.permute.xlu0 %3559  ;;  %v4050_v1 = vld [vmem:[#allocation4 + $0x98] sm:$0xff] }
 0x64a   : > { %3635 = vst.msk [vmem:[#allocation4 + $0xa0] sm:$0xff] %vm1623_vm8, %v3560_v2  ;;  %4565 = vmatmul.msk.f32.gmra.mxu3 %vm2079_vm12, %v4050_v1 }
 0x64b   : > { %3827 = vst.msk [vmem:[#allocation4 + $0xa0] sm:$0xff] %vm1816_vm9, %v3752_v23 }
 0x64c   : > { %3923 = vrot.lane.b32.xlu1 %v3849_v33, %s4629_s14  ;;  %v6993_v33 = vld [vmem:[%s7245_s5] ss:$0 sm:$0xff] }
 0x64d   : > { %3731 = vrot.lane.b32.xlu2 %v3657_v19, %s4628_s13  ;;  %v3870_v19 = vld [vmem:[#allocation3 + $0x1a2] sm:$0xff] }
 0x64e   : > { %v3528_v16 = vpop.permute.xlu1 %3527  ;;  %v4034_v40 = vld [vmem:[#allocation4 + $0x18] sm:$0xff] }
 0x64f   : > { %v3722_v42 = vpop.permute.xlu2 %3721  ;;  %3619 = vst.msk [vmem:[#allocation4 + $0x20] sm:$0xff] %vm1623_vm8, %v3528_v16  ;;  %3573 = vrot.lane.b32.xlu0 %v3482_v45, %s4627_s12  ;;  %4549 = vmatmul.msk.f32.gmra.mxu1 %vm2079_vm12, %v4034_v40  ;;  %v7001_v16 = vld [vmem:[%s7246_s6] ss:$0 sm:$0xff]  ;;  %v3678_v40 = vld [vmem:[#allocation3 + $0x1a1] sm:$0xff] }
 0x650   : > { %3811 = vst.msk [vmem:[#allocation4 + $0x20] sm:$0xff] %vm1816_vm9, %v3720_v35  ;;  %v3869_v35 = vld [vmem:[#allocation3 + $0x19a] sm:$0xff] }
 0x651   : > { %v3944_v32 = vpop.permute.xlu0 %3943 }
 0x652   : > { %4019 = vst.msk [vmem:[#allocation4 + $0xa0] sm:$0xff] %vm2009_vm11, %v3944_v32 }
 0x654   : > { %3541 = vrot.lane.b32.xlu1 %v3466_v56, %s4627_s12 }
 0x655   : > { %3765 = vrot.lane.b32.xlu2 %v3674_v12, %s4628_s13 }
 0x656   : > { %v3912_v5 = vpop.permute.xlu1 %3911 }
 0x657   : > { %v3756_v49 = vpop.permute.xlu2 %3755  ;;  %4003 = vst.msk [vmem:[#allocation4 + $0x20] sm:$0xff] %vm2009_vm11, %v3912_v5  ;;  %3957 = vrot.lane.b32.xlu0 %v3866_v55, %s4629_s14 }
 0x659   : > { %v3562_v34 = vpop.permute.xlu0 %3561  ;;  %v4051_v61 = vld [vmem:[#allocation4 + $0xa0] sm:$0xff] }
 0x65a   : > { %3636 = vst.msk [vmem:[#allocation4 + $0xa8] sm:$0xff] %vm1623_vm8, %v3562_v34  ;;  %4566 = vmatmul.msk.f32.gmra.mxu3 %vm2079_vm12, %v4051_v61  ;;  %v7493_v61 = vld [vmem:[#allocation5_spill] sm:$0xff] }
 0x65b   : > { %3828 = vst.msk [vmem:[#allocation4 + $0xa8] sm:$0xff] %vm1816_vm9, %v3754_v17 }
 0x65c   : > { %3575 = vrot.lane.b32.xlu1 %v3483_v46, %s4627_s12 }
 0x65d   : > { %3382 = vrot.lane.b32.xlu2 %v3865_v44, %s4626_s11  ;;  %v3486_v44 = vld [vmem:[#allocation3 + $0x1a0] sm:$0xff] }
 0x65e   : > { %v3530_v59 = vpop.permute.xlu1 %3529  ;;  %v4035_v4 = vld [vmem:[#allocation4 + $0x20] sm:$0xff] }
 0x65f   : > { %v3724_v18 = vpop.permute.xlu2 %3723  ;;  %3620 = vst.msk [vmem:[#allocation4 + $0x28] sm:$0xff] %vm1623_vm8, %v3530_v59  ;;  %3733 = vrot.lane.b32.xlu0 %v3658_v20, %s4628_s13  ;;  %4550 = vmatmul.msk.f32.gmra.mxu1 %vm2079_vm12, %v4035_v4  ;;  %v7494_v59 = vld [vmem:[#allocation17_spill] sm:$0xff] }
 0x660   : > { %3812 = vst.msk [vmem:[#allocation4 + $0x28] sm:$0xff] %vm1816_vm9, %v3722_v42  ;;  %v3853_v42 = vld [vmem:[#allocation3 + $0xda] sm:$0xff] }
 0x661   : > { %v3946_v8 = vpop.permute.xlu0 %3945 }
 0x662   : > { %4020 = vst.msk [vmem:[#allocation4 + $0xa8] sm:$0xff] %vm2009_vm11, %v3946_v8 }
 0x664   : > { %3959 = vrot.lane.b32.xlu1 %v3867_v39, %s4629_s14 }
 0x665   : > { %3925 = vrot.lane.b32.xlu2 %v3850_v58, %s4629_s14  ;;  %v3470_v58 = vld [vmem:[#allocation3 + $0xe0] sm:$0xff] }
 0x666   : > { %v3914_v6 = vpop.permute.xlu1 %3913 }
 0x667   : > { %v3758_v24 = vpop.permute.xlu2 %3757  ;;  %4004 = vst.msk [vmem:[#allocation4 + $0x28] sm:$0xff] %vm2009_vm11, %v3914_v6  ;;  %3767 = vrot.lane.b32.xlu0 %v6662_v13, %s4628_s13 }
 0x669   : > { %v3564_v21 = vpop.permute.xlu0 %3563  ;;  %v4052_v28 = vld [vmem:[#allocation4 + $0xa8] sm:$0xff] }
 0x66a   : > { %3637 = vst.msk [vmem:[#allocation4 + $0xb0] sm:$0xff] %vm1623_vm8, %v3564_v21  ;;  %4567 = vmatmul.msk.f32.gmra.mxu3 %vm2079_vm12, %v4052_v28  ;;  %v3662_v28 = vld [vmem:[#allocation3 + $0xe1] sm:$0xff] }
 0x66b   : > { %3829 = vst.msk [vmem:[#allocation4 + $0xb0] sm:$0xff] %vm1816_vm9, %v3756_v49 }
 0x66c   : > { %3735 = vrot.lane.b32.xlu1 %v3659_v53, %s4628_s13 }
 0x66d   : > { %3543 = vrot.lane.b32.xlu2 %v3467_v9, %s4627_s12 }
 0x66e   : > { %v3532_v22 = vpop.permute.xlu1 %3531  ;;  %v4036_v27 = vld [vmem:[#allocation4 + $0x28] sm:$0xff] }
 0x66f   : > { %v3726_v57 = vpop.permute.xlu2 %3725  ;;  %3621 = vst.msk [vmem:[#allocation4 + $0x30] sm:$0xff] %vm1623_vm8, %v3532_v22  ;;  %3384 = vrot.lane.b32.xlu0 %v3866_v55, %s4626_s11  ;;  %4551 = vmatmul.msk.f32.gmra.mxu1 %vm2079_vm12, %v4036_v27 }
 0x670   : > { %3813 = vst.msk [vmem:[#allocation4 + $0x30] sm:$0xff] %vm1816_vm9, %v3724_v18 }
 0x671   : > { %v3948_v13 = vpop.permute.xlu0 %3947 }
 0x672   : > { %4021 = vst.msk [vmem:[#allocation4 + $0xb0] sm:$0xff] %vm2009_vm11, %v3948_v13 }
 0x674   : > { %3769 = vrot.lane.b32.xlu1 %v6673_v37, %s4628_s13 }
 0x675   : > { %3577 = vrot.lane.b32.xlu2 %v3484_v0, %s4627_s12 }
 0x676   : > { %v3916_v11 = vpop.permute.xlu1 %3915 }
 0x677   : > { %v3760_v43 = vpop.permute.xlu2 %3759  ;;  %4005 = vst.msk [vmem:[#allocation4 + $0x30] sm:$0xff] %vm2009_vm11, %v3916_v11  ;;  %3927 = vrot.lane.b32.xlu0 %v3851_v47, %s4629_s14 }
 0x679   : > { %v3566_v54 = vpop.permute.xlu0 %3565  ;;  %v4053_v60 = vld [vmem:[#allocation4 + $0xb0] sm:$0xff] }
 0x67a   : > { %3638 = vst.msk [vmem:[#allocation4 + $0xb8] sm:$0xff] %vm1623_vm8, %v3566_v54  ;;  %4568 = vmatmul.msk.f32.gmra.mxu3 %vm2079_vm12, %v4053_v60  ;;  %v7495_v54 = vld [vmem:[#allocation7_spill] sm:$0xff] }
 0x67b   : > { %3830 = vst.msk [vmem:[#allocation4 + $0xb8] sm:$0xff] %vm1816_vm9, %v3758_v24 }
 0x67c   : > { %3386 = vrot.lane.b32.xlu1 %v3867_v39, %s4626_s11  ;;  %v3854_v39 = vld [vmem:[#allocation3 + $0xe2] sm:$0xff] }
 0x67d   : > { %3961 = vrot.lane.b32.xlu2 %v3868_v3, %s4629_s14 }
 0x67e   : > { %v3534_v50 = vpop.permute.xlu1 %3533  ;;  %v4037_v7 = vld [vmem:[#allocation4 + $0x30] sm:$0xff] }
 0x67f   : > { %v3377_v37 = vpop.permute.xlu2 %3376  ;;  %3545 = vrot.lane.b32.xlu0 %v3468_v26, %s4627_s12  ;;  %4552 = vmatmul.msk.f32.gmra.mxu1 %vm2079_vm12, %v4037_v7  ;;  %3622 = vst.msk [vmem:[#allocation4 + $0x38] sm:$0xff] %vm1623_vm8, %v3534_v50 }
 0x680   : > { %3447 = vst.msk [vmem:[#allocation4 + $0xc8] sm:$0xff] %vm1429_vm7, %v3377_v37  ;;  %v7496_v37 = vld [vmem:[#allocation22_spill] sm:$0xff] }
 0x681   : > { %3814 = vst.msk [vmem:[#allocation4 + $0x38] sm:$0xff] %vm1816_vm9, %v3726_v57  ;;  %v3950_v51 = vpop.permute.xlu0 %3949 }
 0x682   : > { %4022 = vst.msk [vmem:[#allocation4 + $0xb8] sm:$0xff] %vm2009_vm11, %v3950_v51 }
 0x684   : > { %3929 = vrot.lane.b32.xlu1 %v3852_v31, %s4629_s14 }
 0x685   : > { %3737 = vrot.lane.b32.xlu2 %v3660_v52, %s4628_s13 }
 0x686   : > { %v3918_v25 = vpop.permute.xlu1 %3917 }
 0x687   : > { %v3920_v23 = vpop.permute.xlu2 %3919  ;;  %4006 = vst.msk [vmem:[#allocation4 + $0x38] sm:$0xff] %vm2009_vm11, %v3918_v25  ;;  %3579 = vrot.lane.b32.xlu0 %v3485_v30, %s4627_s12 }
 0x689   : > { %v3568_v36 = vpop.permute.xlu0 %3567  ;;  %v4054_v15 = vld [vmem:[#allocation4 + $0xb8] sm:$0xff] }
 0x68a   : > { %3639 = vst.msk [vmem:[#allocation4 + $0xc0] sm:$0xff] %vm1623_vm8, %v3568_v36  ;;  %4569 = vmatmul.msk.f32.gmra.mxu3 %vm2079_vm12, %v4054_v15 }
 0x68b   : > { %3831 = vst.msk [vmem:[#allocation4 + $0xc0] sm:$0xff] %vm1816_vm9, %v3760_v43 }
 0x68c   : > { %3547 = vrot.lane.b32.xlu1 %v3469_v62, %s4627_s12 }
 0x68d   : > { %3771 = vrot.lane.b32.xlu2 %v3677_v29, %s4628_s13 }
 0x68e   : > { %v3536_v41 = vpop.permute.xlu1 %3535  ;;  %v4038_v10 = vld [vmem:[#allocation4 + $0x38] sm:$0xff] }
 0x68f   : > { %v3538_v48 = vpop.permute.xlu2 %3537  ;;  %3963 = vrot.lane.b32.xlu0 %v3869_v35, %s4629_s14  ;;  %4553 = vmatmul.msk.f32.gmra.mxu1 %vm2079_vm12, %v4038_v10  ;;  %3623 = vst.msk [vmem:[#allocation4 + $0x40] sm:$0xff] %vm1623_vm8, %v3536_v41  ;;  %v7497_v10 = vld [vmem:[#allocation9_spill] sm:$0xff] }
 0x690   : > { %3624 = vst.msk [vmem:[#allocation4 + $0x48] sm:$0xff] %vm1623_vm8, %v3538_v48 }
 0x691   : > { %v3952_v63 = vpop.permute.xlu0 %3951 }
 0x692   : > { %4023 = vst.msk [vmem:[#allocation4 + $0xc0] sm:$0xff] %vm2009_vm11, %v3952_v63 }
 0x694   : > { %3581 = vrot.lane.b32.xlu1 %v3486_v44, %s4627_s12 }
 0x695   : > { %3388 = vrot.lane.b32.xlu2 %v3868_v3, %s4626_s11 }
 0x696   : > { %v3570_v38 = vpop.permute.xlu1 %3569 }
 0x697   : > { %v3572_v17 = vpop.permute.xlu2 %3571  ;;  %3640 = vst.msk [vmem:[#allocation4 + $0xc8] sm:$0xff] %vm1623_vm8, %v3570_v38  ;;  %3739 = vrot.lane.b32.xlu0 %v3661_v14, %s4628_s13 }
 0x699   : > { %v3728_v2 = vpop.permute.xlu0 %3727  ;;  %v4055_v1 = vld [vmem:[#allocation4 + $0xc0] sm:$0xff] }
 0x69a   : > { %3815 = vst.msk [vmem:[#allocation4 + $0x40] sm:$0xff] %vm1816_vm9, %v3728_v2  ;;  %4570 = vmatmul.msk.f32.gmra.mxu3 %vm2079_vm12, %v4055_v1 }
 0x69b   : > { %4007 = vst.msk [vmem:[#allocation4 + $0x40] sm:$0xff] %vm2009_vm11, %v3920_v23 }
 0x69c   : > { %3965 = vrot.lane.b32.xlu1 %v3870_v19, %s4629_s14  ;;  %v4184_v45 = vpop.f32.mrf.mxu1 }
 0x69d   : > { %3931 = vrot.lane.b32.xlu2 %v3853_v42, %s4629_s14  ;;  %v4284_v32 = vmul.f32 %v6993_v33, %v4184_v45  ;;  %v4232_v12 = vpop.f32.mrf.mxu3 }
 0x69e   : > { %v4300_v56 = vmul.f32 %v6993_v33, %v4232_v12  ;;  %v3954_v5 = vpop.permute.xlu1 %3953 }
 0x69f   : > { %v3956_v49 = vpop.permute.xlu2 %3955  ;;  %v4320_v55 = vadd.f32 %v7001_v16, %v4284_v32  ;;  %3773 = vrot.lane.b32.xlu0 %v3678_v40, %s4628_s13 }
 0x6a0   : > { %v4336_v34 = vadd.f32 %v7001_v16, %v4300_v56 }
 0x6a1   : > { %v4352_v46 = vadd.f32 %v4320_v55, %v7493_v61  ;;  %v3762_v18 = vpop.permute.xlu0 %3761  ;;  %v7499_v61 = vld [vmem:[#allocation12_spill] sm:$0xff] }
 0x6a2   : > { %v4368_v20 = vadd.f32 %v4336_v34, %v7494_v59  ;;  %3832 = vst.msk [vmem:[#allocation4 + $0xc8] sm:$0xff] %vm1816_vm9, %v3762_v18  ;;  %v4039_v4 = vld [vmem:[#allocation4 + $0x40] sm:$0xff] }
 0x6a3   : > { %v4384_v8 = vmax.f32 %v4352_v46, 0.0  ;;  %4024 = vst.msk [vmem:[#allocation4 + $0xc8] sm:$0xff] %vm2009_vm11, %v3954_v5  ;;  %4554 = vmatmul.msk.f32.gmra.mxu1 %vm2079_vm12, %v4039_v4 }
 0x6a4   : > { %v4400_v24 = vmax.f32 %v4368_v20, 0.0  ;;  %3933 = vrot.lane.b32.xlu1 %v3854_v39, %s4629_s14  ;;  %v7500_v20 = vld [vmem:[#allocation20_spill] sm:$0xff] }
 0x6a5   : > { %3549 = vrot.lane.b32.xlu2 %v3470_v58, %s4627_s12  ;;  %4416 = vst.msk [vmem:[%s7016_s16] sm:$0xff] %vm279_vm0, %v4384_v8 }
 0x6a6   : > { %4432 = vst.msk [vmem:[%s7016_s16 + $0x80] sm:$0xff] %vm279_vm0, %v4400_v24  ;;  %v3730_v21 = vpop.permute.xlu1 %3729 }
 0x6a7   : > { %v3732_v6 = vpop.permute.xlu2 %3731  ;;  %3816 = vst.msk [vmem:[#allocation4 + $0x48] sm:$0xff] %vm1816_vm9, %v3730_v21  ;;  %3741 = vrot.lane.b32.xlu0 %v3662_v28, %s4628_s13 }
 0x6a9   : > { %v3379_v9 = vpop.permute.xlu0 %3378 }
 0x6aa   : > { %3448 = vst.msk [vmem:[#allocation4 + $0xd0] sm:$0xff] %vm1429_vm7, %v3379_v9  ;;  %v4056_v53 = vld [vmem:[#allocation4 + $0xc8] sm:$0xff] }
 0x6ab   : > { %3641 = vst.msk [vmem:[#allocation4 + $0xd0] sm:$0xff] %vm1623_vm8, %v3572_v17  ;;  %4571 = vmatmul.msk.f32.gmra.mxu3 %vm2079_vm12, %v4056_v53  ;;  %v7498_v17 = vld [vmem:[#allocation27_spill] sm:$0xff] }
 0x6ac   : > { %v4187_v57 = vpop.f32.mrf.mxu1 }
 0x6ad   : > { %v4285_v22 = vmul.f32 %v6993_v33, %v4187_v57  ;;  %v4235_v27 = vpop.f32.mrf.mxu3 }
 0x6ae   : > { %v4301_v13 = vmul.f32 %v6993_v33, %v4235_v27  ;;  %v3764_v43 = vpop.permute.xlu1 %3763 }
 0x6af   : > { %v3766_v0 = vpop.permute.xlu2 %3765  ;;  %v4321_v11 = vadd.f32 %v7001_v16, %v4285_v22  ;;  %3833 = vst.msk [vmem:[#allocation4 + $0xd0] sm:$0xff] %vm1816_vm9, %v3764_v43  ;;  %v7501_v43 = vld [vmem:[#allocation6_spill] sm:$0xff] }
 0x6b0   : > { %v4337_v47 = vadd.f32 %v7001_v16, %v4301_v13  ;;  %4025 = vst.msk [vmem:[#allocation4 + $0xd0] sm:$0xff] %vm2009_vm11, %v3956_v49 }
 0x6b1   : > { %v4353_v60 = vadd.f32 %v4321_v11, %v7495_v54  ;;  %v3922_v3 = vpop.permute.xlu0 %3921  ;;  %v7502_v54 = vld [vmem:[#allocation25_spill] sm:$0xff] }
 0x6b2   : > { %v4369_v50 = vadd.f32 %v4337_v47, %v7496_v37  ;;  %4008 = vst.msk [vmem:[#allocation4 + $0x48] sm:$0xff] %vm2009_vm11, %v3922_v3 }
 0x6b3   : > { %v4385_v26 = vmax.f32 %v4353_v60, 0.0 }
 0x6b4   : > { %v4401_v7 = vmax.f32 %v4369_v50, 0.0 }
 0x6b5   : > { %4417 = vst.msk [vmem:[%s7016_s16 + $0x8] sm:$0xff] %vm279_vm0, %v4385_v26 }
 0x6b6   : > { %4433 = vst.msk [vmem:[%s7016_s16 + $0x88] sm:$0xff] %vm279_vm0, %v4401_v7  ;;  %v3381_v52 = vpop.permute.xlu1 %3380 }
 0x6b7   : > { %v3383_v51 = vpop.permute.xlu2 %3382  ;;  %v4057_v31 = vld [vmem:[#allocation4 + $0xd0] sm:$0xff]  ;;  %3449 = vst.msk [vmem:[#allocation4 + $0xd8] sm:$0xff] %vm1429_vm7, %v3381_v52 }
 0x6b8   : > { %3450 = vst.msk [vmem:[#allocation4 + $0xe0] sm:$0xff] %vm1429_vm7, %v3383_v51  ;;  %4572 = vmatmul.msk.f32.gmra.mxu3 %vm2079_vm12, %v4057_v31 }
 0x6b9   : > { %v3540_v30 = vpop.permute.xlu0 %3539  ;;  %v4040_v23 = vld [vmem:[#allocation4 + $0x48] sm:$0xff] }
 0x6ba   : > { %3625 = vst.msk [vmem:[#allocation4 + $0x50] sm:$0xff] %vm1623_vm8, %v3540_v30  ;;  %4555 = vmatmul.msk.f32.gmra.mxu1 %vm2079_vm12, %v4040_v23 }
 0x6bb   : > { %3817 = vst.msk [vmem:[#allocation4 + $0x50] sm:$0xff] %vm1816_vm9, %v3732_v6 }
 0x6bc   : > { %v4190_v25 = vpop.f32.mrf.mxu1 }
 0x6bd   : > { %v4286_v36 = vmul.f32 %v6993_v33, %v4190_v25  ;;  %v4238_v15 = vpop.f32.mrf.mxu3 }
 0x6be   : > { %v4302_v29 = vmul.f32 %v6993_v33, %v4238_v15  ;;  %v3924_v35 = vpop.permute.xlu1 %3923 }
 0x6bf   : > { %v3926_v62 = vpop.permute.xlu2 %3925  ;;  %v4322_v48 = vadd.f32 %v7001_v16, %v4286_v36  ;;  %4009 = vst.msk [vmem:[#allocation4 + $0x50] sm:$0xff] %vm2009_vm11, %v3924_v35  ;;  %v7503_v35 = vld [vmem:[#allocation10_spill] sm:$0xff] }
 0x6c0   : > { %v4338_v41 = vadd.f32 %v7001_v16, %v4302_v29 }
 0x6c1   : > { %v4354_v63 = vadd.f32 %v4322_v48, %v7497_v10  ;;  %v3574_v44 = vpop.permute.xlu0 %3573 }
 0x6c2   : > { %v4370_v38 = vadd.f32 %v4338_v41, %v7498_v17  ;;  %3642 = vst.msk [vmem:[#allocation4 + $0xd8] sm:$0xff] %vm1623_vm8, %v3574_v44 }
 0x6c3   : > { %v4386_v14 = vmax.f32 %v4354_v63, 0.0  ;;  %3834 = vst.msk [vmem:[#allocation4 + $0xd8] sm:$0xff] %vm1816_vm9, %v3766_v0  ;;  %v7504_v63 = vld [vmem:[#allocation30_spill] sm:$0xff] }
 0x6c4   : > { %v4402_v2 = vmax.f32 %v4370_v38, 0.0 }
 0x6c5   : > { %4418 = vst.msk [vmem:[%s7016_s16 + $0x10] sm:$0xff] %vm279_vm0, %v4386_v14 }
 0x6c6   : > { %4434 = vst.msk [vmem:[%s7016_s16 + $0x90] sm:$0xff] %vm279_vm0, %v4402_v2  ;;  %v3542_v19 = vpop.permute.xlu1 %3541  ;;  %v4041_v42 = vld [vmem:[#allocation4 + $0x50] sm:$0xff] }
 0x6c7   : > { %v3544_v1 = vpop.permute.xlu2 %3543  ;;  %4556 = vmatmul.msk.f32.gmra.mxu1 %vm2079_vm12, %v4041_v42  ;;  %3626 = vst.msk [vmem:[#allocation4 + $0x58] sm:$0xff] %vm1623_vm8, %v3542_v19 }
 0x6c8   : > { %3627 = vst.msk [vmem:[#allocation4 + $0x60] sm:$0xff] %vm1623_vm8, %v3544_v1 }
 0x6c9   : > { %v3958_v45 = vpop.permute.xlu0 %3957 }
 0x6ca   : > { %4026 = vst.msk [vmem:[#allocation4 + $0xd8] sm:$0xff] %vm2009_vm11, %v3958_v45 }
 0x6cc   : > { %v4193_v40 = vpop.f32.mrf.mxu1 }
 0x6cd   : > { %v4287_v32 = vmul.f32 %v6993_v33, %v4193_v40  ;;  %v4241_v12 = vpop.f32.mrf.mxu3 }
 0x6ce   : > { %v4303_v56 = vmul.f32 %v6993_v33, %v4241_v12  ;;  %v3576_v5 = vpop.permute.xlu1 %3575 }
 0x6cf   : > { %v3578_v49 = vpop.permute.xlu2 %3577  ;;  %v4323_v55 = vadd.f32 %v7001_v16, %v4287_v32  ;;  %3643 = vst.msk [vmem:[#allocation4 + $0xe0] sm:$0xff] %vm1623_vm8, %v3576_v5 }
 0x6d0   : > { %v4339_v34 = vadd.f32 %v7001_v16, %v4303_v56 }
 0x6d1   : > { %v4355_v46 = vadd.f32 %v4323_v55, %v7499_v61  ;;  %v3734_v18 = vpop.permute.xlu0 %3733  ;;  %v4058_v59 = vld [vmem:[#allocation4 + $0xd8] sm:$0xff]  ;;  %v7505_v55 = vld [vmem:[#allocation15_spill] sm:$0xff] }
 0x6d2   : > { %v4371_v4 = vadd.f32 %v4339_v34, %v7500_v20  ;;  %3818 = vst.msk [vmem:[#allocation4 + $0x58] sm:$0xff] %vm1816_vm9, %v3734_v18  ;;  %4573 = vmatmul.msk.f32.gmra.mxu3 %vm2079_vm12, %v4058_v59 }
 0x6d3   : > { %v4387_v8 = vmax.f32 %v4355_v46, 0.0  ;;  %4010 = vst.msk [vmem:[#allocation4 + $0x58] sm:$0xff] %vm2009_vm11, %v3926_v62  ;;  %v7506_v46 = vld [vmem:[#allocation23_spill] sm:$0xff] }
 0x6d4   : > { %v4403_v58 = vmax.f32 %v4371_v4, 0.0 }
 0x6d5   : > { %4419 = vst.msk [vmem:[%s7016_s16 + $0x18] sm:$0xff] %vm279_vm0, %v4387_v8 }
 0x6d6   : > { %4435 = vst.msk [vmem:[%s7016_s16 + $0x98] sm:$0xff] %vm279_vm0, %v4403_v58  ;;  %v3960_v24 = vpop.permute.xlu1 %3959 }
 0x6d7   : > { %v3962_v39 = vpop.permute.xlu2 %3961 }
 0x6d9   : > { %v3768_v6 = vpop.permute.xlu0 %3767 }
 0x6da   : > { %3835 = vst.msk [vmem:[#allocation4 + $0xe0] sm:$0xff] %vm1816_vm9, %v3768_v6  ;;  %v4042_v21 = vld [vmem:[#allocation4 + $0x58] sm:$0xff] }
 0x6db   : > { %4027 = vst.msk [vmem:[#allocation4 + $0xe0] sm:$0xff] %vm2009_vm11, %v3960_v24  ;;  %4557 = vmatmul.msk.f32.gmra.mxu1 %vm2079_vm12, %v4042_v21 }
 0x6dc   : > { %v4196_v28 = vpop.f32.mrf.mxu1 }
 0x6dd   : > { %v4288_v9 = vmul.f32 %v6993_v33, %v4196_v28  ;;  %v4244_v53 = vpop.f32.mrf.mxu3 }
 0x6de   : > { %v4304_v57 = vmul.f32 %v6993_v33, %v4244_v53  ;;  %v3736_v27 = vpop.permute.xlu1 %3735 }
 0x6df   : > { %v3738_v22 = vpop.permute.xlu2 %3737  ;;  %v4324_v13 = vadd.f32 %v7001_v16, %v4288_v9  ;;  %3819 = vst.msk [vmem:[#allocation4 + $0x60] sm:$0xff] %vm1816_vm9, %v3736_v27 }
 0x6e0   : > { %v4340_v0 = vadd.f32 %v7001_v16, %v4304_v57  ;;  %v7507_v57 = vld [vmem:[#allocation8_spill] sm:$0xff] }
 0x6e1   : > { %v4356_v11 = vadd.f32 %v4324_v13, %v7501_v43  ;;  %v3385_v47 = vpop.permute.xlu0 %3384  ;;  %v7508_v13 = vld [vmem:[#allocation28_spill] sm:$0xff] }
 0x6e2   : > { %v4372_v60 = vadd.f32 %v4340_v0, %v7502_v54  ;;  %3451 = vst.msk [vmem:[#allocation4 + $0xe8] sm:$0xff] %vm1429_vm7, %v3385_v47  ;;  %v4059_v3 = vld [vmem:[#allocation4 + $0xe0] sm:$0xff] }
 0x6e3   : > { %v4388_v37 = vmax.f32 %v4356_v11, 0.0  ;;  %3644 = vst.msk [vmem:[#allocation4 + $0xe8] sm:$0xff] %vm1623_vm8, %v3578_v49  ;;  %4574 = vmatmul.msk.f32.gmra.mxu3 %vm2079_vm12, %v4059_v3 }
 0x6e4   : > { %v4404_v50 = vmax.f32 %v4372_v60, 0.0 }
 0x6e5   : > { %4420 = vst.msk [vmem:[%s7016_s16 + $0x20] sm:$0xff] %vm279_vm0, %v4388_v37 }
 0x6e6   : > { %4436 = vst.msk [vmem:[%s7016_s16 + $0xa0] sm:$0xff] %vm279_vm0, %v4404_v50  ;;  %v3770_v7 = vpop.permute.xlu1 %3769 }
 0x6e7   : > { %v3772_v26 = vpop.permute.xlu2 %3771  ;;  %3836 = vst.msk [vmem:[#allocation4 + $0xe8] sm:$0xff] %vm1816_vm9, %v3770_v7 }
 0x6e8   : > { %4028 = vst.msk [vmem:[#allocation4 + $0xe8] sm:$0xff] %vm2009_vm11, %v3962_v39 }
 0x6e9   : > { %v3928_v51 = vpop.permute.xlu0 %3927 }
 0x6ea   : > { %4011 = vst.msk [vmem:[#allocation4 + $0x60] sm:$0xff] %vm2009_vm11, %v3928_v51 }
 0x6ec   : > { %v4199_v52 = vpop.f32.mrf.mxu1 }
 0x6ed   : > { %v4289_v31 = vmul.f32 %v6993_v33, %v4199_v52  ;;  %v4247_v30 = vpop.f32.mrf.mxu3  ;;  %v7509_v52 = vld [vmem:[#allocation32_spill] sm:$0xff] }
 0x6ee   : > { %v4305_v23 = vmul.f32 %v6993_v33, %v4247_v30  ;;  %v3387_v36 = vpop.permute.xlu1 %3386 }
 0x6ef   : > { %v3389_v25 = vpop.permute.xlu2 %3388  ;;  %v4325_v15 = vadd.f32 %v7001_v16, %v4289_v31  ;;  %v4060_v29 = vld [vmem:[#allocation4 + $0xe8] sm:$0xff]  ;;  %3452 = vst.msk [vmem:[#allocation4 + $0xf0] sm:$0xff] %vm1429_vm7, %v3387_v36  ;;  %v7510_v36 = vld [vmem:[#allocation13_spill] sm:$0xff] }
 0x6f0   : > { %3453 = vst.msk [vmem:[#allocation4 + $0xf8] sm:$0xff] %vm1429_vm7, %v3389_v25  ;;  %v4341_v62 = vadd.f32 %v7001_v16, %v4305_v23  ;;  %4575 = vmatmul.msk.f32.gmra.mxu3 %vm2079_vm12, %v4060_v29 }
 0x6f1   : > { %v4357_v48 = vadd.f32 %v4325_v15, %v7503_v35  ;;  %v3546_v41 = vpop.permute.xlu0 %3545  ;;  %v4043_v10 = vld [vmem:[#allocation4 + $0x60] sm:$0xff] }
 0x6f2   : > { %v4373_v44 = vadd.f32 %v4341_v62, %v7504_v63  ;;  %3628 = vst.msk [vmem:[#allocation4 + $0x68] sm:$0xff] %vm1623_vm8, %v3546_v41  ;;  %4558 = vmatmul.msk.f32.gmra.mxu1 %vm2079_vm12, %v4043_v10  ;;  %v7511_v41 = vld [vmem:[#allocation26_spill] sm:$0xff] }
 0x6f3   : > { %v4389_v17 = vmax.f32 %v4357_v48, 0.0  ;;  %3820 = vst.msk [vmem:[#allocation4 + $0x68] sm:$0xff] %vm1816_vm9, %v3738_v22 }
 0x6f4   : > { %v4405_v38 = vmax.f32 %v4373_v44, 0.0 }
 0x6f5   : > { %4421 = vst.msk [vmem:[%s7016_s16 + $0x28] sm:$0xff] %vm279_vm0, %v4389_v17 }
 0x6f6   : > { %4437 = vst.msk [vmem:[%s7016_s16 + $0xa8] sm:$0xff] %vm279_vm0, %v4405_v38  ;;  %v3930_v2 = vpop.permute.xlu1 %3929 }
 0x6f7   : > { %v3932_v14 = vpop.permute.xlu2 %3931  ;;  %4012 = vst.msk [vmem:[#allocation4 + $0x68] sm:$0xff] %vm2009_vm11, %v3930_v2  ;;  %v7512_v2 = vld [vmem:[#allocation18_spill] sm:$0xff] }
 0x6f9   : > { %v3580_v1 = vpop.permute.xlu0 %3579 }
 0x6fa   : > { %3645 = vst.msk [vmem:[#allocation4 + $0xf0] sm:$0xff] %vm1623_vm8, %v3580_v1 }
 0x6fb   : > { %3837 = vst.msk [vmem:[#allocation4 + $0xf0] sm:$0xff] %vm1816_vm9, %v3772_v26 }
 0x6fc   : > { %v4202_v19 = vpop.f32.mrf.mxu1 }
 0x6fd   : > { %v4290_v42 = vmul.f32 %v6993_v33, %v4202_v19  ;;  %v4250_v45 = vpop.f32.mrf.mxu3 }
 0x6fe   : > { %v4306_v40 = vmul.f32 %v6993_v33, %v4250_v45  ;;  %v3548_v12 = vpop.permute.xlu1 %3547  ;;  %v4044_v56 = vld [vmem:[#allocation4 + $0x68] sm:$0xff] }
 0x6ff   : > { %v3550_v32 = vpop.permute.xlu2 %3549  ;;  %v4326_v49 = vadd.f32 %v7001_v16, %v4290_v42  ;;  %4559 = vmatmul.msk.f32.gmra.mxu1 %vm2079_vm12, %v4044_v56  ;;  %3629 = vst.msk [vmem:[#allocation4 + $0x70] sm:$0xff] %vm1623_vm8, %v3548_v12 }
 0x700   : > { %3630 = vst.msk [vmem:[#allocation4 + $0x78] sm:$0xff] %vm1623_vm8, %v3550_v32  ;;  %v4342_v5 = vadd.f32 %v7001_v16, %v4306_v40  ;;  %v7513_v40 = vld [vmem:[#allocation31_spill] sm:$0xff] }
 0x701   : > { %v4358_v34 = vadd.f32 %v4326_v49, %v7505_v55  ;;  %v3964_v61 = vpop.permute.xlu0 %3963  ;;  %v7514_v55 = vld [vmem:[#allocation11_spill] sm:$0xff] }
 0x702   : > { %v4374_v18 = vadd.f32 %v4342_v5, %v7506_v46  ;;  %4029 = vst.msk [vmem:[#allocation4 + $0xf0] sm:$0xff] %vm2009_vm11, %v3964_v61 }
 0x703   : > { %v4390_v59 = vmax.f32 %v4358_v34, 0.0 }
 0x704   : > { %v4406_v20 = vmax.f32 %v4374_v18, 0.0 }
 0x705   : > { %4422 = vst.msk [vmem:[%s7016_s16 + $0x30] sm:$0xff] %vm279_vm0, %v4390_v59 }
 0x706   : > { %4438 = vst.msk [vmem:[%s7016_s16 + $0xb0] sm:$0xff] %vm279_vm0, %v4406_v20  ;;  %v3582_v4 = vpop.permute.xlu1 %3581 }
 0x707   : > { %3646 = vst.msk [vmem:[#allocation4 + $0xf8] sm:$0xff] %vm1623_vm8, %v3582_v4 }
 0x709   : > { %v3740_v8 = vpop.permute.xlu0 %3739  ;;  %v4061_v58 = vld [vmem:[#allocation4 + $0xf0] sm:$0xff] }
 0x70a   : > { %3821 = vst.msk [vmem:[#allocation4 + $0x70] sm:$0xff] %vm1816_vm9, %v3740_v8  ;;  %4576 = vmatmul.msk.f32.gmra.mxu3 %vm2079_vm12, %v4061_v58  ;;  %v7515_v8 = vld [vmem:[#allocation34_spill] sm:$0xff] }
 0x70b   : > { %4013 = vst.msk [vmem:[#allocation4 + $0x70] sm:$0xff] %vm2009_vm11, %v3932_v14 }
 0x70c   : > { %v4205_v39 = vpop.f32.mrf.mxu1 }
 0x70d   : > { %v4291_v24 = vmul.f32 %v6993_v33, %v4205_v39  ;;  %v4253_v6 = vpop.f32.mrf.mxu3 }
 0x70e   : > { %v4307_v21 = vmul.f32 %v6993_v33, %v4253_v6  ;;  %v3966_v53 = vpop.permute.xlu1 %3965  ;;  %v7516_v6 = vld [vmem:[#allocation16_spill] sm:$0xff] }
 0x70f   : > { %v4327_v28 = vadd.f32 %v7001_v16, %v4291_v24 }
 0x710   : > { %v4343_v9 = vadd.f32 %v7001_v16, %v4307_v21 }
 0x711   : > { %v4359_v22 = vadd.f32 %v4327_v28, %v7507_v57  ;;  %v3774_v27 = vpop.permute.xlu0 %3773 }
 0x712   : > { %v4375_v0 = vadd.f32 %v4343_v9, %v7508_v13  ;;  %3838 = vst.msk [vmem:[#allocation4 + $0xf8] sm:$0xff] %vm1816_vm9, %v3774_v27  ;;  %v4045_v43 = vld [vmem:[#allocation4 + $0x70] sm:$0xff] }
 0x713   : > { %v4391_v11 = vmax.f32 %v4359_v22, 0.0  ;;  %4030 = vst.msk [vmem:[#allocation4 + $0xf8] sm:$0xff] %vm2009_vm11, %v3966_v53  ;;  %4560 = vmatmul.msk.f32.gmra.mxu1 %vm2079_vm12, %v4045_v43  ;;  %v7517_v22 = vld [vmem:[#allocation29_spill] sm:$0xff] }
 0x714   : > { %v4407_v47 = vmax.f32 %v4375_v0, 0.0 }
 0x715   : > { %4423 = vst.msk [vmem:[%s7016_s16 + $0x38] sm:$0xff] %vm279_vm0, %v4391_v11 }
 0x716   : > { %4439 = vst.msk [vmem:[%s7016_s16 + $0xb8] sm:$0xff] %vm279_vm0, %v4407_v47  ;;  %v3934_v60 = vpop.permute.xlu1 %3933 }
 0x719   : > { %v3742_v54 = vpop.permute.xlu0 %3741 }
 0x71a   : > { %3822 = vst.msk [vmem:[#allocation4 + $0x78] sm:$0xff] %vm1816_vm9, %v3742_v54  ;;  %v4062_v3 = vld [vmem:[#allocation4 + $0xf8] sm:$0xff]  ;;  %v7518_v54 = vld [vmem:[#allocation21_spill] sm:$0xff] }
 0x71b   : > { %4014 = vst.msk [vmem:[#allocation4 + $0x78] sm:$0xff] %vm2009_vm11, %v3934_v60  ;;  %4577 = vmatmul.msk.f32.gmra.mxu3 %vm2079_vm12, %v4062_v3 }
 0x71d   : > { %v4256_v37 = vpop.f32.mrf.mxu3 }
 0x71e   : > { %v4308_v50 = vmul.f32 %v6993_v33, %v4256_v37 }
 0x720   : > { %v4344_v26 = vadd.f32 %v7001_v16, %v4308_v50  ;;  %v4208_v7 = vpop.f32.mrf.mxu1 }
 0x721   : > { %v4292_v51 = vmul.f32 %v6993_v33, %v4208_v7 }
 0x722   : > { %v4376_v31 = vadd.f32 %v4344_v26, %v7509_v52  ;;  %v4046_v30 = vld [vmem:[#allocation4 + $0x78] sm:$0xff]  ;;  %v7519_v26 = vld [vmem:[#allocation33_spill] sm:$0xff] }
 0x723   : > { %v4328_v23 = vadd.f32 %v7001_v16, %v4292_v51  ;;  %4561 = vmatmul.msk.f32.gmra.mxu1 %vm2079_vm12, %v4046_v30 }
 0x724   : > { %v4408_v25 = vmax.f32 %v4376_v31, 0.0 }
 0x725   : > { %v4360_v15 = vadd.f32 %v4328_v23, %v7510_v36  ;;  %v7520_v23 = vld [vmem:[#allocation14_spill] sm:$0xff] }
 0x726   : > { %4440 = vst.msk [vmem:[%s7016_s16 + $0xc0] sm:$0xff] %vm279_vm0, %v4408_v25 }
 0x727   : > { %v4392_v29 = vmax.f32 %v4360_v15, 0.0 }
 0x729   : > { %4424 = vst.msk [vmem:[%s7016_s16 + $0x40] sm:$0xff] %vm279_vm0, %v4392_v29 }
 0x72e   : > { %v4259_v62 = vpop.f32.mrf.mxu3 }
 0x72f   : > { %v4309_v35 = vmul.f32 %v6993_v33, %v4259_v62 }
 0x731   : > { %v4345_v48 = vadd.f32 %v7001_v16, %v4309_v35 }
 0x733   : > { %v4377_v10 = vadd.f32 %v4345_v48, %v7511_v41  ;;  %v7521_v41 = vld [vmem:[#allocation66_spill] sm:$0xff] }
 0x735   : > { %v4409_v63 = vmax.f32 %v4377_v10, 0.0 }
 0x737   : > { %4441 = vst.msk [vmem:[%s7016_s16 + $0xc8] sm:$0xff] %vm279_vm0, %v4409_v63  ;;  %v4211_v44 = vpop.f32.mrf.mxu1 }
 0x738   : > { %v4293_v17 = vmul.f32 %v6993_v33, %v4211_v44 }
 0x73a   : > { %v4329_v38 = vadd.f32 %v7001_v16, %v4293_v17  ;;  %v7522_v17 = vld [vmem:[#allocation19_spill] sm:$0xff] }
 0x73b   : > { %v4262_v14 = vpop.f32.mrf.mxu3 }
 0x73c   : > { %v4361_v1 = vadd.f32 %v4329_v38, %v7512_v2  ;;  %v4310_v19 = vmul.f32 %v6993_v33, %v4262_v14 }
 0x73e   : > { %v4393_v42 = vmax.f32 %v4361_v1, 0.0  ;;  %v4346_v45 = vadd.f32 %v7001_v16, %v4310_v19 }
 0x740   : > { %4425 = vst.msk [vmem:[%s7016_s16 + $0x48] sm:$0xff] %vm279_vm0, %v4393_v42  ;;  %v4378_v32 = vadd.f32 %v4346_v45, %v7513_v40  ;;  %v7523_v40 = vld [vmem:[#allocation67_spill] sm:$0xff] }
 0x742   : > { %v4410_v12 = vmax.f32 %v4378_v32, 0.0 }
 0x744   : > { %4442 = vst.msk [vmem:[%s7016_s16 + $0xd0] sm:$0xff] %vm279_vm0, %v4410_v12  ;;  %v4214_v56 = vpop.f32.mrf.mxu1 }
 0x745   : > { %v4294_v49 = vmul.f32 %v6993_v33, %v4214_v56 }
 0x747   : > { %v4330_v5 = vadd.f32 %v7001_v16, %v4294_v49  ;;  %v7524_v49 = vld [vmem:[#allocation24_spill] sm:$0xff] }
 0x749   : > { %v4362_v34 = vadd.f32 %v4330_v5, %v7514_v55 }
 0x74b   : > { %v4394_v61 = vmax.f32 %v4362_v34, 0.0 }
 0x74d   : > { %4426 = vst.msk [vmem:[%s7016_s16 + $0x50] sm:$0xff] %vm279_vm0, %v4394_v61 }
 0x755   : > { %v4265_v46 = vpop.f32.mrf.mxu3 }
 0x756   : > { %v4311_v18 = vmul.f32 %v6993_v33, %v4265_v46 }
 0x758   : > { %v4347_v59 = vadd.f32 %v7001_v16, %v4311_v18  ;;  %v4217_v20 = vpop.f32.mrf.mxu1 }
 0x759   : > { %v4295_v4 = vmul.f32 %v6993_v33, %v4217_v20 }
 0x75a   : > { %v4379_v58 = vadd.f32 %v4347_v59, %v7515_v8 }
 0x75b   : > { %v4331_v39 = vadd.f32 %v7001_v16, %v4295_v4 }
 0x75c   : > { %v4411_v24 = vmax.f32 %v4379_v58, 0.0 }
 0x75d   : > { %v4363_v21 = vadd.f32 %v4331_v39, %v7516_v6 }
 0x75e   : > { %4443 = vst.msk [vmem:[%s7016_s16 + $0xd8] sm:$0xff] %vm279_vm0, %v4411_v24 }
 0x75f   : > { %v4395_v28 = vmax.f32 %v4363_v21, 0.0 }
 0x761   : > { %4427 = vst.msk [vmem:[%s7016_s16 + $0x58] sm:$0xff] %vm279_vm0, %v4395_v28 }
 0x766   : > { %v4268_v9 = vpop.f32.mrf.mxu3 }
 0x767   : > { %v4312_v53 = vmul.f32 %v6993_v33, %v4268_v9 }
 0x769   : > { %v4348_v57 = vadd.f32 %v7001_v16, %v4312_v53 }
 0x76b   : > { %v4380_v27 = vadd.f32 %v4348_v57, %v7517_v22 }
 0x76d   : > { %v4412_v13 = vmax.f32 %v4380_v27, 0.0 }
 0x76f   : > { %4444 = vst.msk [vmem:[%s7016_s16 + $0xe0] sm:$0xff] %vm279_vm0, %v4412_v13  ;;  %v4220_v0 = vpop.f32.mrf.mxu1 }
 0x770   : > { %v4296_v43 = vmul.f32 %v6993_v33, %v4220_v0 }
 0x772   : > { %v4332_v11 = vadd.f32 %v7001_v16, %v4296_v43 }
 0x773   : > { %v4271_v47 = vpop.f32.mrf.mxu3 }
 0x774   : > { %v4364_v60 = vadd.f32 %v4332_v11, %v7518_v54  ;;  %v4313_v3 = vmul.f32 %v6993_v33, %v4271_v47 }
 0x776   : > { %v4396_v37 = vmax.f32 %v4364_v60, 0.0  ;;  %v4349_v50 = vadd.f32 %v7001_v16, %v4313_v3 }
 0x778   : > { %4428 = vst.msk [vmem:[%s7016_s16 + $0x60] sm:$0xff] %vm279_vm0, %v4396_v37  ;;  %v4381_v7 = vadd.f32 %v4349_v50, %v7519_v26 }
 0x77a   : > { %v4413_v51 = vmax.f32 %v4381_v7, 0.0 }
 0x77c   : > { %4445 = vst.msk [vmem:[%s7016_s16 + $0xe8] sm:$0xff] %vm279_vm0, %v4413_v51  ;;  %v4223_v52 = vpop.f32.mrf.mxu1 }
 0x77d   : > { %v4297_v31 = vmul.f32 %v6993_v33, %v4223_v52 }
 0x77f   : > { %v4333_v30 = vadd.f32 %v7001_v16, %v4297_v31 }
 0x781   : > { %v4365_v25 = vadd.f32 %v4333_v30, %v7520_v23 }
 0x783   : > { %v4397_v36 = vmax.f32 %v4365_v25, 0.0 }
 0x785   : > { %4429 = vst.msk [vmem:[%s7016_s16 + $0x68] sm:$0xff] %vm279_vm0, %v4397_v36 }
 0x78d   : > { %v4274_v15 = vpop.f32.mrf.mxu3 }
 0x78e   : > { %v4314_v29 = vmul.f32 %v6993_v33, %v4274_v15 }
 0x790   : > { %v4350_v62 = vadd.f32 %v7001_v16, %v4314_v29  ;;  %v4226_v35 = vpop.f32.mrf.mxu1 }
 0x791   : > { %v4298_v48 = vmul.f32 %v6993_v33, %v4226_v35 }
 0x792   : > { %v4382_v10 = vadd.f32 %v4350_v62, %v7521_v41 }
 0x793   : > { %v4334_v63 = vadd.f32 %v7001_v16, %v4298_v48 }
 0x794   : > { %v4414_v44 = vmax.f32 %v4382_v10, 0.0 }
 0x795   : > { %v4366_v38 = vadd.f32 %v4334_v63, %v7522_v17 }
 0x796   : > { %4446 = vst.msk [vmem:[%s7016_s16 + $0xf0] sm:$0xff] %vm279_vm0, %v4414_v44 }
 0x797   : > { %v4398_v14 = vmax.f32 %v4366_v38, 0.0 }
 0x799   : > { %4430 = vst.msk [vmem:[%s7016_s16 + $0x70] sm:$0xff] %vm279_vm0, %v4398_v14 }
 0x79e   : > { %v4277_v2 = vpop.f32.mrf.mxu3 }
 0x79f   : > { %v4315_v1 = vmul.f32 %v6993_v33, %v4277_v2 }
 0x7a0   : > { %v4229_v19 = vpop.f32.mrf.mxu1 }
 0x7a1   : > { %v4351_v42 = vadd.f32 %v7001_v16, %v4315_v1  ;;  %v4299_v45 = vmul.f32 %v6993_v33, %v4229_v19 }
 0x7a3   : > { %v4383_v32 = vadd.f32 %v4351_v42, %v7523_v40  ;;  %v4335_v12 = vadd.f32 %v7001_v16, %v4299_v45 }
 0x7a5   : > { %v4415_v56 = vmax.f32 %v4383_v32, 0.0  ;;  %v4367_v5 = vadd.f32 %v4335_v12, %v7524_v49 }
 0x7a7   : > { %4447 = vst.msk [vmem:[%s7016_s16 + $0xf8] sm:$0xff] %vm279_vm0, %v4415_v56  ;;  %v4399_v55 = vmax.f32 %v4367_v5, 0.0 }
 0x7a9   : > { %4431 = vst.msk [vmem:[%s7016_s16 + $0x78] sm:$0xff] %vm279_vm0, %v4399_v55 }
 0x7aa PF: > { %s17_s24 = sadd.s32 1, %s4619_s24  }
 0x7ab   : > { %p14_p4 = scmp.ge.s32.totalorder %s17_s24, 4  }
 0x7ad   :  { %16 = sbr.rel (!%p14_p4) target bundleno = 1 (0x1), region = 84 }

</bundles_post_ra>
